<compile_context>
chip_gen: v6e
topology: v6e:2x2x1
jax: 0.10.0
libtpu: 0.0.40
codegen_flags: <defaults>
</compile_context>

<pallas_src>
import jax
import jax.numpy as jnp
from jax import lax
from jax.experimental import pallas as pl
from jax.experimental.pallas import tpu as pltpu


# --------------------------- fused Down kernel --------------------------------

def _down_fused_kernel(x_ref, w1_ref, b1_ref, w2_ref, b2_ref, o_ref,
                       xpad1_ref, p1_ref, xpad2_ref, p2_ref):
    # x_ref : (B, Ho, 2, Wo, 2*Cin)   B images; 2x2 pooling taps pre-grouped (free view)
    # w1_ref: (9*Cin, Cmid)           conv1 weights (BN1 scale folded), compute dtype
    # b1_ref: (1, Cmid)    f32        conv1 bias + BN1 shift (folded)
    # w2_ref: (9*Cmid, Cout)          conv2 weights (BN2 scale folded), flipped contraction
    # b2_ref: (1, Cout)    f32        conv2 bias + BN2 shift (folded)
    # o_ref : (B, Cout, Ho*Wo) f32    NCHW with flattened spatial
    B, Ho, _, Wo, two_cin = x_ref.shape
    Cin = two_cin // 2
    Cmid = w1_ref.shape[1]
    M = B * Ho * Wo
    cdt = xpad1_ref.dtype

    # ---------------- 2x2 max-pool (stride 2), all in VMEM ----------------
    r0 = x_ref[:, :, 0]                                   # (B, Ho, Wo, 2*Cin) even rows
    r1 = x_ref[:, :, 1]                                   # (B, Ho, Wo, 2*Cin) odd rows
    m = jnp.maximum(r0, r1)                               # pooled along H
    pooled = jnp.maximum(m[..., :Cin], m[..., Cin:])      # (B, Ho, Wo, Cin) pooled along W

    # ---- conv1 (3x3, pad 1) + BN1 + ReLU ----
    # Zero only the 1-px border (the interior is fully rewritten every step, so a full
    # clear is wasted vst work; doing it per step is safe under megacore splitting).
    xpad1_ref[:, 0:1, :, :] = jnp.zeros((B, 1, Wo + 2, Cin), cdt)
    xpad1_ref[:, Ho + 1:Ho + 2, :, :] = jnp.zeros((B, 1, Wo + 2, Cin), cdt)
    xpad1_ref[:, :, 0:1, :] = jnp.zeros((B, Ho + 2, 1, Cin), cdt)
    xpad1_ref[:, :, Wo + 1:Wo + 2, :] = jnp.zeros((B, Ho + 2, 1, Cin), cdt)
    xpad1_ref[:, 1:Ho + 1, 1:Wo + 1, :] = pooled.astype(cdt)

    # im2col into (B, Ho, Wo, 9*Cin): no per-tap reshape; one reshape before the dot.
    for k in range(9):
        kh, kw = k // 3, k % 3
        p1_ref[:, :, :, k * Cin:(k + 1) * Cin] = xpad1_ref[:, kh:kh + Ho, kw:kw + Wo, :]
    y1 = jnp.dot(p1_ref[...].reshape(M, 9 * Cin), w1_ref[...],
                 preferred_element_type=jnp.float32)      # (M, Cmid) f32
    y1 = jnp.maximum(y1 + b1_ref[...], 0.0)

    # ---- conv2 (3x3, pad 1) + BN2 + ReLU ----
    xpad2_ref[:, 0:1, :, :] = jnp.zeros((B, 1, Wo + 2, Cmid), cdt)
    xpad2_ref[:, Ho + 1:Ho + 2, :, :] = jnp.zeros((B, 1, Wo + 2, Cmid), cdt)
    xpad2_ref[:, :, 0:1, :] = jnp.zeros((B, Ho + 2, 1, Cmid), cdt)
    xpad2_ref[:, :, Wo + 1:Wo + 2, :] = jnp.zeros((B, Ho + 2, 1, Cmid), cdt)
    xpad2_ref[:, 1:Ho + 1, 1:Wo + 1, :] = y1.reshape(B, Ho, Wo, Cmid).astype(cdt)

    for k in range(9):
        kh, kw = k // 3, k % 3
        p2_ref[:, :, :, k * Cmid:(k + 1) * Cmid] = xpad2_ref[:, kh:kh + Ho, kw:kw + Wo, :]
    # flipped contraction: (M, 9*Cmid) @ (9*Cmid, Cout) -> (M, Cout).  M = B*Ho*Wo fills
    # the MXU rows and no large patch-matrix transpose is needed.
    y2 = jnp.dot(p2_ref[...].reshape(M, 9 * Cmid), w2_ref[...],
                 preferred_element_type=jnp.float32)      # (M, Cout) f32
    y2 = jnp.maximum(y2 + b2_ref[...], 0.0)

    # Small per-image transpose (9x smaller than the patch matrix) to channels-first
    # so the wrapper's NCHW reshape stays a free metadata view.
    HoWo = Ho * Wo
    for b in range(B):
        o_ref[b] = y2[b * HoWo:(b + 1) * HoWo, :].T.astype(o_ref.dtype)


# ------------------------------- Down forward ---------------------------------

def _pick_block_batch(n, ho, wo):
    """Largest-useful batch-fusion factor: fill the MXU (B*Ho*Wo >= 256) while keeping
    at least 2 grid steps when the batch allows (v7x megacore)."""
    divs = [d for d in range(1, n + 1) if n % d == 0]
    cands = [d for d in divs if n // d >= 2] or divs
    for d in cands:
        if d * ho * wo >= 256:
            return d
    return cands[-1]


def down_forward(x_nchw, p, *, compute_dtype=jnp.bfloat16, block_batch=None, eps=1e-5):
    """x_nchw: (N, Cin, H, W)  ->  (N, Cout, H//2, W//2)"""
    N, Cin, H, W = x_nchw.shape
    Cmid = p["w1"].shape[0]
    Cout = p["w2"].shape[0]
    Ho, Wo = H // 2, W // 2

    # fold BN (inference):  BN(conv(x)+bias) = conv_{w*s}(x) + ((bias-mean)*s + beta)
    s1 = p["g1"] / jnp.sqrt(p["v1"] + eps)
    b1 = ((p["b1"] - p["m1"]) * s1 + p["be1"]).reshape(1, Cmid).astype(jnp.float32)
    s2 = p["g2"] / jnp.sqrt(p["v2"] + eps)
    b2 = ((p["b2"] - p["m2"]) * s2 + p["be2"]).reshape(1, Cout).astype(jnp.float32)

    # conv1: OIHW -> (kh, kw, Cin, Cmid) -> (9*Cin, Cmid), BN scale folded on out-channel
    w1 = (jnp.transpose(p["w1"], (2, 3, 1, 0)) * s1[None, None, None, :]
          ).reshape(9 * Cin, Cmid).astype(compute_dtype)
    # conv2: same layout with the contraction flipped -> (9*Cmid, Cout)
    w2 = (jnp.transpose(p["w2"], (2, 3, 1, 0)) * s2[None, None, None, :]
          ).reshape(9 * Cmid, Cout).astype(compute_dtype)

    # boundary relayout NCHW -> NHWC, then a free view exposing the 2x2 pooling taps
    x_nhwc = jnp.transpose(x_nchw, (0, 2, 3, 1))
    x_taps = x_nhwc.reshape(N, Ho, 2, Wo, 2 * Cin)

    B = block_batch if block_batch is not None else _pick_block_batch(N, Ho, Wo)
    assert N % B == 0, (N, B)

    out = pl.pallas_call(
        _down_fused_kernel,
        out_shape=jax.ShapeDtypeStruct((N, Cout, Ho * Wo), jnp.float32),
        grid=(N // B,),
        in_specs=[
            pl.BlockSpec((B, Ho, 2, Wo, 2 * Cin), lambda n: (n, 0, 0, 0, 0)),
            pl.BlockSpec((9 * Cin, Cmid), lambda n: (0, 0)),
            pl.BlockSpec((1, Cmid), lambda n: (0, 0)),
            pl.BlockSpec((9 * Cmid, Cout), lambda n: (0, 0)),
            pl.BlockSpec((1, Cout), lambda n: (0, 0)),
        ],
        out_specs=pl.BlockSpec((B, Cout, Ho * Wo), lambda n: (n, 0, 0)),
        scratch_shapes=[
            pltpu.VMEM((B, Ho + 2, Wo + 2, Cin), compute_dtype),   # padded pooled input
            pltpu.VMEM((B, Ho, Wo, 9 * Cin), compute_dtype),       # im2col patches, conv1
            pltpu.VMEM((B, Ho + 2, Wo + 2, Cmid), compute_dtype),  # padded conv1 output
            pltpu.VMEM((B, Ho, Wo, 9 * Cmid), compute_dtype),      # im2col patches, conv2
        ],
        compiler_params=pltpu.CompilerParams(
            dimension_semantics=("parallel",),
            vmem_limit_bytes=64 * 1024 * 1024),
    )(x_taps, w1, b1, w2, b2)

    return out.reshape(N, Cout, Ho, Wo)                   # free metadata reshape


# ------------------------------ plain-JAX reference ----------------------------

def down_reference(x_nchw, p, eps=1e-5):
    x = lax.reduce_window(x_nchw, -jnp.inf, lax.max,
                          (1, 1, 2, 2), (1, 1, 2, 2), "VALID")

    def conv_bn_relu(x, w, b, g, be, m, v):
        y = lax.conv_general_dilated(x, w, (1, 1), ((1, 1), (1, 1)),
                                     dimension_numbers=("NCHW", "OIHW", "NCHW"))
        y = y + b[None, :, None, None]
        y = ((y - m[None, :, None, None])
             / jnp.sqrt(v + eps)[None, :, None, None]
             * g[None, :, None, None] + be[None, :, None, None])
        return jnp.maximum(y, 0.0)

    x = conv_bn_relu(x, p["w1"], p["b1"], p["g1"], p["be1"], p["m1"], p["v1"])
    x = conv_bn_relu(x, p["w2"], p["b2"], p["g2"], p["be2"], p["m2"], p["v2"])
    return x


# ----------------------------------- main --------------------------------------

if __name__ == "__main__":
    N, Cin, Cout, H, W = 4, 4, 8, 16, 16   # Down(in_channels=4, out_channels=8)
    key = jax.random.PRNGKey(0)
    ks = jax.random.split(key, 16)

    params = {
        # DoubleConv(4, 8): conv1 (8,4,3,3), conv2 (8,8,3,3); BN params (8,)
        "w1": 0.1 * jax.random.normal(ks[0], (Cout, Cin, 3, 3), jnp.float32),
        "b1": 0.1 * jax.random.normal(ks[1], (Cout,), jnp.float32),
        "g1": 1.0 + 0.1 * jax.random.normal(ks[2], (Cout,), jnp.float32),
        "be1": 0.1 * jax.random.normal(ks[3], (Cout,), jnp.float32),
        "m1": 0.1 * jax.random.normal(ks[4], (Cout,), jnp.float32),
        "v1": 0.5 + jnp.abs(jax.random.normal(ks[5], (Cout,), jnp.float32)),
        "w2": 0.1 * jax.random.normal(ks[6], (Cout, Cout, 3, 3), jnp.float32),
        "b2": 0.1 * jax.random.normal(ks[7], (Cout,), jnp.float32),
        "g2": 1.0 + 0.1 * jax.random.normal(ks[8], (Cout,), jnp.float32),
        "be2": 0.1 * jax.random.normal(ks[9], (Cout,), jnp.float32),
        "m2": 0.1 * jax.random.normal(ks[10], (Cout,), jnp.float32),
        "v2": 0.5 + jnp.abs(jax.random.normal(ks[11], (Cout,), jnp.float32)),
    }

    x = jax.random.normal(ks[12], (N, Cin, H, W), jnp.float32)

    ref = jax.block_until_ready(down_reference(x, params))

    # f32 compute path: tight correctness check
    down_f32 = jax.jit(lambda x, p: down_forward(x, p, compute_dtype=jnp.float32))
    out_f32 = jax.block_until_ready(down_f32(x, params))
    assert out_f32.shape == (N, Cout, H // 2, W // 2), out_f32.shape
    assert jnp.allclose(out_f32, ref, rtol=5e-4, atol=5e-4), \
        float(jnp.max(jnp.abs(out_f32 - ref)))

    # bf16 matmul-operand path (default / performance path): loose check
    down_bf16 = jax.jit(lambda x, p: down_forward(x, p))
    out_bf16 = jax.block_until_ready(down_bf16(x, params))
    assert out_bf16.shape == (N, Cout, H // 2, W // 2), out_bf16.shape
    assert jnp.allclose(out_bf16, ref, rtol=5e-2, atol=5e-2), \
        float(jnp.max(jnp.abs(out_bf16 - ref)))

    print("KERNEL_OK")
</pallas_src>

<mosaic_0001>
module attributes {stable_mosaic.version = 11 : i64} {
  func.func @_down_fused_kernel(%arg0: i32, %arg1: memref<2x8x2x8x8xf32, #tpu.memory_space<vmem>>, %arg2: memref<36x8xf32, #tpu.memory_space<vmem>>, %arg3: memref<1x8xf32, #tpu.memory_space<vmem>>, %arg4: memref<72x8xf32, #tpu.memory_space<vmem>>, %arg5: memref<1x8xf32, #tpu.memory_space<vmem>>, %arg6: memref<2x8x64xf32, #tpu.memory_space<vmem>>, %arg7: memref<2x10x10x4xf32, #tpu.memory_space<vmem>>, %arg8: memref<2x8x8x36xf32, #tpu.memory_space<vmem>>, %arg9: memref<2x10x10x8xf32, #tpu.memory_space<vmem>>, %arg10: memref<2x8x8x72xf32, #tpu.memory_space<vmem>>) attributes {dimension_semantics = [#tpu.dimension_semantics<parallel>], iteration_bounds = array<i64: 2>, scalar_prefetch = 0 : i64, scratch_operands = 4 : i64, tpu.core_type = #tpu.core_type<tc>, window_params = [{transform_indices = @transform_0, window_bounds = array<i64: 2, 8, 2, 8, 8>}, {pipeline_mode = #tpu.pipeline_mode<synchronous>, transform_indices = @transform_1, window_bounds = array<i64: 36, 8>}, {pipeline_mode = #tpu.pipeline_mode<synchronous>, transform_indices = @transform_2, window_bounds = array<i64: 1, 8>}, {pipeline_mode = #tpu.pipeline_mode<synchronous>, transform_indices = @transform_3, window_bounds = array<i64: 72, 8>}, {pipeline_mode = #tpu.pipeline_mode<synchronous>, transform_indices = @transform_4, window_bounds = array<i64: 1, 8>}, {transform_indices = @transform_5, window_bounds = array<i64: 2, 8, 64>}]} {
    %c0 = arith.constant 0 : index
    %c0_0 = arith.constant 0 : index
    %c0_1 = arith.constant 0 : index
    %c0_2 = arith.constant 0 : index
    %c0_3 = arith.constant 0 : index
    %0 = vector.load %arg1[%c0, %c0_0, %c0_1, %c0_2, %c0_3] : memref<2x8x2x8x8xf32, #tpu.memory_space<vmem>>, vector<2x8x1x8x8xf32>
    %1 = vector.shape_cast %0 : vector<2x8x1x8x8xf32> to vector<2x8x8x8xf32>
    %c0_4 = arith.constant 0 : index
    %c0_5 = arith.constant 0 : index
    %c1 = arith.constant 1 : index
    %c0_6 = arith.constant 0 : index
    %c0_7 = arith.constant 0 : index
    %2 = vector.load %arg1[%c0_4, %c0_5, %c1, %c0_6, %c0_7] : memref<2x8x2x8x8xf32, #tpu.memory_space<vmem>>, vector<2x8x1x8x8xf32>
    %3 = vector.shape_cast %2 : vector<2x8x1x8x8xf32> to vector<2x8x8x8xf32>
    %4 = arith.maximumf %1, %3 : vector<2x8x8x8xf32>
    %5 = vector.extract_strided_slice %4 {offsets = [0, 0, 0, 0], sizes = [2, 8, 8, 4], strides = [1, 1, 1, 1]} : vector<2x8x8x8xf32> to vector<2x8x8x4xf32>
    %6 = vector.extract_strided_slice %4 {offsets = [0, 0, 0, 4], sizes = [2, 8, 8, 4], strides = [1, 1, 1, 1]} : vector<2x8x8x8xf32> to vector<2x8x8x4xf32>
    %7 = arith.maximumf %5, %6 : vector<2x8x8x4xf32>
    %cst = arith.constant 0.000000e+00 : f32
    %8 = vector.broadcast %cst : f32 to vector<2x1x10x4xf32>
    %c0_8 = arith.constant 0 : index
    %c0_9 = arith.constant 0 : index
    %c0_10 = arith.constant 0 : index
    %c0_11 = arith.constant 0 : index
    %9 = vector.load %arg7[%c0_8, %c0_9, %c0_10, %c0_11] : memref<2x10x10x4xf32, #tpu.memory_space<vmem>>, vector<2x1x10x4xf32>
    tpu.vector_store %arg7[%c0_8, %c0_9, %c0_10, %c0_11], %8 {strides = array<i32>} : memref<2x10x10x4xf32, #tpu.memory_space<vmem>>, vector<2x1x10x4xf32>,
    %cst_12 = arith.constant 0.000000e+00 : f32
    %10 = vector.broadcast %cst_12 : f32 to vector<2x1x10x4xf32>
    %c0_13 = arith.constant 0 : index
    %c9 = arith.constant 9 : index
    %c0_14 = arith.constant 0 : index
    %c0_15 = arith.constant 0 : index
    %11 = vector.load %arg7[%c0_13, %c9, %c0_14, %c0_15] : memref<2x10x10x4xf32, #tpu.memory_space<vmem>>, vector<2x1x10x4xf32>
    tpu.vector_store %arg7[%c0_13, %c9, %c0_14, %c0_15], %10 {strides = array<i32>} : memref<2x10x10x4xf32, #tpu.memory_space<vmem>>, vector<2x1x10x4xf32>,
    %cst_16 = arith.constant 0.000000e+00 : f32
    %12 = vector.broadcast %cst_16 : f32 to vector<2x10x1x4xf32>
    %c0_17 = arith.constant 0 : index
    %c0_18 = arith.constant 0 : index
    %c0_19 = arith.constant 0 : index
    %c0_20 = arith.constant 0 : index
    %13 = vector.load %arg7[%c0_17, %c0_18, %c0_19, %c0_20] : memref<2x10x10x4xf32, #tpu.memory_space<vmem>>, vector<2x10x1x4xf32>
    tpu.vector_store %arg7[%c0_17, %c0_18, %c0_19, %c0_20], %12 {strides = array<i32>} : memref<2x10x10x4xf32, #tpu.memory_space<vmem>>, vector<2x10x1x4xf32>,
    %cst_21 = arith.constant 0.000000e+00 : f32
    %14 = vector.broadcast %cst_21 : f32 to vector<2x10x1x4xf32>
    %c0_22 = arith.constant 0 : index
    %c0_23 = arith.constant 0 : index
    %c9_24 = arith.constant 9 : index
    %c0_25 = arith.constant 0 : index
    %15 = vector.load %arg7[%c0_22, %c0_23, %c9_24, %c0_25] : memref<2x10x10x4xf32, #tpu.memory_space<vmem>>, vector<2x10x1x4xf32>
    tpu.vector_store %arg7[%c0_22, %c0_23, %c9_24, %c0_25], %14 {strides = array<i32>} : memref<2x10x10x4xf32, #tpu.memory_space<vmem>>, vector<2x10x1x4xf32>,
    %c0_26 = arith.constant 0 : index
    %c1_27 = arith.constant 1 : index
    %c1_28 = arith.constant 1 : index
    %c0_29 = arith.constant 0 : index
    %16 = vector.load %arg7[%c0_26, %c1_27, %c1_28, %c0_29] : memref<2x10x10x4xf32, #tpu.memory_space<vmem>>, vector<2x8x8x4xf32>
    tpu.vector_store %arg7[%c0_26, %c1_27, %c1_28, %c0_29], %7 {strides = array<i32>} : memref<2x10x10x4xf32, #tpu.memory_space<vmem>>, vector<2x8x8x4xf32>,
    %c0_30 = arith.constant 0 : index
    %c0_31 = arith.constant 0 : index
    %c0_32 = arith.constant 0 : index
    %c0_33 = arith.constant 0 : index
    %17 = vector.load %arg7[%c0_30, %c0_31, %c0_32, %c0_33] : memref<2x10x10x4xf32, #tpu.memory_space<vmem>>, vector<2x8x8x4xf32>
    %c0_34 = arith.constant 0 : index
    %c0_35 = arith.constant 0 : index
    %c0_36 = arith.constant 0 : index
    %c0_37 = arith.constant 0 : index
    %18 = vector.load %arg8[%c0_34, %c0_35, %c0_36, %c0_37] : memref<2x8x8x36xf32, #tpu.memory_space<vmem>>, vector<2x8x8x4xf32>
    tpu.vector_store %arg8[%c0_34, %c0_35, %c0_36, %c0_37], %17 {strides = array<i32>} : memref<2x8x8x36xf32, #tpu.memory_space<vmem>>, vector<2x8x8x4xf32>,
    %c0_38 = arith.constant 0 : index
    %c0_39 = arith.constant 0 : index
    %c1_40 = arith.constant 1 : index
    %c0_41 = arith.constant 0 : index
    %19 = vector.load %arg7[%c0_38, %c0_39, %c1_40, %c0_41] : memref<2x10x10x4xf32, #tpu.memory_space<vmem>>, vector<2x8x8x4xf32>
    %c0_42 = arith.constant 0 : index
    %c0_43 = arith.constant 0 : index
    %c0_44 = arith.constant 0 : index
    %c4 = arith.constant 4 : index
    %20 = vector.load %arg8[%c0_42, %c0_43, %c0_44, %c4] : memref<2x8x8x36xf32, #tpu.memory_space<vmem>>, vector<2x8x8x4xf32>
    tpu.vector_store %arg8[%c0_42, %c0_43, %c0_44, %c4], %19 {strides = array<i32>} : memref<2x8x8x36xf32, #tpu.memory_space<vmem>>, vector<2x8x8x4xf32>,
    %c0_45 = arith.constant 0 : index
    %c0_46 = arith.constant 0 : index
    %c2 = arith.constant 2 : index
    %c0_47 = arith.constant 0 : index
    %21 = vector.load %arg7[%c0_45, %c0_46, %c2, %c0_47] : memref<2x10x10x4xf32, #tpu.memory_space<vmem>>, vector<2x8x8x4xf32>
    %c0_48 = arith.constant 0 : index
    %c0_49 = arith.constant 0 : index
    %c0_50 = arith.constant 0 : index
    %c8 = arith.constant 8 : index
    %22 = vector.load %arg8[%c0_48, %c0_49, %c0_50, %c8] : memref<2x8x8x36xf32, #tpu.memory_space<vmem>>, vector<2x8x8x4xf32>
    tpu.vector_store %arg8[%c0_48, %c0_49, %c0_50, %c8], %21 {strides = array<i32>} : memref<2x8x8x36xf32, #tpu.memory_space<vmem>>, vector<2x8x8x4xf32>,
    %c0_51 = arith.constant 0 : index
    %c1_52 = arith.constant 1 : index
    %c0_53 = arith.constant 0 : index
    %c0_54 = arith.constant 0 : index
    %23 = vector.load %arg7[%c0_51, %c1_52, %c0_53, %c0_54] : memref<2x10x10x4xf32, #tpu.memory_space<vmem>>, vector<2x8x8x4xf32>
    %c0_55 = arith.constant 0 : index
    %c0_56 = arith.constant 0 : index
    %c0_57 = arith.constant 0 : index
    %c12 = arith.constant 12 : index
    %24 = vector.load %arg8[%c0_55, %c0_56, %c0_57, %c12] : memref<2x8x8x36xf32, #tpu.memory_space<vmem>>, vector<2x8x8x4xf32>
    tpu.vector_store %arg8[%c0_55, %c0_56, %c0_57, %c12], %23 {strides = array<i32>} : memref<2x8x8x36xf32, #tpu.memory_space<vmem>>, vector<2x8x8x4xf32>,
    %c0_58 = arith.constant 0 : index
    %c1_59 = arith.constant 1 : index
    %c1_60 = arith.constant 1 : index
    %c0_61 = arith.constant 0 : index
    %25 = vector.load %arg7[%c0_58, %c1_59, %c1_60, %c0_61] : memref<2x10x10x4xf32, #tpu.memory_space<vmem>>, vector<2x8x8x4xf32>
    %c0_62 = arith.constant 0 : index
    %c0_63 = arith.constant 0 : index
    %c0_64 = arith.constant 0 : index
    %c16 = arith.constant 16 : index
    %26 = vector.load %arg8[%c0_62, %c0_63, %c0_64, %c16] : memref<2x8x8x36xf32, #tpu.memory_space<vmem>>, vector<2x8x8x4xf32>
    tpu.vector_store %arg8[%c0_62, %c0_63, %c0_64, %c16], %25 {strides = array<i32>} : memref<2x8x8x36xf32, #tpu.memory_space<vmem>>, vector<2x8x8x4xf32>,
    %c0_65 = arith.constant 0 : index
    %c1_66 = arith.constant 1 : index
    %c2_67 = arith.constant 2 : index
    %c0_68 = arith.constant 0 : index
    %27 = vector.load %arg7[%c0_65, %c1_66, %c2_67, %c0_68] : memref<2x10x10x4xf32, #tpu.memory_space<vmem>>, vector<2x8x8x4xf32>
    %c0_69 = arith.constant 0 : index
    %c0_70 = arith.constant 0 : index
    %c0_71 = arith.constant 0 : index
    %c20 = arith.constant 20 : index
    %28 = vector.load %arg8[%c0_69, %c0_70, %c0_71, %c20] : memref<2x8x8x36xf32, #tpu.memory_space<vmem>>, vector<2x8x8x4xf32>
    tpu.vector_store %arg8[%c0_69, %c0_70, %c0_71, %c20], %27 {strides = array<i32>} : memref<2x8x8x36xf32, #tpu.memory_space<vmem>>, vector<2x8x8x4xf32>,
    %c0_72 = arith.constant 0 : index
    %c2_73 = arith.constant 2 : index
    %c0_74 = arith.constant 0 : index
    %c0_75 = arith.constant 0 : index
    %29 = vector.load %arg7[%c0_72, %c2_73, %c0_74, %c0_75] : memref<2x10x10x4xf32, #tpu.memory_space<vmem>>, vector<2x8x8x4xf32>
    %c0_76 = arith.constant 0 : index
    %c0_77 = arith.constant 0 : index
    %c0_78 = arith.constant 0 : index
    %c24 = arith.constant 24 : index
    %30 = vector.load %arg8[%c0_76, %c0_77, %c0_78, %c24] : memref<2x8x8x36xf32, #tpu.memory_space<vmem>>, vector<2x8x8x4xf32>
    tpu.vector_store %arg8[%c0_76, %c0_77, %c0_78, %c24], %29 {strides = array<i32>} : memref<2x8x8x36xf32, #tpu.memory_space<vmem>>, vector<2x8x8x4xf32>,
    %c0_79 = arith.constant 0 : index
    %c2_80 = arith.constant 2 : index
    %c1_81 = arith.constant 1 : index
    %c0_82 = arith.constant 0 : index
    %31 = vector.load %arg7[%c0_79, %c2_80, %c1_81, %c0_82] : memref<2x10x10x4xf32, #tpu.memory_space<vmem>>, vector<2x8x8x4xf32>
    %c0_83 = arith.constant 0 : index
    %c0_84 = arith.constant 0 : index
    %c0_85 = arith.constant 0 : index
    %c28 = arith.constant 28 : index
    %32 = vector.load %arg8[%c0_83, %c0_84, %c0_85, %c28] : memref<2x8x8x36xf32, #tpu.memory_space<vmem>>, vector<2x8x8x4xf32>
    tpu.vector_store %arg8[%c0_83, %c0_84, %c0_85, %c28], %31 {strides = array<i32>} : memref<2x8x8x36xf32, #tpu.memory_space<vmem>>, vector<2x8x8x4xf32>,
    %c0_86 = arith.constant 0 : index
    %c2_87 = arith.constant 2 : index
    %c2_88 = arith.constant 2 : index
    %c0_89 = arith.constant 0 : index
    %33 = vector.load %arg7[%c0_86, %c2_87, %c2_88, %c0_89] : memref<2x10x10x4xf32, #tpu.memory_space<vmem>>, vector<2x8x8x4xf32>
    %c0_90 = arith.constant 0 : index
    %c0_91 = arith.constant 0 : index
    %c0_92 = arith.constant 0 : index
    %c32 = arith.constant 32 : index
    %34 = vector.load %arg8[%c0_90, %c0_91, %c0_92, %c32] : memref<2x8x8x36xf32, #tpu.memory_space<vmem>>, vector<2x8x8x4xf32>
    tpu.vector_store %arg8[%c0_90, %c0_91, %c0_92, %c32], %33 {strides = array<i32>} : memref<2x8x8x36xf32, #tpu.memory_space<vmem>>, vector<2x8x8x4xf32>,
    %c0_93 = arith.constant 0 : index
    %c0_94 = arith.constant 0 : index
    %c0_95 = arith.constant 0 : index
    %c0_96 = arith.constant 0 : index
    %35 = vector.load %arg8[%c0_93, %c0_94, %c0_95, %c0_96] : memref<2x8x8x36xf32, #tpu.memory_space<vmem>>, vector<2x8x8x36xf32>
    %36 = vector.shape_cast %35 : vector<2x8x8x36xf32> to vector<128x36xf32>
    %c0_97 = arith.constant 0 : index
    %c0_98 = arith.constant 0 : index
    %37 = vector.load %arg2[%c0_97, %c0_98] : memref<36x8xf32, #tpu.memory_space<vmem>>, vector<36x8xf32>
    %cst_99 = arith.constant dense<0.000000e+00> : vector<128x8xf32>
    %38 = tpu.matmul %36, %37, %cst_99 {dimension_numbers = #tpu.dot_dimension_numbers<[1], [0], [0], [1], [0, 0, 1, 1], [], []>} : vector<128x36xf32>, vector<36x8xf32>, vector<128x8xf32> -> vector<128x8xf32>
    %c0_100 = arith.constant 0 : index
    %c0_101 = arith.constant 0 : index
    %39 = vector.load %arg3[%c0_100, %c0_101] : memref<1x8xf32, #tpu.memory_space<vmem>>, vector<1x8xf32>
    %40 = vector.broadcast %39 : vector<1x8xf32> to vector<128x8xf32>
    %41 = arith.addf %38, %40 : vector<128x8xf32>
    %cst_102 = arith.constant 0.000000e+00 : f32
    %42 = vector.broadcast %cst_102 : f32 to vector<128x8xf32>
    %43 = arith.maximumf %41, %42 : vector<128x8xf32>
    %cst_103 = arith.constant 0.000000e+00 : f32
    %44 = vector.broadcast %cst_103 : f32 to vector<2x1x10x8xf32>
    %c0_104 = arith.constant 0 : index
    %c0_105 = arith.constant 0 : index
    %c0_106 = arith.constant 0 : index
    %c0_107 = arith.constant 0 : index
    %45 = vector.load %arg9[%c0_104, %c0_105, %c0_106, %c0_107] : memref<2x10x10x8xf32, #tpu.memory_space<vmem>>, vector<2x1x10x8xf32>
    tpu.vector_store %arg9[%c0_104, %c0_105, %c0_106, %c0_107], %44 {strides = array<i32>} : memref<2x10x10x8xf32, #tpu.memory_space<vmem>>, vector<2x1x10x8xf32>,
    %cst_108 = arith.constant 0.000000e+00 : f32
    %46 = vector.broadcast %cst_108 : f32 to vector<2x1x10x8xf32>
    %c0_109 = arith.constant 0 : index
    %c9_110 = arith.constant 9 : index
    %c0_111 = arith.constant 0 : index
    %c0_112 = arith.constant 0 : index
    %47 = vector.load %arg9[%c0_109, %c9_110, %c0_111, %c0_112] : memref<2x10x10x8xf32, #tpu.memory_space<vmem>>, vector<2x1x10x8xf32>
    tpu.vector_store %arg9[%c0_109, %c9_110, %c0_111, %c0_112], %46 {strides = array<i32>} : memref<2x10x10x8xf32, #tpu.memory_space<vmem>>, vector<2x1x10x8xf32>,
    %cst_113 = arith.constant 0.000000e+00 : f32
    %48 = vector.broadcast %cst_113 : f32 to vector<2x10x1x8xf32>
    %c0_114 = arith.constant 0 : index
    %c0_115 = arith.constant 0 : index
    %c0_116 = arith.constant 0 : index
    %c0_117 = arith.constant 0 : index
    %49 = vector.load %arg9[%c0_114, %c0_115, %c0_116, %c0_117] : memref<2x10x10x8xf32, #tpu.memory_space<vmem>>, vector<2x10x1x8xf32>
    tpu.vector_store %arg9[%c0_114, %c0_115, %c0_116, %c0_117], %48 {strides = array<i32>} : memref<2x10x10x8xf32, #tpu.memory_space<vmem>>, vector<2x10x1x8xf32>,
    %cst_118 = arith.constant 0.000000e+00 : f32
    %50 = vector.broadcast %cst_118 : f32 to vector<2x10x1x8xf32>
    %c0_119 = arith.constant 0 : index
    %c0_120 = arith.constant 0 : index
    %c9_121 = arith.constant 9 : index
    %c0_122 = arith.constant 0 : index
    %51 = vector.load %arg9[%c0_119, %c0_120, %c9_121, %c0_122] : memref<2x10x10x8xf32, #tpu.memory_space<vmem>>, vector<2x10x1x8xf32>
    tpu.vector_store %arg9[%c0_119, %c0_120, %c9_121, %c0_122], %50 {strides = array<i32>} : memref<2x10x10x8xf32, #tpu.memory_space<vmem>>, vector<2x10x1x8xf32>,
    %52 = vector.shape_cast %43 : vector<128x8xf32> to vector<2x8x8x8xf32>
    %c0_123 = arith.constant 0 : index
    %c1_124 = arith.constant 1 : index
    %c1_125 = arith.constant 1 : index
    %c0_126 = arith.constant 0 : index
    %53 = vector.load %arg9[%c0_123, %c1_124, %c1_125, %c0_126] : memref<2x10x10x8xf32, #tpu.memory_space<vmem>>, vector<2x8x8x8xf32>
    tpu.vector_store %arg9[%c0_123, %c1_124, %c1_125, %c0_126], %52 {strides = array<i32>} : memref<2x10x10x8xf32, #tpu.memory_space<vmem>>, vector<2x8x8x8xf32>,
    %c0_127 = arith.constant 0 : index
    %c0_128 = arith.constant 0 : index
    %c0_129 = arith.constant 0 : index
    %c0_130 = arith.constant 0 : index
    %54 = vector.load %arg9[%c0_127, %c0_128, %c0_129, %c0_130] : memref<2x10x10x8xf32, #tpu.memory_space<vmem>>, vector<2x8x8x8xf32>
    %c0_131 = arith.constant 0 : index
    %c0_132 = arith.constant 0 : index
    %c0_133 = arith.constant 0 : index
    %c0_134 = arith.constant 0 : index
    %55 = vector.load %arg10[%c0_131, %c0_132, %c0_133, %c0_134] : memref<2x8x8x72xf32, #tpu.memory_space<vmem>>, vector<2x8x8x8xf32>
    tpu.vector_store %arg10[%c0_131, %c0_132, %c0_133, %c0_134], %54 {strides = array<i32>} : memref<2x8x8x72xf32, #tpu.memory_space<vmem>>, vector<2x8x8x8xf32>,
    %c0_135 = arith.constant 0 : index
    %c0_136 = arith.constant 0 : index
    %c1_137 = arith.constant 1 : index
    %c0_138 = arith.constant 0 : index
    %56 = vector.load %arg9[%c0_135, %c0_136, %c1_137, %c0_138] : memref<2x10x10x8xf32, #tpu.memory_space<vmem>>, vector<2x8x8x8xf32>
    %c0_139 = arith.constant 0 : index
    %c0_140 = arith.constant 0 : index
    %c0_141 = arith.constant 0 : index
    %c8_142 = arith.constant 8 : index
    %57 = vector.load %arg10[%c0_139, %c0_140, %c0_141, %c8_142] : memref<2x8x8x72xf32, #tpu.memory_space<vmem>>, vector<2x8x8x8xf32>
    tpu.vector_store %arg10[%c0_139, %c0_140, %c0_141, %c8_142], %56 {strides = array<i32>} : memref<2x8x8x72xf32, #tpu.memory_space<vmem>>, vector<2x8x8x8xf32>,
    %c0_143 = arith.constant 0 : index
    %c0_144 = arith.constant 0 : index
    %c2_145 = arith.constant 2 : index
    %c0_146 = arith.constant 0 : index
    %58 = vector.load %arg9[%c0_143, %c0_144, %c2_145, %c0_146] : memref<2x10x10x8xf32, #tpu.memory_space<vmem>>, vector<2x8x8x8xf32>
    %c0_147 = arith.constant 0 : index
    %c0_148 = arith.constant 0 : index
    %c0_149 = arith.constant 0 : index
    %c16_150 = arith.constant 16 : index
    %59 = vector.load %arg10[%c0_147, %c0_148, %c0_149, %c16_150] : memref<2x8x8x72xf32, #tpu.memory_space<vmem>>, vector<2x8x8x8xf32>
    tpu.vector_store %arg10[%c0_147, %c0_148, %c0_149, %c16_150], %58 {strides = array<i32>} : memref<2x8x8x72xf32, #tpu.memory_space<vmem>>, vector<2x8x8x8xf32>,
    %c0_151 = arith.constant 0 : index
    %c1_152 = arith.constant 1 : index
    %c0_153 = arith.constant 0 : index
    %c0_154 = arith.constant 0 : index
    %60 = vector.load %arg9[%c0_151, %c1_152, %c0_153, %c0_154] : memref<2x10x10x8xf32, #tpu.memory_space<vmem>>, vector<2x8x8x8xf32>
    %c0_155 = arith.constant 0 : index
    %c0_156 = arith.constant 0 : index
    %c0_157 = arith.constant 0 : index
    %c24_158 = arith.constant 24 : index
    %61 = vector.load %arg10[%c0_155, %c0_156, %c0_157, %c24_158] : memref<2x8x8x72xf32, #tpu.memory_space<vmem>>, vector<2x8x8x8xf32>
    tpu.vector_store %arg10[%c0_155, %c0_156, %c0_157, %c24_158], %60 {strides = array<i32>} : memref<2x8x8x72xf32, #tpu.memory_space<vmem>>, vector<2x8x8x8xf32>,
    %c0_159 = arith.constant 0 : index
    %c1_160 = arith.constant 1 : index
    %c1_161 = arith.constant 1 : index
    %c0_162 = arith.constant 0 : index
    %62 = vector.load %arg9[%c0_159, %c1_160, %c1_161, %c0_162] : memref<2x10x10x8xf32, #tpu.memory_space<vmem>>, vector<2x8x8x8xf32>
    %c0_163 = arith.constant 0 : index
    %c0_164 = arith.constant 0 : index
    %c0_165 = arith.constant 0 : index
    %c32_166 = arith.constant 32 : index
    %63 = vector.load %arg10[%c0_163, %c0_164, %c0_165, %c32_166] : memref<2x8x8x72xf32, #tpu.memory_space<vmem>>, vector<2x8x8x8xf32>
    tpu.vector_store %arg10[%c0_163, %c0_164, %c0_165, %c32_166], %62 {strides = array<i32>} : memref<2x8x8x72xf32, #tpu.memory_space<vmem>>, vector<2x8x8x8xf32>,
    %c0_167 = arith.constant 0 : index
    %c1_168 = arith.constant 1 : index
    %c2_169 = arith.constant 2 : index
    %c0_170 = arith.constant 0 : index
    %64 = vector.load %arg9[%c0_167, %c1_168, %c2_169, %c0_170] : memref<2x10x10x8xf32, #tpu.memory_space<vmem>>, vector<2x8x8x8xf32>
    %c0_171 = arith.constant 0 : index
    %c0_172 = arith.constant 0 : index
    %c0_173 = arith.constant 0 : index
    %c40 = arith.constant 40 : index
    %65 = vector.load %arg10[%c0_171, %c0_172, %c0_173, %c40] : memref<2x8x8x72xf32, #tpu.memory_space<vmem>>, vector<2x8x8x8xf32>
    tpu.vector_store %arg10[%c0_171, %c0_172, %c0_173, %c40], %64 {strides = array<i32>} : memref<2x8x8x72xf32, #tpu.memory_space<vmem>>, vector<2x8x8x8xf32>,
    %c0_174 = arith.constant 0 : index
    %c2_175 = arith.constant 2 : index
    %c0_176 = arith.constant 0 : index
    %c0_177 = arith.constant 0 : index
    %66 = vector.load %arg9[%c0_174, %c2_175, %c0_176, %c0_177] : memref<2x10x10x8xf32, #tpu.memory_space<vmem>>, vector<2x8x8x8xf32>
    %c0_178 = arith.constant 0 : index
    %c0_179 = arith.constant 0 : index
    %c0_180 = arith.constant 0 : index
    %c48 = arith.constant 48 : index
    %67 = vector.load %arg10[%c0_178, %c0_179, %c0_180, %c48] : memref<2x8x8x72xf32, #tpu.memory_space<vmem>>, vector<2x8x8x8xf32>
    tpu.vector_store %arg10[%c0_178, %c0_179, %c0_180, %c48], %66 {strides = array<i32>} : memref<2x8x8x72xf32, #tpu.memory_space<vmem>>, vector<2x8x8x8xf32>,
    %c0_181 = arith.constant 0 : index
    %c2_182 = arith.constant 2 : index
    %c1_183 = arith.constant 1 : index
    %c0_184 = arith.constant 0 : index
    %68 = vector.load %arg9[%c0_181, %c2_182, %c1_183, %c0_184] : memref<2x10x10x8xf32, #tpu.memory_space<vmem>>, vector<2x8x8x8xf32>
    %c0_185 = arith.constant 0 : index
    %c0_186 = arith.constant 0 : index
    %c0_187 = arith.constant 0 : index
    %c56 = arith.constant 56 : index
    %69 = vector.load %arg10[%c0_185, %c0_186, %c0_187, %c56] : memref<2x8x8x72xf32, #tpu.memory_space<vmem>>, vector<2x8x8x8xf32>
    tpu.vector_store %arg10[%c0_185, %c0_186, %c0_187, %c56], %68 {strides = array<i32>} : memref<2x8x8x72xf32, #tpu.memory_space<vmem>>, vector<2x8x8x8xf32>,
    %c0_188 = arith.constant 0 : index
    %c2_189 = arith.constant 2 : index
    %c2_190 = arith.constant 2 : index
    %c0_191 = arith.constant 0 : index
    %70 = vector.load %arg9[%c0_188, %c2_189, %c2_190, %c0_191] : memref<2x10x10x8xf32, #tpu.memory_space<vmem>>, vector<2x8x8x8xf32>
    %c0_192 = arith.constant 0 : index
    %c0_193 = arith.constant 0 : index
    %c0_194 = arith.constant 0 : index
    %c64 = arith.constant 64 : index
    %71 = vector.load %arg10[%c0_192, %c0_193, %c0_194, %c64] : memref<2x8x8x72xf32, #tpu.memory_space<vmem>>, vector<2x8x8x8xf32>
    tpu.vector_store %arg10[%c0_192, %c0_193, %c0_194, %c64], %70 {strides = array<i32>} : memref<2x8x8x72xf32, #tpu.memory_space<vmem>>, vector<2x8x8x8xf32>,
    %c0_195 = arith.constant 0 : index
    %c0_196 = arith.constant 0 : index
    %c0_197 = arith.constant 0 : index
    %c0_198 = arith.constant 0 : index
    %72 = vector.load %arg10[%c0_195, %c0_196, %c0_197, %c0_198] : memref<2x8x8x72xf32, #tpu.memory_space<vmem>>, vector<2x8x8x72xf32>
    %73 = vector.shape_cast %72 : vector<2x8x8x72xf32> to vector<128x72xf32>
    %c0_199 = arith.constant 0 : index
    %c0_200 = arith.constant 0 : index
    %74 = vector.load %arg4[%c0_199, %c0_200] : memref<72x8xf32, #tpu.memory_space<vmem>>, vector<72x8xf32>
    %cst_201 = arith.constant dense<0.000000e+00> : vector<128x8xf32>
    %75 = tpu.matmul %73, %74, %cst_201 {dimension_numbers = #tpu.dot_dimension_numbers<[1], [0], [0], [1], [0, 0, 1, 1], [], []>} : vector<128x72xf32>, vector<72x8xf32>, vector<128x8xf32> -> vector<128x8xf32>
    %c0_202 = arith.constant 0 : index
    %c0_203 = arith.constant 0 : index
    %76 = vector.load %arg5[%c0_202, %c0_203] : memref<1x8xf32, #tpu.memory_space<vmem>>, vector<1x8xf32>
    %77 = vector.broadcast %76 : vector<1x8xf32> to vector<128x8xf32>
    %78 = arith.addf %75, %77 : vector<128x8xf32>
    %cst_204 = arith.constant 0.000000e+00 : f32
    %79 = vector.broadcast %cst_204 : f32 to vector<128x8xf32>
    %80 = arith.maximumf %78, %79 : vector<128x8xf32>
    %81 = vector.extract_strided_slice %80 {offsets = [0, 0], sizes = [64, 8], strides = [1, 1]} : vector<128x8xf32> to vector<64x8xf32>
    %82 = tpu.transpose %81, [1, 0] : vector<64x8xf32> -> vector<8x64xf32>
    %c0_205 = arith.constant 0 : index
    %c0_206 = arith.constant 0 : index
    %c0_207 = arith.constant 0 : index
    %83 = vector.load %arg6[%c0_205, %c0_206, %c0_207] : memref<2x8x64xf32, #tpu.memory_space<vmem>>, vector<1x8x64xf32>
    %84 = vector.shape_cast %83 : vector<1x8x64xf32> to vector<8x64xf32>
    %85 = vector.shape_cast %82 : vector<8x64xf32> to vector<1x8x64xf32>
    tpu.vector_store %arg6[%c0_205, %c0_206, %c0_207], %85 {strides = array<i32>} : memref<2x8x64xf32, #tpu.memory_space<vmem>>, vector<1x8x64xf32>,
    %86 = vector.extract_strided_slice %80 {offsets = [64, 0], sizes = [64, 8], strides = [1, 1]} : vector<128x8xf32> to vector<64x8xf32>
    %87 = tpu.transpose %86, [1, 0] : vector<64x8xf32> -> vector<8x64xf32>
    %c1_208 = arith.constant 1 : index
    %c0_209 = arith.constant 0 : index
    %c0_210 = arith.constant 0 : index
    %88 = vector.load %arg6[%c1_208, %c0_209, %c0_210] : memref<2x8x64xf32, #tpu.memory_space<vmem>>, vector<1x8x64xf32>
    %89 = vector.shape_cast %88 : vector<1x8x64xf32> to vector<8x64xf32>
    %90 = vector.shape_cast %87 : vector<8x64xf32> to vector<1x8x64xf32>
    tpu.vector_store %arg6[%c1_208, %c0_209, %c0_210], %90 {strides = array<i32>} : memref<2x8x64xf32, #tpu.memory_space<vmem>>, vector<1x8x64xf32>,
    return
  }
  func.func @transform_0(%arg0: i32) -> (i32, i32, i32, i32, i32) {
    %c0_i32 = arith.constant 0 : i32
    %c0_i32_0 = arith.constant 0 : i32
    %c0_i32_1 = arith.constant 0 : i32
    %c0_i32_2 = arith.constant 0 : i32
    %c0_i32_3 = arith.constant 0 : i32
    return %arg0, %c0_i32, %c0_i32_0, %c0_i32_1, %c0_i32_2 : i32, i32, i32, i32, i32
  }
  func.func @transform_1(%arg0: i32) -> (i32, i32) {
    %c0_i32 = arith.constant 0 : i32
    %c0_i32_0 = arith.constant 0 : i32
    %c0_i32_1 = arith.constant 0 : i32
    return %c0_i32, %c0_i32_0 : i32, i32
  }
  func.func @transform_2(%arg0: i32) -> (i32, i32) {
    %c0_i32 = arith.constant 0 : i32
    %c0_i32_0 = arith.constant 0 : i32
    %c0_i32_1 = arith.constant 0 : i32
    return %c0_i32, %c0_i32_0 : i32, i32
  }
  func.func @transform_3(%arg0: i32) -> (i32, i32) {
    %c0_i32 = arith.constant 0 : i32
    %c0_i32_0 = arith.constant 0 : i32
    %c0_i32_1 = arith.constant 0 : i32
    return %c0_i32, %c0_i32_0 : i32, i32
  }
  func.func @transform_4(%arg0: i32) -> (i32, i32) {
    %c0_i32 = arith.constant 0 : i32
    %c0_i32_0 = arith.constant 0 : i32
    %c0_i32_1 = arith.constant 0 : i32
    return %c0_i32, %c0_i32_0 : i32, i32
  }
  func.func @transform_5(%arg0: i32) -> (i32, i32, i32) {
    %c0_i32 = arith.constant 0 : i32
    %c0_i32_0 = arith.constant 0 : i32
    %c0_i32_1 = arith.constant 0 : i32
    return %arg0, %c0_i32, %c0_i32_0 : i32, i32, i32
  }
}

</mosaic_0001>

<bundles_post_ra>
// kernel: _lambda_.1
= control target key start
LH: loop header
LB: loop body
LE: loop exit
PB: predicated region body
PF: predicated region fallthrough
CT: control target
= control target key end

     0   :  { %s3003_s18 = smov 0   ;;  %s4152_s0 = inlined_call_operand.vmem [shape: f32[4,8,2,8,8], index: 0, kind: input, shape index: {}]   ;;  %s4153_s1 = inlined_call_operand.vmem [shape: f32[36,8], index: 1, kind: input, shape index: {}]   ;;  %s4154_s2 = inlined_call_operand.vmem [shape: f32[1,8], index: 2, kind: input, shape index: {}]   ;;  %s4155_s3 = inlined_call_operand.vmem [shape: f32[72,8], index: 3, kind: input, shape index: {}]   ;;  %s4156_s4 = inlined_call_operand.vmem [shape: f32[1,8], index: 4, kind: input, shape index: {}]   ;;  %s4157_s5 = inlined_call_operand.vmem [shape: f32[4,8,64], index: 5, kind: output, shape index: {}]  }
   0x1 LB: > { %s2724_s19 = sadd.s32 4294967295, %s2957_s18   ;;  %p2728_p0 = scmp.ge.s32.totalorder %s2957_s18, 1  ;;  %s2957_s18 = sphi %s3003_s18, %s15_s18  }
   0x2   : > { %p189_p1 = scmp.lt.s32.totalorder %s2957_s18, 3 }
   0x4   : > { %p190_p2 = pnand %p2728_p0, %p189_p1 }
   0x5   : > { %s3011_s20 = sshll.u32 (!%p190_p2), %s2724_s19, 1  ;;  %s2960_s25 = smov (!%p190_p2), 124  }
   0x6   : > { %193 = sbr.rel (%p190_p2) target bundleno = 1212 (0x4bc), region = 40  ;;  %p219_p3 = scmp.lt.s32.totalorder (!%p190_p2), %s3011_s20, 3 }
   0x7   : > { %s2961_s26 = smov (!%p190_p2), 4   ;;  %s2962_s27 = smov (!%p190_p2), 8  }
   0x8   : > { %s2963_s28 = smov (!%p190_p2), 12   ;;  %s2964_s29 = smov (!%p190_p2), 16  }
   0x9   : > { %s2965_s30 = smov (!%p190_p2), 20   ;;  %s2966_s6 = smov (!%p190_p2), 24  }
   0xa   : > { %s2967_s7 = smov (!%p190_p2), 28   ;;  %s2968_s16 = smov (!%p190_p2), 32  }
   0xb   : > { %vm360_vm0 = vcmask 31744   ;;  %vm362_vm1 = vcmask 25600   ;;  %vm371_vm2 = vcmask 24576   ;;  %v2959_v0 = vmov 0.0   ;;  %s4159_s20 = smov (!%p219_p3, %s3011_s20), 3  ;;  %s2970_s22 = smov 48  }
   0xc   : > { %361 = vst.msk [vmem:[#allocation2] sm:$0xff] %vm360_vm0, %v2959_v0  ;;  %364 = vst.msk [vmem:[#allocation2 + $0xa0] sm:$0xff] %vm360_vm0, %v2959_v0  ;;  %s2788_s21 = sshll.u32 %s4159_s20, 7  ;;  %vm541_vm3 = vcmask 64544   ;;  %vm638_vm4 = vcmask 97344   ;;  %vm1315_vm5 = vcmask 1043456  }
   0xd   : > { %363 = vst.msk [vmem:[#allocation2 + $0x8] sm:$0x3] %vm362_vm1, %v2959_v0  ;;  %365 = vst.msk [vmem:[#allocation2 + $0xa8] sm:$0x3] %vm362_vm1, %v2959_v0  ;;  %s3115_s24 = scalar_lea.vmem %s4152_s0, %s2788_s21  ;;  %vm735_vm6 = vcmask 130144   ;;  %vm832_vm7 = vcmask 162944  }
   0xe   : > { %367 = vst.msk [vmem:[#allocation2 + $0x90] sm:$0xff] %vm360_vm0, %v2959_v0  ;;  %369 = vst.msk [vmem:[#allocation2 + $0x130] sm:$0xff] %vm360_vm0, %v2959_v0  ;;  %v231_v1 = vld [vmem:[%s3115_s24] sm:$0xff]  ;;  %v2734_v2 = vld [vmem:[%s3115_s24 + $0x8] sm:$0xff]  ;;  %vm929_vm8 = vcmask 195744   ;;  %vm1027_vm9 = vcmask 228544  }
   0xf   : > { %368 = vst.msk [vmem:[#allocation2 + $0x98] sm:$0x3] %vm362_vm1, %v2959_v0  ;;  %370 = vst.msk [vmem:[#allocation2 + $0x138] sm:$0x3] %vm362_vm1, %v2959_v0  ;;  %v232_v3 = vld [vmem:[%s3115_s24 + $0x10] sm:$0xff]  ;;  %v3120_v4 = vmax.f32 %v231_v1, %v2734_v2  ;;  %v2735_v5 = vld [vmem:[%s3115_s24 + $0x18] sm:$0xff] }
  0x10   : > { %373 = vst.msk [vmem:[#allocation2 + $0x10] sm:$0x1] %vm371_vm2, %v2959_v0  ;;  %374 = vst.msk [vmem:[#allocation2 + $0x20] sm:$0x1] %vm371_vm2, %v2959_v0  ;;  %v233_v6 = vld [vmem:[%s3115_s24 + $0x20] sm:$0xff]  ;;  %v2736_v7 = vld [vmem:[%s3115_s24 + $0x28] sm:$0xff]  ;;  %v3131_v11 = vmax.f32 %v232_v3, %v2735_v5 }
  0x11   : > { %375 = vst.msk [vmem:[#allocation2 + $0x30] sm:$0x1] %vm371_vm2, %v2959_v0  ;;  %376 = vst.msk [vmem:[#allocation2 + $0x40] sm:$0x1] %vm371_vm2, %v2959_v0  ;;  %v3125_v8 = vmax.f32 %v233_v6, %v2736_v7  ;;  %v234_v9 = vld [vmem:[%s3115_s24 + $0x30] sm:$0xff]  ;;  %v2737_v10 = vld [vmem:[%s3115_s24 + $0x38] sm:$0xff]  ;;  %296 = vrot.lane.b32.xlu0 %v3120_v4, %s2960_s25 }
  0x12   : > { %377 = vst.msk [vmem:[#allocation2 + $0x50] sm:$0x1] %vm371_vm2, %v2959_v0  ;;  %378 = vst.msk [vmem:[#allocation2 + $0x60] sm:$0x1] %vm371_vm2, %v2959_v0  ;;  %v3135_v12 = vmax.f32 %v234_v9, %v2737_v10  ;;  %v235_v13 = vld [vmem:[%s3115_s24 + $0x40] sm:$0xff]  ;;  %v2738_v14 = vld [vmem:[%s3115_s24 + $0x48] sm:$0xff] }
  0x13   : > { %379 = vst.msk [vmem:[#allocation2 + $0x70] sm:$0x1] %vm371_vm2, %v2959_v0  ;;  %380 = vst.msk [vmem:[#allocation2 + $0x80] sm:$0x1] %vm371_vm2, %v2959_v0  ;;  %300 = vrot.lane.b32.xlu1 %v3125_v8, %s2960_s25  ;;  %v236_v15 = vld [vmem:[%s3115_s24 + $0x50] sm:$0xff]  ;;  %v2739_v16 = vld [vmem:[%s3115_s24 + $0x58] sm:$0xff]  ;;  %v3143_v17 = vmax.f32 %v235_v13, %v2738_v14 }
  0x14   : > { %383 = vst.msk [vmem:[#allocation2 + $0xb0] sm:$0x1] %vm371_vm2, %v2959_v0  ;;  %384 = vst.msk [vmem:[#allocation2 + $0xc0] sm:$0x1] %vm371_vm2, %v2959_v0  ;;  %v3147_v18 = vmax.f32 %v236_v15, %v2739_v16  ;;  %v237_v19 = vld [vmem:[%s3115_s24 + $0x60] sm:$0xff]  ;;  %v2740_v20 = vld [vmem:[%s3115_s24 + $0x68] sm:$0xff] }
  0x15   : > { %385 = vst.msk [vmem:[#allocation2 + $0xd0] sm:$0x1] %vm371_vm2, %v2959_v0  ;;  %386 = vst.msk [vmem:[#allocation2 + $0xe0] sm:$0x1] %vm371_vm2, %v2959_v0  ;;  %298 = vrot.lane.b32.xlu0 %v3131_v11, %s2960_s25  ;;  %v238_v21 = vld [vmem:[%s3115_s24 + $0x70] sm:$0xff]  ;;  %v2741_v22 = vld [vmem:[%s3115_s24 + $0x78] sm:$0xff]  ;;  %v3155_v23 = vmax.f32 %v237_v19, %v2740_v20 }
  0x16   : > { %387 = vst.msk [vmem:[#allocation2 + $0xf0] sm:$0x1] %vm371_vm2, %v2959_v0  ;;  %388 = vst.msk [vmem:[#allocation2 + $0x100] sm:$0x1] %vm371_vm2, %v2959_v0  ;;  %v3159_v24 = vmax.f32 %v238_v21, %v2741_v22  ;;  %v239_v25 = vld [vmem:[%s3115_s24 + $0x80] sm:$0xff]  ;;  %v2742_v26 = vld [vmem:[%s3115_s24 + $0x88] sm:$0xff] }
  0x17   : > { %389 = vst.msk [vmem:[#allocation2 + $0x110] sm:$0x1] %vm371_vm2, %v2959_v0  ;;  %390 = vst.msk [vmem:[#allocation2 + $0x120] sm:$0x1] %vm371_vm2, %v2959_v0  ;;  %302 = vrot.lane.b32.xlu1 %v3135_v12, %s2960_s25  ;;  %v240_v27 = vld [vmem:[%s3115_s24 + $0x90] sm:$0xff]  ;;  %v2743_v28 = vld [vmem:[%s3115_s24 + $0x98] sm:$0xff]  ;;  %v3167_v29 = vmax.f32 %v239_v25, %v2742_v26 }
  0x18   : > { %393 = vst.msk [vmem:[#allocation2 + $0x19] sm:$0x1] %vm371_vm2, %v2959_v0  ;;  %394 = vst.msk [vmem:[#allocation2 + $0x29] sm:$0x1] %vm371_vm2, %v2959_v0  ;;  %v241_v30 = vld [vmem:[%s3115_s24 + $0xa0] sm:$0xff]  ;;  %v2744_v31 = vld [vmem:[%s3115_s24 + $0xa8] sm:$0xff]  ;;  %v3173_v32 = vmax.f32 %v240_v27, %v2743_v28 }
  0x19   : > { %395 = vst.msk [vmem:[#allocation2 + $0x39] sm:$0x1] %vm371_vm2, %v2959_v0  ;;  %396 = vst.msk [vmem:[#allocation2 + $0x49] sm:$0x1] %vm371_vm2, %v2959_v0  ;;  %304 = vrot.lane.b32.xlu0 %v3143_v17, %s2960_s25  ;;  %v242_v33 = vld [vmem:[%s3115_s24 + $0xb0] sm:$0xff]  ;;  %v2745_v34 = vld [vmem:[%s3115_s24 + $0xb8] sm:$0xff]  ;;  %v3179_v35 = vmax.f32 %v241_v30, %v2744_v31 }
  0x1a   : > { %397 = vst.msk [vmem:[#allocation2 + $0x59] sm:$0x1] %vm371_vm2, %v2959_v0  ;;  %398 = vst.msk [vmem:[#allocation2 + $0x69] sm:$0x1] %vm371_vm2, %v2959_v0  ;;  %v243_v36 = vld [vmem:[%s3115_s24 + $0xc0] sm:$0xff]  ;;  %v2746_v37 = vld [vmem:[%s3115_s24 + $0xc8] sm:$0xff]  ;;  %v3185_v38 = vmax.f32 %v242_v33, %v2745_v34 }
  0x1b   : > { %399 = vst.msk [vmem:[#allocation2 + $0x79] sm:$0x1] %vm371_vm2, %v2959_v0  ;;  %400 = vst.msk [vmem:[#allocation2 + $0x89] sm:$0x1] %vm371_vm2, %v2959_v0  ;;  %306 = vrot.lane.b32.xlu1 %v3147_v18, %s2960_s25  ;;  %v244_v39 = vld [vmem:[%s3115_s24 + $0xd0] sm:$0xff]  ;;  %v2747_v40 = vld [vmem:[%s3115_s24 + $0xd8] sm:$0xff]  ;;  %v3191_v41 = vmax.f32 %v243_v36, %v2746_v37 }
  0x1c   : > { %403 = vst.msk [vmem:[#allocation2 + $0xb9] sm:$0x1] %vm371_vm2, %v2959_v0  ;;  %404 = vst.msk [vmem:[#allocation2 + $0xc9] sm:$0x1] %vm371_vm2, %v2959_v0  ;;  %v245_v42 = vld [vmem:[%s3115_s24 + $0xe0] sm:$0xff]  ;;  %v2748_v43 = vld [vmem:[%s3115_s24 + $0xe8] sm:$0xff]  ;;  %v3197_v44 = vmax.f32 %v244_v39, %v2747_v40 }
  0x1d   : > { %405 = vst.msk [vmem:[#allocation2 + $0xd9] sm:$0x1] %vm371_vm2, %v2959_v0  ;;  %406 = vst.msk [vmem:[#allocation2 + $0xe9] sm:$0x1] %vm371_vm2, %v2959_v0  ;;  %308 = vrot.lane.b32.xlu0 %v3155_v23, %s2960_s25  ;;  %v246_v45 = vld [vmem:[%s3115_s24 + $0xf0] sm:$0xff]  ;;  %v2749_v46 = vld [vmem:[%s3115_s24 + $0xf8] sm:$0xff]  ;;  %v3203_v47 = vmax.f32 %v245_v42, %v2748_v43 }
  0x1e   : > { %407 = vst.msk [vmem:[#allocation2 + $0xf9] sm:$0x1] %vm371_vm2, %v2959_v0  ;;  %408 = vst.msk [vmem:[#allocation2 + $0x109] sm:$0x1] %vm371_vm2, %v2959_v0  ;;  %v3207_v48 = vmax.f32 %v246_v45, %v2749_v46  ;;  %v461_v49 = vld [vmem:[#allocation2 + $0x1] sm:$0xff]  ;;  %v1257_v45 = vld [vmem:[%s4153_s1 + $0x18] sm:$0xff] }
  0x1f   : > { %409 = vst.msk [vmem:[#allocation2 + $0x119] sm:$0x1] %vm371_vm2, %v2959_v0  ;;  %410 = vst.msk [vmem:[#allocation2 + $0x129] sm:$0x1] %vm371_vm2, %v2959_v0  ;;  %310 = vrot.lane.b32.xlu1 %v3159_v24, %s2960_s25  ;;  %v1258_v43 = vld [vmem:[%s4153_s1 + $0x20] sm:$0xf] }
  0x20   : > { %392 = vst.msk [vmem:[#allocation2 + $0x9] sm:$0x1] %vm371_vm2, %v2959_v0  ;;  %372 = vst.msk [vmem:[#allocation2] sm:$0x1] %vm371_vm2, %v2959_v0  ;;  %2835 = vmatprep.subr.msk.mxu0 %vm1315_vm5, %v1258_v43  ;;  %v1256_v46 = vld [vmem:[%s4153_s1 + $0x10] sm:$0xff]  ;;  %vm1124_vm10 = vcmask 261344  }
  0x21   : > { %381 = vst.msk [vmem:[#allocation2 + $0x90] sm:$0x1] %vm371_vm2, %v2959_v0  ;;  %382 = vst.msk [vmem:[#allocation2 + $0xa0] sm:$0x1] %vm371_vm2, %v2959_v0  ;;  %312 = vrot.lane.b32.xlu0 %v3167_v29, %s2960_s25  ;;  %2836 = vmatpush3.msk.msra.mxu0 %vm1315_vm5, %v1258_v43  ;;  %vm1221_vm11 = vcmask 294144   ;;  %vm1266_vm12 = vcmask 293888  }
  0x22   : > { %391 = vst.msk [vmem:[#allocation2 + $0x130] sm:$0x1] %vm371_vm2, %v2959_v0  ;;  %401 = vst.msk [vmem:[#allocation2 + $0x99] sm:$0x1] %vm371_vm2, %v2959_v0  ;;  %2837 = vmatprep.subr.mxu0 %v1257_v45  ;;  %vm1482_vm13 = vcmask 58368   ;;  %vm1480_vm14 = vcmask 64512  }
  0x23   : > { %402 = vst.msk [vmem:[#allocation2 + $0xa9] sm:$0x1] %vm371_vm2, %v2959_v0  ;;  %411 = vst.msk [vmem:[#allocation2 + $0x139] sm:$0x1] %vm371_vm2, %v2959_v0  ;;  %314 = vrot.lane.b32.xlu1 %v3173_v32, %s2960_s25  ;;  %2838 = vmatpush3.msra.mxu0 %v1257_v45  ;;  %vm1491_vm15 = vcmask 57344   ;;  %s2969_s21 = smov 64  }
  0x24   : > { %2839 = vmatprep.subr.mxu0 %v1256_v46  ;;  %1483 = vst.msk [vmem:[#allocation4 + $0x8] sm:$0x3] %vm1482_vm13, %v2959_v0  ;;  %1485 = vst.msk [vmem:[#allocation4 + $0xa8] sm:$0x3] %vm1482_vm13, %v2959_v0  ;;  %s2971_s23 = smov 56   ;;  %vm1758_vm1 = vcmask 195712  }
  0x25   : > { %316 = vrot.lane.b32.xlu0 %v3179_v35, %s2960_s25  ;;  %2840 = vmatpush3.msra.mxu0 %v1256_v46  ;;  %1488 = vst.msk [vmem:[#allocation4 + $0x98] sm:$0x3] %vm1482_vm13, %v2959_v0  ;;  %1490 = vst.msk [vmem:[#allocation4 + $0x138] sm:$0x3] %vm1482_vm13, %v2959_v0  ;;  %vm1855_vm2 = vcmask 261312   ;;  %vm2147_vm5 = vcmask 458112  }
  0x26   : > { %1481 = vst.msk [vmem:[#allocation4] sm:$0xff] %vm1480_vm14, %v2959_v0  ;;  %1484 = vst.msk [vmem:[#allocation4 + $0xa0] sm:$0xff] %vm1480_vm14, %v2959_v0 }
  0x27   : > { %318 = vrot.lane.b32.xlu1 %v3185_v38, %s2960_s25  ;;  %v558_v50 = vld [vmem:[#allocation2 + $0x2] sm:$0xff]  ;;  %1512 = vst.msk [vmem:[#allocation4 + $0x9] sm:$0x1] %vm1491_vm15, %v2959_v0  ;;  %1493 = vst.msk [vmem:[#allocation4 + $0x10] sm:$0x1] %vm1491_vm15, %v2959_v0 }
  0x28   : > { %v429_v51 = vld [vmem:[#allocation2] sm:$0xff]  ;;  %1487 = vst.msk [vmem:[#allocation4 + $0x90] sm:$0xff] %vm1480_vm14, %v2959_v0  ;;  %1489 = vst.msk [vmem:[#allocation4 + $0x130] sm:$0xff] %vm1480_vm14, %v2959_v0 }
  0x29   : > { %320 = vrot.lane.b32.xlu0 %v3191_v41, %s2960_s25  ;;  %445 = vst.msk [vmem:[#allocation3] sm:$0xff] %vm360_vm0, %v429_v51 }
  0x2a   : > { %1494 = vst.msk [vmem:[#allocation4 + $0x20] sm:$0x1] %vm1491_vm15, %v2959_v0  ;;  %1495 = vst.msk [vmem:[#allocation4 + $0x30] sm:$0x1] %vm1491_vm15, %v2959_v0 }
  0x2b   : > { %322 = vrot.lane.b32.xlu1 %v3197_v44, %s2960_s25  ;;  %1496 = vst.msk [vmem:[#allocation4 + $0x40] sm:$0x1] %vm1491_vm15, %v2959_v0  ;;  %1497 = vst.msk [vmem:[#allocation4 + $0x50] sm:$0x1] %vm1491_vm15, %v2959_v0 }
  0x2c   : > { %1498 = vst.msk [vmem:[#allocation4 + $0x60] sm:$0x1] %vm1491_vm15, %v2959_v0  ;;  %1499 = vst.msk [vmem:[#allocation4 + $0x70] sm:$0x1] %vm1491_vm15, %v2959_v0 }
  0x2d   : > { %324 = vrot.lane.b32.xlu0 %v3203_v47, %s2960_s25  ;;  %1500 = vst.msk [vmem:[#allocation4 + $0x80] sm:$0x1] %vm1491_vm15, %v2959_v0  ;;  %1503 = vst.msk [vmem:[#allocation4 + $0xb0] sm:$0x1] %vm1491_vm15, %v2959_v0 }
  0x2e   : > { %1504 = vst.msk [vmem:[#allocation4 + $0xc0] sm:$0x1] %vm1491_vm15, %v2959_v0  ;;  %1505 = vst.msk [vmem:[#allocation4 + $0xd0] sm:$0x1] %vm1491_vm15, %v2959_v0 }
  0x2f   : > { %326 = vrot.lane.b32.xlu1 %v3207_v48, %s2960_s25  ;;  %1506 = vst.msk [vmem:[#allocation4 + $0xe0] sm:$0x1] %vm1491_vm15, %v2959_v0  ;;  %1507 = vst.msk [vmem:[#allocation4 + $0xf0] sm:$0x1] %vm1491_vm15, %v2959_v0 }
  0x30   : > { %1508 = vst.msk [vmem:[#allocation4 + $0x100] sm:$0x1] %vm1491_vm15, %v2959_v0  ;;  %1509 = vst.msk [vmem:[#allocation4 + $0x110] sm:$0x1] %vm1491_vm15, %v2959_v0 }
  0x31   : > { %493 = vrot.lane.b32.xlu0 %v461_v49, %s2961_s26  ;;  %1510 = vst.msk [vmem:[#allocation4 + $0x120] sm:$0x1] %vm1491_vm15, %v2959_v0  ;;  %1513 = vst.msk [vmem:[#allocation4 + $0x19] sm:$0x1] %vm1491_vm15, %v2959_v0 }
  0x32   : > { %1514 = vst.msk [vmem:[#allocation4 + $0x29] sm:$0x1] %vm1491_vm15, %v2959_v0  ;;  %1515 = vst.msk [vmem:[#allocation4 + $0x39] sm:$0x1] %vm1491_vm15, %v2959_v0 }
  0x33   : > { %1516 = vst.msk [vmem:[#allocation4 + $0x49] sm:$0x1] %vm1491_vm15, %v2959_v0  ;;  %1517 = vst.msk [vmem:[#allocation4 + $0x59] sm:$0x1] %vm1491_vm15, %v2959_v0 }
  0x34   : > { %1518 = vst.msk [vmem:[#allocation4 + $0x69] sm:$0x1] %vm1491_vm15, %v2959_v0  ;;  %1519 = vst.msk [vmem:[#allocation4 + $0x79] sm:$0x1] %vm1491_vm15, %v2959_v0 }
  0x35   : > { %590 = vrot.lane.b32.xlu0 %v558_v50, %s2962_s27  ;;  %1520 = vst.msk [vmem:[#allocation4 + $0x89] sm:$0x1] %vm1491_vm15, %v2959_v0  ;;  %1523 = vst.msk [vmem:[#allocation4 + $0xb9] sm:$0x1] %vm1491_vm15, %v2959_v0 }
  0x36   : > { %1524 = vst.msk [vmem:[#allocation4 + $0xc9] sm:$0x1] %vm1491_vm15, %v2959_v0  ;;  %1525 = vst.msk [vmem:[#allocation4 + $0xd9] sm:$0x1] %vm1491_vm15, %v2959_v0 }
  0x37   : > { %1526 = vst.msk [vmem:[#allocation4 + $0xe9] sm:$0x1] %vm1491_vm15, %v2959_v0  ;;  %1527 = vst.msk [vmem:[#allocation4 + $0xf9] sm:$0x1] %vm1491_vm15, %v2959_v0 }
  0x38   : > { %1528 = vst.msk [vmem:[#allocation4 + $0x109] sm:$0x1] %vm1491_vm15, %v2959_v0  ;;  %1529 = vst.msk [vmem:[#allocation4 + $0x119] sm:$0x1] %vm1491_vm15, %v2959_v0 }
  0x39   : > { %1530 = vst.msk [vmem:[#allocation4 + $0x129] sm:$0x1] %vm1491_vm15, %v2959_v0  ;;  %1521 = vst.msk [vmem:[#allocation4 + $0x99] sm:$0x1] %vm1491_vm15, %v2959_v0 }
  0x3a   : > { %1522 = vst.msk [vmem:[#allocation4 + $0xa9] sm:$0x1] %vm1491_vm15, %v2959_v0  ;;  %1531 = vst.msk [vmem:[#allocation4 + $0x139] sm:$0x1] %vm1491_vm15, %v2959_v0 }
  0x3b   : > { %1492 = vst.msk [vmem:[#allocation4] sm:$0x1] %vm1491_vm15, %v2959_v0  ;;  %1501 = vst.msk [vmem:[#allocation4 + $0x90] sm:$0x1] %vm1491_vm15, %v2959_v0 }
  0x3c   : > { %1502 = vst.msk [vmem:[#allocation4 + $0xa0] sm:$0x1] %vm1491_vm15, %v2959_v0  ;;  %1511 = vst.msk [vmem:[#allocation4 + $0x130] sm:$0x1] %vm1491_vm15, %v2959_v0 }
  0x83   : > { %v297_v52 = vpop.permute.xlu0 %296 }
  0x84   : > { %v344_v53 = vmax.f32 %v3120_v4, %v297_v52 }
  0x85   : > { %v301_v54 = vpop.permute.xlu1 %300 }
  0x86   : > { %v346_v55 = vmax.f32 %v3125_v8, %v301_v54  ;;  %413 = vst.msk [vmem:[#allocation2 + $0x11] sm:$0xff] %vm360_vm0, %v344_v53 }
  0x87   : > { %v299_v56 = vpop.permute.xlu0 %298 }
  0x88   : > { %415 = vst.msk [vmem:[#allocation2 + $0x31] sm:$0xff] %vm360_vm0, %v346_v55  ;;  %v345_v57 = vmax.f32 %v3131_v11, %v299_v56  ;;  %v437_v56 = vld [vmem:[#allocation2 + $0xa0] sm:$0xff] }
  0x89   : > { %v303_v58 = vpop.permute.xlu1 %302  ;;  %453 = vst.msk [vmem:[#allocation3 + $0x40] sm:$0xff] %vm360_vm0, %v437_v56 }
  0x8a   : > { %v347_v59 = vmax.f32 %v3135_v12, %v303_v58  ;;  %414 = vst.msk [vmem:[#allocation2 + $0x21] sm:$0xff] %vm360_vm0, %v345_v57  ;;  %v469_v58 = vld [vmem:[#allocation2 + $0xa1] sm:$0xff] }
  0x8b   : > { %v305_v60 = vpop.permute.xlu0 %304 }
  0x8c   : > { %416 = vst.msk [vmem:[#allocation2 + $0x41] sm:$0xff] %vm360_vm0, %v347_v59  ;;  %v348_v61 = vmax.f32 %v3143_v17, %v305_v60 }
  0x8d   : > { %v307_v62 = vpop.permute.xlu1 %306  ;;  %v655_v63 = vld [vmem:[#allocation2 + $0x10] sm:$0xff] }
  0x8e   : > { %v462_v1 = vld [vmem:[#allocation2 + $0x11] sm:$0xff]  ;;  %v349_v2 = vmax.f32 %v3147_v18, %v307_v62  ;;  %687 = vrot.lane.b32.xlu0 %v655_v63, %s2963_s28  ;;  %417 = vst.msk [vmem:[#allocation2 + $0x51] sm:$0xff] %vm360_vm0, %v348_v61  ;;  %446 = vst.msk [vmem:[#allocation3 + $0x8] sm:$0xff] %vm360_vm0, %v655_v63  ;;  %v566_v62 = vld [vmem:[#allocation2 + $0xa2] sm:$0xff] }
  0x8f   : > { %495 = vrot.lane.b32.xlu1 %v462_v1, %s2961_s26  ;;  %v3228_v3 = vld [vmem:[#allocation2 + $0x30] sm:$0xff]  ;;  %v309_v4 = vpop.permute.xlu0 %308 }
  0x90   : > { %418 = vst.msk [vmem:[#allocation2 + $0x61] sm:$0xff] %vm360_vm0, %v349_v2  ;;  %448 = vst.msk [vmem:[#allocation3 + $0x18] sm:$0xff] %vm360_vm0, %v3228_v3  ;;  %v350_v5 = vmax.f32 %v3155_v23, %v309_v4  ;;  %v559_v7 = vld [vmem:[#allocation2 + $0x12] sm:$0xff] }
  0x91   : > { %v311_v6 = vpop.permute.xlu1 %310  ;;  %v3236_v8 = vld [vmem:[#allocation2 + $0x20] sm:$0xff]  ;;  %v3264_v18 = vld [vmem:[#allocation2 + $0x31] sm:$0xff] }
  0x92   : > { %v351_v9 = vmax.f32 %v3159_v24, %v311_v6  ;;  %784 = vrot.lane.b32.xlu0 %v462_v1, %s2964_s29  ;;  %419 = vst.msk [vmem:[#allocation2 + $0x71] sm:$0xff] %vm360_vm0, %v350_v5  ;;  %447 = vst.msk [vmem:[#allocation3 + $0x10] sm:$0xff] %vm360_vm0, %v3236_v8  ;;  %v3246_v11 = vld [vmem:[#allocation2 + $0x21] sm:$0xff]  ;;  %v561_v31 = vld [vmem:[#allocation2 + $0x32] sm:$0xff] }
  0x93   : > { %592 = vrot.lane.b32.xlu1 %v559_v7, %s2962_s27  ;;  %v3241_v10 = vld [vmem:[#allocation2 + $0x40] sm:$0xff]  ;;  %v313_v12 = vpop.permute.xlu0 %312 }
  0x94   : > { %420 = vst.msk [vmem:[#allocation2 + $0x81] sm:$0xff] %vm360_vm0, %v351_v9  ;;  %449 = vst.msk [vmem:[#allocation3 + $0x20] sm:$0xff] %vm360_vm0, %v3241_v10  ;;  %v352_v13 = vmax.f32 %v3167_v29, %v313_v12  ;;  %v850_v27 = vld [vmem:[#allocation2 + $0x22] sm:$0xff] }
  0x95   : > { %v315_v14 = vpop.permute.xlu1 %314  ;;  %v3252_v15 = vld [vmem:[#allocation2 + $0x50] sm:$0xff]  ;;  %v852_v50 = vld [vmem:[#allocation2 + $0x42] sm:$0xff] }
  0x96   : > { %v353_v16 = vmax.f32 %v3173_v32, %v315_v14  ;;  %786 = vrot.lane.b32.xlu0 %v3246_v11, %s2964_s29  ;;  %421 = vst.msk [vmem:[#allocation2 + $0xb1] sm:$0xff] %vm360_vm0, %v352_v13  ;;  %450 = vst.msk [vmem:[#allocation3 + $0x28] sm:$0xff] %vm360_vm0, %v3252_v15  ;;  %v466_v49 = vld [vmem:[#allocation2 + $0x51] sm:$0xff] }
  0x97   : > { %689 = vrot.lane.b32.xlu1 %v3236_v8, %s2963_s28  ;;  %v3259_v17 = vld [vmem:[#allocation2 + $0x60] sm:$0xff]  ;;  %v317_v19 = vpop.permute.xlu0 %316  ;;  %v563_v51 = vld [vmem:[#allocation2 + $0x52] sm:$0xff] }
  0x98   : > { %422 = vst.msk [vmem:[#allocation2 + $0xc1] sm:$0xff] %vm360_vm0, %v353_v16  ;;  %451 = vst.msk [vmem:[#allocation3 + $0x30] sm:$0xff] %vm360_vm0, %v3259_v17  ;;  %v354_v20 = vmax.f32 %v3179_v35, %v317_v19  ;;  %v467_v52 = vld [vmem:[#allocation2 + $0x61] sm:$0xff]  ;;  %v1148_v19 = vld [vmem:[#allocation2 + $0x92] sm:$0xff] }
  0x99   : > { %v319_v21 = vpop.permute.xlu1 %318  ;;  %v3270_v22 = vld [vmem:[#allocation2 + $0x70] sm:$0xff]  ;;  %v854_v54 = vld [vmem:[#allocation2 + $0x62] sm:$0xff] }
  0x9a   : > { %v355_v23 = vmax.f32 %v3185_v38, %v319_v21  ;;  %499 = vrot.lane.b32.xlu0 %v3264_v18, %s2961_s26  ;;  %423 = vst.msk [vmem:[#allocation2 + $0xd1] sm:$0xff] %vm360_vm0, %v354_v20  ;;  %452 = vst.msk [vmem:[#allocation3 + $0x38] sm:$0xff] %vm360_vm0, %v3270_v22  ;;  %v468_v53 = vld [vmem:[#allocation2 + $0x71] sm:$0xff] }
  0x9b   : > { %497 = vrot.lane.b32.xlu1 %v3246_v11, %s2961_s26  ;;  %v321_v24 = vpop.permute.xlu0 %320  ;;  %v565_v55 = vld [vmem:[#allocation2 + $0x72] sm:$0xff]  ;;  %v662_v57 = vld [vmem:[#allocation2 + $0x80] sm:$0xff] }
  0x9c   : > { %424 = vst.msk [vmem:[#allocation2 + $0xe1] sm:$0xff] %vm360_vm0, %v355_v23  ;;  %v356_v25 = vmax.f32 %v3191_v41, %v321_v24  ;;  %v759_v60 = vld [vmem:[#allocation2 + $0x81] sm:$0xff] }
  0x9d   : > { %v323_v26 = vpop.permute.xlu1 %322  ;;  %v3283_v29 = vld [vmem:[#allocation2 + $0xb0] sm:$0xff]  ;;  %v856_v61 = vld [vmem:[#allocation2 + $0x82] sm:$0xff] }
  0x9e   : > { %v357_v28 = vmax.f32 %v3197_v44, %v323_v26  ;;  %883 = vrot.lane.b32.xlu0 %v850_v27, %s2965_s30  ;;  %425 = vst.msk [vmem:[#allocation2 + $0xf1] sm:$0xff] %vm360_vm0, %v356_v25  ;;  %454 = vst.msk [vmem:[#allocation3 + $0x48] sm:$0xff] %vm360_vm0, %v3283_v29  ;;  %v465_v44 = vld [vmem:[#allocation2 + $0x41] sm:$0xff]  ;;  %v470_v59 = vld [vmem:[#allocation2 + $0xb1] sm:$0xff] }
  0x9f   : > { %881 = vrot.lane.b32.xlu1 %v559_v7, %s2965_s30  ;;  %v3288_v30 = vld [vmem:[#allocation2 + $0xc0] sm:$0xff]  ;;  %v325_v32 = vpop.permute.xlu0 %324  ;;  %v567_v63 = vld [vmem:[#allocation2 + $0xb2] sm:$0xff] }
  0xa0   : > { %426 = vst.msk [vmem:[#allocation2 + $0x101] sm:$0xff] %vm360_vm0, %v357_v28  ;;  %455 = vst.msk [vmem:[#allocation3 + $0x50] sm:$0xff] %vm360_vm0, %v3288_v30  ;;  %v358_v33 = vmax.f32 %v3203_v47, %v325_v32  ;;  %v1255_v47 = vld [vmem:[%s4153_s1 + $0x8] sm:$0xff] }
  0xa1   : > { %v327_v34 = vpop.permute.xlu1 %326  ;;  %v3297_v36 = vld [vmem:[#allocation2 + $0xd0] sm:$0xff]  ;;  %2841 = vmatprep.subr.mxu0 %v1255_v47  ;;  %v471_v13 = vld [vmem:[#allocation2 + $0xc1] sm:$0xff] }
  0xa2   : > { %v359_v35 = vmax.f32 %v3207_v48, %v327_v34  ;;  %596 = vrot.lane.b32.xlu0 %v561_v31, %s2962_s27  ;;  %427 = vst.msk [vmem:[#allocation2 + $0x111] sm:$0xff] %vm360_vm0, %v358_v33  ;;  %456 = vst.msk [vmem:[#allocation3 + $0x58] sm:$0xff] %vm360_vm0, %v3297_v36  ;;  %v1254_v48 = vld [vmem:[%s4153_s1] sm:$0xff]  ;;  %2842 = vmatpush3.msra.mxu0 %v1255_v47  ;;  %v569_v25 = vld [vmem:[#allocation2 + $0xd2] sm:$0xff] }
  0xa3   : > { %594 = vrot.lane.b32.xlu1 %v850_v27, %s2962_s27  ;;  %v3302_v37 = vld [vmem:[#allocation2 + $0xe0] sm:$0xff]  ;;  %v494_v38 = vpop.permute.xlu0 %493  ;;  %2843 = vmatprep.subr.mxu0 %v1254_v48 }
  0xa4   : > { %428 = vst.msk [vmem:[#allocation2 + $0x121] sm:$0xff] %vm360_vm0, %v359_v35  ;;  %457 = vst.msk [vmem:[#allocation3 + $0x60] sm:$0xff] %vm360_vm0, %v3302_v37  ;;  %2844 = vmatpush3.msra.mxu0 %v1254_v48  ;;  %v473_v35 = vld [vmem:[#allocation2 + $0xe1] sm:$0xff] }
  0xa5   : > { %542 = vst.msk [vmem:[#allocation3] sm:$0xff] %vm541_vm3, %v494_v38  ;;  %v3310_v39 = vld [vmem:[#allocation2 + $0xf0] sm:$0xff]  ;;  %v860_v48 = vld [vmem:[#allocation2 + $0xe2] sm:$0xff] }
  0xa6   : > { %981 = vrot.lane.b32.xlu0 %v3228_v3, %s2966_s6  ;;  %458 = vst.msk [vmem:[#allocation3 + $0x68] sm:$0xff] %vm360_vm0, %v3310_v39  ;;  %v474_v45 = vld [vmem:[#allocation2 + $0xf1] sm:$0xff] }
  0xa7   : > { %979 = vrot.lane.b32.xlu1 %v3236_v8, %s2966_s6  ;;  %v3316_v40 = vld [vmem:[#allocation2 + $0x100] sm:$0xff]  ;;  %v591_v41 = vpop.permute.xlu0 %590  ;;  %v1051_v8 = vld [vmem:[#allocation2 + $0x91] sm:$0xff] }
  0xa8   : > { %459 = vst.msk [vmem:[#allocation3 + $0x70] sm:$0xff] %vm360_vm0, %v3316_v40 }
  0xa9   : > { %639 = vst.msk [vmem:[#allocation3] sm:$0xff] %vm638_vm4, %v591_v41  ;;  %v3323_v42 = vld [vmem:[#allocation2 + $0x110] sm:$0xff] }
  0xaa   : > { %693 = vrot.lane.b32.xlu0 %v3241_v10, %s2963_s28  ;;  %460 = vst.msk [vmem:[#allocation3 + $0x78] sm:$0xff] %vm360_vm0, %v3323_v42  ;;  %vm1661_vm0 = vcmask 130112  }
  0xab   : > { %691 = vrot.lane.b32.xlu1 %v3228_v3, %s2963_s28  ;;  %v954_v3 = vld [vmem:[#allocation2 + $0x90] sm:$0xff] }
  0xae   : > { %1078 = vrot.lane.b32.xlu0 %v3264_v18, %s2967_s7 }
  0xaf   : > { %1076 = vrot.lane.b32.xlu1 %v3246_v11, %s2967_s7 }
  0xb2   : > { %501 = vrot.lane.b32.xlu0 %v465_v44, %s2961_s26 }
  0xb3   : > { %788 = vrot.lane.b32.xlu1 %v3264_v18, %s2964_s29  ;;  %v472_v18 = vld [vmem:[#allocation2 + $0xd1] sm:$0xff] }
  0xb6   : > { %885 = vrot.lane.b32.xlu0 %v561_v31, %s2965_s30 }
  0xb7   : > { %1173 = vrot.lane.b32.xlu1 %v850_v27, %s2968_s16 }
  0xba   : > { %503 = vrot.lane.b32.xlu0 %v466_v49, %s2961_s26 }
  0xbb   : > { %790 = vrot.lane.b32.xlu1 %v465_v44, %s2964_s29 }
  0xbe   : > { %887 = vrot.lane.b32.xlu0 %v852_v50, %s2965_s30 }
  0xbf   : > { %1175 = vrot.lane.b32.xlu1 %v561_v31, %s2968_s16 }
  0xc2   : > { %600 = vrot.lane.b32.xlu0 %v563_v51, %s2962_s27 }
  0xc3   : > { %598 = vrot.lane.b32.xlu1 %v852_v50, %s2962_s27 }
  0xc6   : > { %985 = vrot.lane.b32.xlu0 %v3252_v15, %s2966_s6 }
  0xc7   : > { %983 = vrot.lane.b32.xlu1 %v3241_v10, %s2966_s6 }
  0xca   : > { %697 = vrot.lane.b32.xlu0 %v3259_v17, %s2963_s28 }
  0xcb   : > { %695 = vrot.lane.b32.xlu1 %v3252_v15, %s2963_s28 }
  0xce   : > { %1082 = vrot.lane.b32.xlu0 %v466_v49, %s2967_s7 }
  0xcf   : > { %1080 = vrot.lane.b32.xlu1 %v465_v44, %s2967_s7 }
  0xd2   : > { %505 = vrot.lane.b32.xlu0 %v467_v52, %s2961_s26 }
  0xd3   : > { %792 = vrot.lane.b32.xlu1 %v466_v49, %s2964_s29 }
  0xd6   : > { %889 = vrot.lane.b32.xlu0 %v563_v51, %s2965_s30 }
  0xd7   : > { %1177 = vrot.lane.b32.xlu1 %v852_v50, %s2968_s16 }
  0xda   : > { %507 = vrot.lane.b32.xlu0 %v468_v53, %s2961_s26 }
  0xdb   : > { %794 = vrot.lane.b32.xlu1 %v467_v52, %s2964_s29 }
  0xde   : > { %891 = vrot.lane.b32.xlu0 %v854_v54, %s2965_s30 }
  0xdf   : > { %1179 = vrot.lane.b32.xlu1 %v563_v51, %s2968_s16  ;;  %v571_v51 = vld [vmem:[#allocation2 + $0xf2] sm:$0xff] }
  0xe2   : > { %604 = vrot.lane.b32.xlu0 %v565_v55, %s2962_s27 }
  0xe3   : > { %602 = vrot.lane.b32.xlu1 %v854_v54, %s2962_s27 }
  0xe6   : > { %989 = vrot.lane.b32.xlu0 %v3270_v22, %s2966_s6 }
  0xe7   : > { %987 = vrot.lane.b32.xlu1 %v3259_v17, %s2966_s6 }
  0xea   : > { %701 = vrot.lane.b32.xlu0 %v662_v57, %s2963_s28 }
  0xeb   : > { %699 = vrot.lane.b32.xlu1 %v3270_v22, %s2963_s28  ;;  %v858_v22 = vld [vmem:[#allocation2 + $0xc2] sm:$0xff] }
  0xee   : > { %1086 = vrot.lane.b32.xlu0 %v468_v53, %s2967_s7 }
  0xef   : > { %1084 = vrot.lane.b32.xlu1 %v467_v52, %s2967_s7 }
  0xf2   : > { %509 = vrot.lane.b32.xlu0 %v469_v58, %s2961_s26 }
  0xf3   : > { %796 = vrot.lane.b32.xlu1 %v468_v53, %s2964_s29 }
  0xf6   : > { %893 = vrot.lane.b32.xlu0 %v565_v55, %s2965_s30 }
  0xf7   : > { %1181 = vrot.lane.b32.xlu1 %v854_v54, %s2968_s16 }
  0xfa   : > { %511 = vrot.lane.b32.xlu0 %v470_v59, %s2961_s26 }
  0xfb   : > { %798 = vrot.lane.b32.xlu1 %v759_v60, %s2964_s29 }
  0xfe   : > { %895 = vrot.lane.b32.xlu0 %v856_v61, %s2965_s30 }
  0xff   : > { %1183 = vrot.lane.b32.xlu1 %v565_v55, %s2968_s16 }
 0x100   : > { %v688_v2 = vpop.permute.xlu0 %687 }
 0x101   : > { %v496_v1 = vpop.permute.xlu1 %495  ;;  %736 = vst.msk [vmem:[#allocation3] sm:$0xff] %vm735_vm6, %v688_v2  ;;  %v3503_v2 = vld [vmem:[#allocation2 + $0x111] sm:$0xff] }
 0x102   : > { %543 = vst.msk [vmem:[#allocation3 + $0x8] sm:$0xff] %vm541_vm3, %v496_v1  ;;  %608 = vrot.lane.b32.xlu0 %v567_v63, %s2962_s27 }
 0x103   : > { %606 = vrot.lane.b32.xlu1 %v566_v62, %s2962_s27 }
 0x104   : > { %v785_v5 = vpop.permute.xlu0 %784 }
 0x105   : > { %v593_v4 = vpop.permute.xlu1 %592  ;;  %833 = vst.msk [vmem:[#allocation3] sm:$0xff] %vm832_vm7, %v785_v5  ;;  %v3510_v5 = vld [vmem:[#allocation2 + $0x102] sm:$0xff] }
 0x106   : > { %640 = vst.msk [vmem:[#allocation3 + $0x8] sm:$0xff] %vm638_vm4, %v593_v4  ;;  %993 = vrot.lane.b32.xlu0 %v954_v3, %s2966_s6 }
 0x107   : > { %991 = vrot.lane.b32.xlu1 %v662_v57, %s2966_s6 }
 0x108   : > { %v787_v7 = vpop.permute.xlu0 %786 }
 0x109   : > { %v690_v6 = vpop.permute.xlu1 %689 }
 0x10a   : > { %737 = vst.msk [vmem:[#allocation3 + $0x8] sm:$0xff] %vm735_vm6, %v690_v6  ;;  %705 = vrot.lane.b32.xlu0 %v3288_v30, %s2963_s28 }
 0x10b   : > { %834 = vst.msk [vmem:[#allocation3 + $0x8] sm:$0xff] %vm832_vm7, %v787_v7  ;;  %703 = vrot.lane.b32.xlu1 %v3283_v29, %s2963_s28 }
 0x10c   : > { %v500_v10 = vpop.permute.xlu0 %499 }
 0x10d   : > { %v498_v9 = vpop.permute.xlu1 %497  ;;  %545 = vst.msk [vmem:[#allocation3 + $0x18] sm:$0xff] %vm541_vm3, %v500_v10 }
 0x10e   : > { %544 = vst.msk [vmem:[#allocation3 + $0x10] sm:$0xff] %vm541_vm3, %v498_v9  ;;  %1090 = vrot.lane.b32.xlu0 %v1051_v8, %s2967_s7  ;;  %v3517_v8 = vld [vmem:[#allocation2 + $0x112] sm:$0xff] }
 0x10f   : > { %1088 = vrot.lane.b32.xlu1 %v759_v60, %s2967_s7 }
 0x110   : > { %v884_v12 = vpop.permute.xlu0 %883 }
 0x111   : > { %v882_v11 = vpop.permute.xlu1 %881  ;;  %931 = vst.msk [vmem:[#allocation3 + $0x8] sm:$0xff] %vm929_vm8, %v884_v12 }
 0x112   : > { %930 = vst.msk [vmem:[#allocation3] sm:$0xff] %vm929_vm8, %v882_v11  ;;  %513 = vrot.lane.b32.xlu0 %v471_v13, %s2961_s26 }
 0x113   : > { %800 = vrot.lane.b32.xlu1 %v470_v59, %s2964_s29 }
 0x114   : > { %v597_v15 = vpop.permute.xlu0 %596 }
 0x115   : > { %v595_v14 = vpop.permute.xlu1 %594  ;;  %642 = vst.msk [vmem:[#allocation3 + $0x18] sm:$0xff] %vm638_vm4, %v597_v15 }
 0x116   : > { %641 = vst.msk [vmem:[#allocation3 + $0x10] sm:$0xff] %vm638_vm4, %v595_v14  ;;  %897 = vrot.lane.b32.xlu0 %v567_v63, %s2965_s30 }
 0x117   : > { %1185 = vrot.lane.b32.xlu1 %v856_v61, %s2968_s16 }
 0x118   : > { %v982_v17 = vpop.permute.xlu0 %981 }
 0x119   : > { %v980_v16 = vpop.permute.xlu1 %979  ;;  %1029 = vst.msk [vmem:[#allocation3 + $0x8] sm:$0xff] %vm1027_vm9, %v982_v17  ;;  %v767_v17 = vld [vmem:[#allocation2 + $0x121] sm:$0xff] }
 0x11a   : > { %1028 = vst.msk [vmem:[#allocation3] sm:$0xff] %vm1027_vm9, %v980_v16  ;;  %515 = vrot.lane.b32.xlu0 %v472_v18, %s2961_s26 }
 0x11b   : > { %802 = vrot.lane.b32.xlu1 %v471_v13, %s2964_s29 }
 0x11c   : > { %v694_v21 = vpop.permute.xlu0 %693 }
 0x11d   : > { %v692_v20 = vpop.permute.xlu1 %691  ;;  %739 = vst.msk [vmem:[#allocation3 + $0x18] sm:$0xff] %vm735_vm6, %v694_v21 }
 0x11e   : > { %738 = vst.msk [vmem:[#allocation3 + $0x10] sm:$0xff] %vm735_vm6, %v692_v20  ;;  %899 = vrot.lane.b32.xlu0 %v858_v22, %s2965_s30 }
 0x11f   : > { %1187 = vrot.lane.b32.xlu1 %v1148_v19, %s2968_s16 }
 0x120   : > { %v1079_v24 = vpop.permute.xlu0 %1078 }
 0x121   : > { %v1077_v23 = vpop.permute.xlu1 %1076  ;;  %1126 = vst.msk [vmem:[#allocation3 + $0x8] sm:$0xff] %vm1124_vm10, %v1079_v24  ;;  %v864_v24 = vld [vmem:[#allocation2 + $0x122] sm:$0xff] }
 0x122   : > { %1125 = vst.msk [vmem:[#allocation3] sm:$0xff] %vm1124_vm10, %v1077_v23  ;;  %612 = vrot.lane.b32.xlu0 %v569_v25, %s2962_s27 }
 0x123   : > { %610 = vrot.lane.b32.xlu1 %v858_v22, %s2962_s27 }
 0x124   : > { %v502_v27 = vpop.permute.xlu0 %501 }
 0x125   : > { %v789_v26 = vpop.permute.xlu1 %788  ;;  %546 = vst.msk [vmem:[#allocation3 + $0x20] sm:$0xff] %vm541_vm3, %v502_v27 }
 0x126   : > { %835 = vst.msk [vmem:[#allocation3 + $0x10] sm:$0xff] %vm832_vm7, %v789_v26  ;;  %997 = vrot.lane.b32.xlu0 %v3297_v36, %s2966_s6 }
 0x127   : > { %995 = vrot.lane.b32.xlu1 %v3288_v30, %s2966_s6 }
 0x128   : > { %v886_v29 = vpop.permute.xlu0 %885 }
 0x129   : > { %v1174_v28 = vpop.permute.xlu1 %1173  ;;  %932 = vst.msk [vmem:[#allocation3 + $0x10] sm:$0xff] %vm929_vm8, %v886_v29  ;;  %v1581_v29 = vld [vmem:[#allocation4 + $0x1] sm:$0xff] }
 0x12a   : > { %1222 = vst.msk [vmem:[#allocation3] sm:$0xff] %vm1221_vm11, %v1174_v28  ;;  %709 = vrot.lane.b32.xlu0 %v3302_v37, %s2963_s28  ;;  %v1059_v28 = vld [vmem:[#allocation2 + $0x131] sm:$0xff] }
 0x12b   : > { %707 = vrot.lane.b32.xlu1 %v3297_v36, %s2963_s28 }
 0x12c   : > { %v504_v32 = vpop.permute.xlu0 %503 }
 0x12d   : > { %v791_v31 = vpop.permute.xlu1 %790  ;;  %547 = vst.msk [vmem:[#allocation3 + $0x28] sm:$0xff] %vm541_vm3, %v504_v32 }
 0x12e   : > { %836 = vst.msk [vmem:[#allocation3 + $0x18] sm:$0xff] %vm832_vm7, %v791_v31  ;;  %1094 = vrot.lane.b32.xlu0 %v472_v18, %s2967_s7 }
 0x12f   : > { %1092 = vrot.lane.b32.xlu1 %v471_v13, %s2967_s7  ;;  %v3531_v13 = vld [vmem:[#allocation2 + $0x120] sm:$0xff] }
 0x130   : > { %v888_v33 = vpop.permute.xlu0 %887 }
 0x131   : > { %v1176_v30 = vpop.permute.xlu1 %1175  ;;  %v1238_v34 = vld [vmem:[#allocation3] sm:$0xff]  ;;  %933 = vst.msk [vmem:[#allocation3 + $0x18] sm:$0xff] %vm929_vm8, %v888_v33 }
 0x132   : > { %1223 = vst.msk [vmem:[#allocation3 + $0x8] sm:$0xff] %vm1221_vm11, %v1176_v30  ;;  %2845 = vmatprep.mubr.msk.f32.mxu0 %vm1266_vm12, %v1238_v34  ;;  %517 = vrot.lane.b32.xlu0 %v473_v35, %s2961_s26  ;;  %v1156_v30 = vld [vmem:[#allocation2 + $0x132] sm:$0xff]  ;;  %v1589_v33 = vld [vmem:[#allocation4 + $0xa1] sm:$0xff] }
 0x133   : > { %804 = vrot.lane.b32.xlu1 %v472_v18, %s2964_s29 }
 0x134   : > { %v601_v38 = vpop.permute.xlu0 %600 }
 0x135   : > { %v599_v36 = vpop.permute.xlu1 %598  ;;  %644 = vst.msk [vmem:[#allocation3 + $0x28] sm:$0xff] %vm638_vm4, %v601_v38  ;;  %v2268_v38 = vld [vmem:[#allocation4 + $0x92] sm:$0xff] }
 0x136   : > { %643 = vst.msk [vmem:[#allocation3 + $0x20] sm:$0xff] %vm638_vm4, %v599_v36  ;;  %901 = vrot.lane.b32.xlu0 %v569_v25, %s2965_s30  ;;  %v1678_v36 = vld [vmem:[#allocation4 + $0x2] sm:$0xff] }
 0x137   : > { %1189 = vrot.lane.b32.xlu1 %v858_v22, %s2968_s16 }
 0x138   : > { %v986_v43 = vpop.permute.xlu0 %985 }
 0x139   : > { %v984_v41 = vpop.permute.xlu1 %983  ;;  %v1239_v44 = vld [vmem:[#allocation3 + $0x8] sm:$0xff]  ;;  %1031 = vst.msk [vmem:[#allocation3 + $0x18] sm:$0xff] %vm1027_vm9, %v986_v43 }
 0x13a   : > { %1030 = vst.msk [vmem:[#allocation3 + $0x10] sm:$0xff] %vm1027_vm9, %v984_v41  ;;  %2846 = vmatmul.mubr.msk.f32.vlgmr.msra.gmra.mxu0 %vm1266_vm12, %v1239_v44  ;;  %519 = vrot.lane.b32.xlu0 %v474_v45, %s2961_s26  ;;  %v1686_v44 = vld [vmem:[#allocation4 + $0xa2] sm:$0xff] }
 0x13b   : > { %806 = vrot.lane.b32.xlu1 %v473_v35, %s2964_s29 }
 0x13c   : > { %v698_v47 = vpop.permute.xlu0 %697 }
 0x13d   : > { %v696_v46 = vpop.permute.xlu1 %695  ;;  %741 = vst.msk [vmem:[#allocation3 + $0x28] sm:$0xff] %vm735_vm6, %v698_v47 }
 0x13e   : > { %740 = vst.msk [vmem:[#allocation3 + $0x20] sm:$0xff] %vm735_vm6, %v696_v46  ;;  %903 = vrot.lane.b32.xlu0 %v860_v48, %s2965_s30 }
 0x13f   : > { %1191 = vrot.lane.b32.xlu1 %v569_v25, %s2968_s16  ;;  %v962_v25 = vld [vmem:[#allocation2 + $0x130] sm:$0xff] }
 0x140   : > { %v1083_v50 = vpop.permute.xlu0 %1082 }
 0x141   : > { %v1081_v49 = vpop.permute.xlu1 %1080  ;;  %1128 = vst.msk [vmem:[#allocation3 + $0x18] sm:$0xff] %vm1124_vm10, %v1083_v50 }
 0x142   : > { %1127 = vst.msk [vmem:[#allocation3 + $0x10] sm:$0xff] %vm1124_vm10, %v1081_v49  ;;  %616 = vrot.lane.b32.xlu0 %v571_v51, %s2962_s27 }
 0x143   : > { %614 = vrot.lane.b32.xlu1 %v860_v48, %s2962_s27 }
 0x144   : > { %v506_v53 = vpop.permute.xlu0 %505 }
 0x145   : > { %v793_v52 = vpop.permute.xlu1 %792  ;;  %548 = vst.msk [vmem:[#allocation3 + $0x30] sm:$0xff] %vm541_vm3, %v506_v53 }
 0x146   : > { %837 = vst.msk [vmem:[#allocation3 + $0x20] sm:$0xff] %vm832_vm7, %v793_v52  ;;  %1001 = vrot.lane.b32.xlu0 %v3310_v39, %s2966_s6 }
 0x147   : > { %999 = vrot.lane.b32.xlu1 %v3302_v37, %s2966_s6 }
 0x148   : > { %v890_v55 = vpop.permute.xlu0 %889 }
 0x149   : > { %v1178_v54 = vpop.permute.xlu1 %1177  ;;  %934 = vst.msk [vmem:[#allocation3 + $0x20] sm:$0xff] %vm929_vm8, %v890_v55 }
 0x14a   : > { %1224 = vst.msk [vmem:[#allocation3 + $0x10] sm:$0xff] %vm1221_vm11, %v1178_v54  ;;  %713 = vrot.lane.b32.xlu0 %v3316_v40, %s2963_s28 }
 0x14b   : > { %711 = vrot.lane.b32.xlu1 %v3310_v39, %s2963_s28  ;;  %v475_v39 = vld [vmem:[#allocation2 + $0x101] sm:$0xff] }
 0x14c   : > { %v508_v57 = vpop.permute.xlu0 %507 }
 0x14d   : > { %v795_v56 = vpop.permute.xlu1 %794  ;;  %549 = vst.msk [vmem:[#allocation3 + $0x38] sm:$0xff] %vm541_vm3, %v508_v57 }
 0x14e   : > { %838 = vst.msk [vmem:[#allocation3 + $0x28] sm:$0xff] %vm832_vm7, %v795_v56  ;;  %1098 = vrot.lane.b32.xlu0 %v474_v45, %s2967_s7 }
 0x14f   : > { %1096 = vrot.lane.b32.xlu1 %v473_v35, %s2967_s7 }
 0x150   : > { %v892_v58 = vpop.permute.xlu0 %891 }
 0x151   : > { %v1180_v37 = vpop.permute.xlu1 %1179  ;;  %v1240_v59 = vld [vmem:[#allocation3 + $0x10] sm:$0xff]  ;;  %935 = vst.msk [vmem:[#allocation3 + $0x28] sm:$0xff] %vm929_vm8, %v892_v58 }
 0x152   : > { %1225 = vst.msk [vmem:[#allocation3 + $0x18] sm:$0xff] %vm1221_vm11, %v1180_v37  ;;  %2848 = vmatprep.mubr.msk.f32.mxu0 %vm1266_vm12, %v1240_v59  ;;  %521 = vrot.lane.b32.xlu0 %v475_v39, %s2961_s26 }
 0x153   : > { %808 = vrot.lane.b32.xlu1 %v474_v45, %s2964_s29 }
 0x154   : > { %v605_v61 = vpop.permute.xlu0 %604 }
 0x155   : > { %v603_v60 = vpop.permute.xlu1 %602  ;;  %646 = vst.msk [vmem:[#allocation3 + $0x38] sm:$0xff] %vm638_vm4, %v605_v61 }
 0x156   : > { %645 = vst.msk [vmem:[#allocation3 + $0x30] sm:$0xff] %vm638_vm4, %v603_v60  ;;  %905 = vrot.lane.b32.xlu0 %v571_v51, %s2965_s30 }
 0x157   : > { %1193 = vrot.lane.b32.xlu1 %v860_v48, %s2968_s16  ;;  %v2074_v48 = vld [vmem:[#allocation4 + $0x90] sm:$0xff] }
 0x158   : > { %v990_v63 = vpop.permute.xlu0 %989 }
 0x159   : > { %v988_v62 = vpop.permute.xlu1 %987  ;;  %v1241_v1 = vld [vmem:[#allocation3 + $0x18] sm:$0xff]  ;;  %1033 = vst.msk [vmem:[#allocation3 + $0x28] sm:$0xff] %vm1027_vm9, %v990_v63 }
 0x15a   : > { %1032 = vst.msk [vmem:[#allocation3 + $0x20] sm:$0xff] %vm1027_vm9, %v988_v62  ;;  %2849 = vmatmul.mubr.msk.f32.gmra.mxu0 %vm1266_vm12, %v1241_v1  ;;  %523 = vrot.lane.b32.xlu0 %v3503_v2, %s2961_s26  ;;  %s2972_s26 = smov 40  }
 0x15b   : > { %810 = vrot.lane.b32.xlu1 %v475_v39, %s2964_s29 }
 0x15c   : > { %v702_v4 = vpop.permute.xlu0 %701 }
 0x15d   : > { %v700_v3 = vpop.permute.xlu1 %699  ;;  %743 = vst.msk [vmem:[#allocation3 + $0x38] sm:$0xff] %vm735_vm6, %v702_v4 }
 0x15e   : > { %742 = vst.msk [vmem:[#allocation3 + $0x30] sm:$0xff] %vm735_vm6, %v700_v3  ;;  %907 = vrot.lane.b32.xlu0 %v3510_v5, %s2965_s30 }
 0x15f   : > { %1195 = vrot.lane.b32.xlu1 %v571_v51, %s2968_s16  ;;  %v2171_v51 = vld [vmem:[#allocation4 + $0x91] sm:$0xff] }
 0x160   : > { %v1087_v7 = vpop.permute.xlu0 %1086 }
 0x161   : > { %v1085_v6 = vpop.permute.xlu1 %1084  ;;  %1130 = vst.msk [vmem:[#allocation3 + $0x28] sm:$0xff] %vm1124_vm10, %v1087_v7 }
 0x162   : > { %1129 = vst.msk [vmem:[#allocation3 + $0x20] sm:$0xff] %vm1124_vm10, %v1085_v6  ;;  %620 = vrot.lane.b32.xlu0 %v3517_v8, %s2962_s27 }
 0x163   : > { %618 = vrot.lane.b32.xlu1 %v3510_v5, %s2962_s27 }
 0x164   : > { %v510_v10 = vpop.permute.xlu0 %509 }
 0x165   : > { %v797_v9 = vpop.permute.xlu1 %796  ;;  %550 = vst.msk [vmem:[#allocation3 + $0x40] sm:$0xff] %vm541_vm3, %v510_v10 }
 0x166   : > { %839 = vst.msk [vmem:[#allocation3 + $0x30] sm:$0xff] %vm832_vm7, %v797_v9  ;;  %1005 = vrot.lane.b32.xlu0 %v3323_v42, %s2966_s6 }
 0x167   : > { %1003 = vrot.lane.b32.xlu1 %v3316_v40, %s2966_s6 }
 0x168   : > { %v894_v12 = vpop.permute.xlu0 %893 }
 0x169   : > { %v1182_v11 = vpop.permute.xlu1 %1181  ;;  %936 = vst.msk [vmem:[#allocation3 + $0x30] sm:$0xff] %vm929_vm8, %v894_v12 }
 0x16a   : > { %1226 = vst.msk [vmem:[#allocation3 + $0x20] sm:$0xff] %vm1221_vm11, %v1182_v11  ;;  %717 = vrot.lane.b32.xlu0 %v3531_v13, %s2963_s28 }
 0x16b   : > { %715 = vrot.lane.b32.xlu1 %v3323_v42, %s2963_s28 }
 0x16c   : > { %v512_v15 = vpop.permute.xlu0 %511 }
 0x16d   : > { %v799_v14 = vpop.permute.xlu1 %798  ;;  %551 = vst.msk [vmem:[#allocation3 + $0x48] sm:$0xff] %vm541_vm3, %v512_v15 }
 0x16e   : > { %840 = vst.msk [vmem:[#allocation3 + $0x38] sm:$0xff] %vm832_vm7, %v799_v14  ;;  %1102 = vrot.lane.b32.xlu0 %v3503_v2, %s2967_s7 }
 0x16f   : > { %1100 = vrot.lane.b32.xlu1 %v475_v39, %s2967_s7 }
 0x170   : > { %v896_v42 = vpop.permute.xlu0 %895 }
 0x171   : > { %v1184_v40 = vpop.permute.xlu1 %1183  ;;  %v1242_v16 = vld [vmem:[#allocation3 + $0x20] sm:$0xff]  ;;  %937 = vst.msk [vmem:[#allocation3 + $0x38] sm:$0xff] %vm929_vm8, %v896_v42 }
 0x172   : > { %1227 = vst.msk [vmem:[#allocation3 + $0x28] sm:$0xff] %vm1221_vm11, %v1184_v40  ;;  %2851 = vmatprep.mubr.msk.f32.mxu0 %vm1266_vm12, %v1242_v16  ;;  %814 = vrot.lane.b32.xlu0 %v767_v17, %s2964_s29 }
 0x173   : > { %812 = vrot.lane.b32.xlu1 %v3503_v2, %s2964_s29 }
 0x174   : > { %v609_v19 = vpop.permute.xlu0 %608 }
 0x175   : > { %v607_v18 = vpop.permute.xlu1 %606  ;;  %648 = vst.msk [vmem:[#allocation3 + $0x48] sm:$0xff] %vm638_vm4, %v609_v19 }
 0x176   : > { %647 = vst.msk [vmem:[#allocation3 + $0x40] sm:$0xff] %vm638_vm4, %v607_v18  ;;  %1199 = vrot.lane.b32.xlu0 %v3517_v8, %s2968_s16 }
 0x177   : > { %1197 = vrot.lane.b32.xlu1 %v3510_v5, %s2968_s16 }
 0x178   : > { %v994_v20 = vpop.permute.xlu0 %993 }
 0x179   : > { %v992_v0 = vpop.permute.xlu1 %991  ;;  %v1243_v21 = vld [vmem:[#allocation3 + $0x28] sm:$0xff]  ;;  %1035 = vst.msk [vmem:[#allocation3 + $0x38] sm:$0xff] %vm1027_vm9, %v994_v20 }
 0x17a   : > { %1034 = vst.msk [vmem:[#allocation3 + $0x30] sm:$0xff] %vm1027_vm9, %v992_v0  ;;  %2852 = vmatmul.mubr.msk.f32.gmra.mxu0 %vm1266_vm12, %v1243_v21  ;;  %1007 = vrot.lane.b32.xlu0 %v3531_v13, %s2966_s6 }
 0x17b   : > { %909 = vrot.lane.b32.xlu1 %v3517_v8, %s2965_s30 }
 0x17c   : > { %v706_v23 = vpop.permute.xlu0 %705 }
 0x17d   : > { %v704_v22 = vpop.permute.xlu1 %703  ;;  %745 = vst.msk [vmem:[#allocation3 + $0x48] sm:$0xff] %vm735_vm6, %v706_v23 }
 0x17e   : > { %744 = vst.msk [vmem:[#allocation3 + $0x40] sm:$0xff] %vm735_vm6, %v704_v22  ;;  %1104 = vrot.lane.b32.xlu0 %v767_v17, %s2967_s7 }
 0x17f   : > { %911 = vrot.lane.b32.xlu1 %v864_v24, %s2965_s30 }
 0x180   : > { %v1091_v27 = vpop.permute.xlu0 %1090 }
 0x181   : > { %v1089_v26 = vpop.permute.xlu1 %1088  ;;  %1132 = vst.msk [vmem:[#allocation3 + $0x38] sm:$0xff] %vm1124_vm10, %v1091_v27 }
 0x182   : > { %1131 = vst.msk [vmem:[#allocation3 + $0x30] sm:$0xff] %vm1124_vm10, %v1089_v26  ;;  %1201 = vrot.lane.b32.xlu0 %v864_v24, %s2968_s16 }
 0x183   : > { %1009 = vrot.lane.b32.xlu1 %v962_v25, %s2966_s6 }
 0x184   : > { %v514_v32 = vpop.permute.xlu0 %513 }
 0x185   : > { %v801_v31 = vpop.permute.xlu1 %800  ;;  %552 = vst.msk [vmem:[#allocation3 + $0x50] sm:$0xff] %vm541_vm3, %v514_v32  ;;  %v1549_v32 = vld [vmem:[#allocation4] sm:$0xff] }
 0x186   : > { %841 = vst.msk [vmem:[#allocation3 + $0x40] sm:$0xff] %vm832_vm7, %v801_v31  ;;  %1613 = vrot.lane.b32.xlu0 %v1581_v29, %s2962_s27 }
 0x187   : > { %1106 = vrot.lane.b32.xlu1 %v1059_v28, %s2967_s7  ;;  %1565 = vst.msk [vmem:[#allocation5] sm:$0xff] %vm1480_vm14, %v1549_v32 }
 0x188   : > { %v898_v35 = vpop.permute.xlu0 %897 }
 0x189   : > { %v1186_v34 = vpop.permute.xlu1 %1185  ;;  %938 = vst.msk [vmem:[#allocation3 + $0x40] sm:$0xff] %vm929_vm8, %v898_v35 }
 0x18a   : > { %1228 = vst.msk [vmem:[#allocation3 + $0x30] sm:$0xff] %vm1221_vm11, %v1186_v34  ;;  %1629 = vrot.lane.b32.xlu0 %v1589_v33, %s2962_s27  ;;  %v1557_v34 = vld [vmem:[#allocation4 + $0xa0] sm:$0xff] }
 0x18b   : > { %1203 = vrot.lane.b32.xlu1 %v1156_v30, %s2968_s16  ;;  %1573 = vst.msk [vmem:[#allocation5 + $0x40] sm:$0xff] %vm1480_vm14, %v1557_v34 }
 0x18c   : > { %v516_v43 = vpop.permute.xlu0 %515 }
 0x18d   : > { %v803_v41 = vpop.permute.xlu1 %802  ;;  %553 = vst.msk [vmem:[#allocation3 + $0x58] sm:$0xff] %vm541_vm3, %v516_v43 }
 0x18e   : > { %842 = vst.msk [vmem:[#allocation3 + $0x48] sm:$0xff] %vm832_vm7, %v803_v41  ;;  %2307 = vrot.lane.b32.xlu0 %v2268_v38, %s2969_s21 }
 0x18f   : > { %1710 = vrot.lane.b32.xlu1 %v1678_v36, %s2964_s29 }
 0x190   : > { %v900_v46 = vpop.permute.xlu0 %899 }
 0x191   : > { %v1188_v45 = vpop.permute.xlu1 %1187  ;;  %v1244_v47 = vld [vmem:[#allocation3 + $0x30] sm:$0xff]  ;;  %939 = vst.msk [vmem:[#allocation3 + $0x48] sm:$0xff] %vm929_vm8, %v900_v46 }
 0x192   : > { %1229 = vst.msk [vmem:[#allocation3 + $0x38] sm:$0xff] %vm1221_vm11, %v1188_v45  ;;  %2854 = vmatprep.mubr.msk.f32.mxu0 %vm1266_vm12, %v1244_v47  ;;  %v3741_v45 = vld [vmem:[%s4154_s2] ss:$0 sm:$0xff] }
 0x193   : > { %1726 = vrot.lane.b32.xlu1 %v1686_v44, %s2964_s29 }
 0x194   : > { %v613_v50 = vpop.permute.xlu0 %612 }
 0x195   : > { %v611_v49 = vpop.permute.xlu1 %610  ;;  %650 = vst.msk [vmem:[#allocation3 + $0x58] sm:$0xff] %vm638_vm4, %v613_v50 }
 0x196   : > { %649 = vst.msk [vmem:[#allocation3 + $0x50] sm:$0xff] %vm638_vm4, %v611_v49 }
 0x197   : > { %2113 = vrot.lane.b32.xlu1 %v2074_v48, %s2970_s22 }
 0x198   : > { %v998_v53 = vpop.permute.xlu0 %997 }
 0x199   : > { %v996_v52 = vpop.permute.xlu1 %995  ;;  %v1245_v54 = vld [vmem:[#allocation3 + $0x38] sm:$0xff]  ;;  %1037 = vst.msk [vmem:[#allocation3 + $0x48] sm:$0xff] %vm1027_vm9, %v998_v53 }
 0x19a   : > { %1036 = vst.msk [vmem:[#allocation3 + $0x40] sm:$0xff] %vm1027_vm9, %v996_v52  ;;  %2855 = vmatmul.mubr.msk.f32.gmra.mxu0 %vm1266_vm12, %v1245_v54 }
 0x19b   : > { %2210 = vrot.lane.b32.xlu1 %v2171_v51, %s2971_s23 }
 0x19c   : > { %v710_v56 = vpop.permute.xlu0 %709 }
 0x19d   : > { %v708_v55 = vpop.permute.xlu1 %707  ;;  %747 = vst.msk [vmem:[#allocation3 + $0x58] sm:$0xff] %vm735_vm6, %v710_v56 }
 0x19e   : > { %746 = vst.msk [vmem:[#allocation3 + $0x50] sm:$0xff] %vm735_vm6, %v708_v55 }
 0x1a0   : > { %v1095_v37 = vpop.permute.xlu0 %1094 }
 0x1a1   : > { %v1093_v57 = vpop.permute.xlu1 %1092  ;;  %1134 = vst.msk [vmem:[#allocation3 + $0x48] sm:$0xff] %vm1124_vm10, %v1095_v37 }
 0x1a2   : > { %1133 = vst.msk [vmem:[#allocation3 + $0x40] sm:$0xff] %vm1124_vm10, %v1093_v57 }
 0x1a4   : > { %v518_v59 = vpop.permute.xlu0 %517 }
 0x1a5   : > { %v805_v58 = vpop.permute.xlu1 %804  ;;  %554 = vst.msk [vmem:[#allocation3 + $0x60] sm:$0xff] %vm541_vm3, %v518_v59 }
 0x1a6   : > { %843 = vst.msk [vmem:[#allocation3 + $0x50] sm:$0xff] %vm832_vm7, %v805_v58 }
 0x1a8   : > { %v902_v60 = vpop.permute.xlu0 %901 }
 0x1a9   : > { %v1190_v39 = vpop.permute.xlu1 %1189  ;;  %940 = vst.msk [vmem:[#allocation3 + $0x50] sm:$0xff] %vm929_vm8, %v902_v60 }
 0x1aa   : > { %1230 = vst.msk [vmem:[#allocation3 + $0x40] sm:$0xff] %vm1221_vm11, %v1190_v39 }
 0x1ac   : > { %v520_v62 = vpop.permute.xlu0 %519 }
 0x1ad   : > { %v807_v61 = vpop.permute.xlu1 %806  ;;  %555 = vst.msk [vmem:[#allocation3 + $0x68] sm:$0xff] %vm541_vm3, %v520_v62 }
 0x1ae   : > { %844 = vst.msk [vmem:[#allocation3 + $0x58] sm:$0xff] %vm832_vm7, %v807_v61 }
 0x1b0   : > { %v904_v1 = vpop.permute.xlu0 %903 }
 0x1b1   : > { %v1192_v63 = vpop.permute.xlu1 %1191  ;;  %v1246_v2 = vld [vmem:[#allocation3 + $0x40] sm:$0xff]  ;;  %941 = vst.msk [vmem:[#allocation3 + $0x58] sm:$0xff] %vm929_vm8, %v904_v1 }
 0x1b2   : > { %1231 = vst.msk [vmem:[#allocation3 + $0x48] sm:$0xff] %vm1221_vm11, %v1192_v63  ;;  %2857 = vmatprep.mubr.msk.f32.mxu0 %vm1266_vm12, %v1246_v2 }
 0x1b4   : > { %v617_v4 = vpop.permute.xlu0 %616 }
 0x1b5   : > { %v615_v3 = vpop.permute.xlu1 %614  ;;  %652 = vst.msk [vmem:[#allocation3 + $0x68] sm:$0xff] %vm638_vm4, %v617_v4 }
 0x1b6   : > { %651 = vst.msk [vmem:[#allocation3 + $0x60] sm:$0xff] %vm638_vm4, %v615_v3 }
 0x1b8   : > { %v1002_v6 = vpop.permute.xlu0 %1001 }
 0x1b9   : > { %v1000_v5 = vpop.permute.xlu1 %999  ;;  %v1247_v7 = vld [vmem:[#allocation3 + $0x48] sm:$0xff]  ;;  %1039 = vst.msk [vmem:[#allocation3 + $0x58] sm:$0xff] %vm1027_vm9, %v1002_v6 }
 0x1ba   : > { %1038 = vst.msk [vmem:[#allocation3 + $0x50] sm:$0xff] %vm1027_vm9, %v1000_v5  ;;  %2858 = vmatmul.mubr.msk.f32.gmra.mxu0 %vm1266_vm12, %v1247_v7 }
 0x1bc   : > { %v714_v9 = vpop.permute.xlu0 %713 }
 0x1bd   : > { %v712_v8 = vpop.permute.xlu1 %711  ;;  %749 = vst.msk [vmem:[#allocation3 + $0x68] sm:$0xff] %vm735_vm6, %v714_v9 }
 0x1be   : > { %748 = vst.msk [vmem:[#allocation3 + $0x60] sm:$0xff] %vm735_vm6, %v712_v8 }
 0x1c0   : > { %v1099_v11 = vpop.permute.xlu0 %1098 }
 0x1c1   : > { %v1097_v10 = vpop.permute.xlu1 %1096  ;;  %1136 = vst.msk [vmem:[#allocation3 + $0x58] sm:$0xff] %vm1124_vm10, %v1099_v11  ;;  %v2382_v11 = vld [vmem:[%s4155_s3 + $0x40] sm:$0xff] }
 0x1c2   : > { %1135 = vst.msk [vmem:[#allocation3 + $0x50] sm:$0xff] %vm1124_vm10, %v1097_v10  ;;  %2869 = vmatprep.subr.mxu0 %v2382_v11  ;;  %2911 = vmatprep.subr.mxu1 %v2382_v11 }
 0x1c3   : > { %2870 = vmatpush3.msra.mxu0 %v2382_v11  ;;  %2920 = vmatpush3.msra.mxu1 %v2382_v11 }
 0x1c4   : > { %v522_v13 = vpop.permute.xlu0 %521 }
 0x1c5   : > { %v809_v12 = vpop.permute.xlu1 %808  ;;  %556 = vst.msk [vmem:[#allocation3 + $0x70] sm:$0xff] %vm541_vm3, %v522_v13  ;;  %v2380_v13 = vld [vmem:[%s4155_s3 + $0x30] sm:$0xff] }
 0x1c6   : > { %845 = vst.msk [vmem:[#allocation3 + $0x60] sm:$0xff] %vm832_vm7, %v809_v12  ;;  %v2381_v12 = vld [vmem:[%s4155_s3 + $0x38] sm:$0xff] }
 0x1c7   : > { %2871 = vmatprep.subr.mxu0 %v2381_v12  ;;  %2912 = vmatprep.subr.mxu1 %v2381_v12 }
 0x1c8   : > { %v906_v15 = vpop.permute.xlu0 %905  ;;  %2872 = vmatpush3.msra.mxu0 %v2381_v12  ;;  %2921 = vmatpush3.msra.mxu1 %v2381_v12 }
 0x1c9   : > { %v1194_v14 = vpop.permute.xlu1 %1193  ;;  %942 = vst.msk [vmem:[#allocation3 + $0x60] sm:$0xff] %vm929_vm8, %v906_v15  ;;  %2873 = vmatprep.subr.mxu0 %v2380_v13  ;;  %2913 = vmatprep.subr.mxu1 %v2380_v13  ;;  %v2378_v15 = vld [vmem:[%s4155_s3 + $0x20] sm:$0xff] }
 0x1ca   : > { %1232 = vst.msk [vmem:[#allocation3 + $0x50] sm:$0xff] %vm1221_vm11, %v1194_v14  ;;  %2874 = vmatpush3.msra.mxu0 %v2380_v13  ;;  %v2379_v14 = vld [vmem:[%s4155_s3 + $0x28] sm:$0xff]  ;;  %2922 = vmatpush3.msra.mxu1 %v2380_v13 }
 0x1cb   : > { %2875 = vmatprep.subr.mxu0 %v2379_v14  ;;  %2914 = vmatprep.subr.mxu1 %v2379_v14 }
 0x1cc   : > { %v524_v42 = vpop.permute.xlu0 %523  ;;  %2876 = vmatpush3.msra.mxu0 %v2379_v14  ;;  %2923 = vmatpush3.msra.mxu1 %v2379_v14 }
 0x1cd   : > { %v811_v40 = vpop.permute.xlu1 %810  ;;  %557 = vst.msk [vmem:[#allocation3 + $0x78] sm:$0xff] %vm541_vm3, %v524_v42  ;;  %2877 = vmatprep.subr.mxu0 %v2378_v15  ;;  %2915 = vmatprep.subr.mxu1 %v2378_v15  ;;  %vm1952_vm3 = vcmask 326912  }
 0x1ce   : > { %846 = vst.msk [vmem:[#allocation3 + $0x68] sm:$0xff] %vm832_vm7, %v811_v40  ;;  %2878 = vmatpush3.msra.mxu0 %v2378_v15  ;;  %2924 = vmatpush3.msra.mxu1 %v2378_v15 }
 0x1d0   : > { %v908_v17 = vpop.permute.xlu0 %907 }
 0x1d1   : > { %v1196_v16 = vpop.permute.xlu1 %1195  ;;  %v1248_v18 = vld [vmem:[#allocation3 + $0x50] sm:$0xff]  ;;  %943 = vst.msk [vmem:[#allocation3 + $0x68] sm:$0xff] %vm929_vm8, %v908_v17 }
 0x1d2   : > { %1233 = vst.msk [vmem:[#allocation3 + $0x58] sm:$0xff] %vm1221_vm11, %v1196_v16  ;;  %2860 = vmatprep.mubr.msk.f32.mxu0 %vm1266_vm12, %v1248_v18  ;;  %v2377_v16 = vld [vmem:[%s4155_s3 + $0x18] sm:$0xff] }
 0x1d3   : > { %2879 = vmatprep.subr.mxu0 %v2377_v16  ;;  %2916 = vmatprep.subr.mxu1 %v2377_v16 }
 0x1d4   : > { %v621_v0 = vpop.permute.xlu0 %620  ;;  %2880 = vmatpush3.msra.mxu0 %v2377_v16  ;;  %2925 = vmatpush3.msra.mxu1 %v2377_v16 }
 0x1d5   : > { %v619_v19 = vpop.permute.xlu1 %618  ;;  %654 = vst.msk [vmem:[#allocation3 + $0x78] sm:$0xff] %vm638_vm4, %v621_v0 }
 0x1d6   : > { %653 = vst.msk [vmem:[#allocation3 + $0x70] sm:$0xff] %vm638_vm4, %v619_v19  ;;  %vm2049_vm4 = vcmask 392512  }
 0x1d8   : > { %v1006_v21 = vpop.permute.xlu0 %1005 }
 0x1d9   : > { %v1004_v20 = vpop.permute.xlu1 %1003  ;;  %v1249_v22 = vld [vmem:[#allocation3 + $0x58] sm:$0xff]  ;;  %1041 = vst.msk [vmem:[#allocation3 + $0x68] sm:$0xff] %vm1027_vm9, %v1006_v21 }
 0x1da   : > { %1040 = vst.msk [vmem:[#allocation3 + $0x60] sm:$0xff] %vm1027_vm9, %v1004_v20  ;;  %2861 = vmatmul.mubr.msk.f32.gmra.mxu0 %vm1266_vm12, %v1249_v22  ;;  %v2376_v20 = vld [vmem:[%s4155_s3 + $0x10] sm:$0xff]  ;;  %v2375_v22 = vld [vmem:[%s4155_s3 + $0x8] sm:$0xff] }
 0x1db   : > { %2881 = vmatprep.subr.mxu0 %v2376_v20  ;;  %2917 = vmatprep.subr.mxu1 %v2376_v20 }
 0x1dc   : > { %v718_v24 = vpop.permute.xlu0 %717  ;;  %2882 = vmatpush3.msra.mxu0 %v2376_v20  ;;  %2926 = vmatpush3.msra.mxu1 %v2376_v20 }
 0x1dd   : > { %v716_v23 = vpop.permute.xlu1 %715  ;;  %751 = vst.msk [vmem:[#allocation3 + $0x78] sm:$0xff] %vm735_vm6, %v718_v24  ;;  %2883 = vmatprep.subr.mxu0 %v2375_v22  ;;  %v2374_v24 = vld [vmem:[%s4155_s3] sm:$0xff]  ;;  %2918 = vmatprep.subr.mxu1 %v2375_v22 }
 0x1de   : > { %750 = vst.msk [vmem:[#allocation3 + $0x70] sm:$0xff] %vm735_vm6, %v716_v23  ;;  %2884 = vmatpush3.msra.mxu0 %v2375_v22  ;;  %2927 = vmatpush3.msra.mxu1 %v2375_v22  ;;  %vm2244_vm6 = vcmask 523712  }
 0x1df   : > { %2885 = vmatprep.subr.mxu0 %v2374_v24  ;;  %2919 = vmatprep.subr.mxu1 %v2374_v24 }
 0x1e0   : > { %v1103_v26 = vpop.permute.xlu0 %1102  ;;  %2886 = vmatpush3.msra.mxu0 %v2374_v24  ;;  %2928 = vmatpush3.msra.mxu1 %v2374_v24 }
 0x1e1   : > { %v1101_v25 = vpop.permute.xlu1 %1100  ;;  %1138 = vst.msk [vmem:[#allocation3 + $0x68] sm:$0xff] %vm1124_vm10, %v1103_v26 }
 0x1e2   : > { %1137 = vst.msk [vmem:[#allocation3 + $0x60] sm:$0xff] %vm1124_vm10, %v1101_v25 }
 0x1e4   : > { %v815_v28 = vpop.permute.xlu0 %814 }
 0x1e5   : > { %v813_v27 = vpop.permute.xlu1 %812  ;;  %848 = vst.msk [vmem:[#allocation3 + $0x78] sm:$0xff] %vm832_vm7, %v815_v28 }
 0x1e6   : > { %847 = vst.msk [vmem:[#allocation3 + $0x70] sm:$0xff] %vm832_vm7, %v813_v27  ;;  %vm2341_vm7 = vcmask 589312  }
 0x1e8   : > { %v1200_v31 = vpop.permute.xlu0 %1199 }
 0x1e9   : > { %v1198_v29 = vpop.permute.xlu1 %1197  ;;  %1235 = vst.msk [vmem:[#allocation3 + $0x68] sm:$0xff] %vm1221_vm11, %v1200_v31 }
 0x1ea   : > { %1234 = vst.msk [vmem:[#allocation3 + $0x60] sm:$0xff] %vm1221_vm11, %v1198_v29 }
 0x1ec   : > { %v1008_v33 = vpop.permute.xlu0 %1007 }
 0x1ed   : > { %v910_v30 = vpop.permute.xlu1 %909 }
 0x1ee   : > { %944 = vst.msk [vmem:[#allocation3 + $0x70] sm:$0xff] %vm929_vm8, %v910_v30 }
 0x1ef   : > { %1042 = vst.msk [vmem:[#allocation3 + $0x70] sm:$0xff] %vm1027_vm9, %v1008_v33 }
 0x1f0   : > { %v1105_v36 = vpop.permute.xlu0 %1104  ;;  %v1251_v41 = vld [vmem:[#allocation3 + $0x68] sm:$0xff] }
 0x1f1   : > { %v912_v35 = vpop.permute.xlu1 %911  ;;  %v1250_v38 = vld [vmem:[#allocation3 + $0x60] sm:$0xff]  ;;  %1139 = vst.msk [vmem:[#allocation3 + $0x70] sm:$0xff] %vm1124_vm10, %v1105_v36 }
 0x1f2   : > { %945 = vst.msk [vmem:[#allocation3 + $0x78] sm:$0xff] %vm929_vm8, %v912_v35  ;;  %2863 = vmatprep.mubr.msk.f32.mxu0 %vm1266_vm12, %v1250_v38  ;;  %vm2390_vm8 = vcmask 588800  }
 0x1f3   : > { %2864 = vmatmul.mubr.msk.f32.gmra.mxu0 %vm1266_vm12, %v1251_v41 }
 0x1f4   : > { %v1202_v43 = vpop.permute.xlu0 %1201 }
 0x1f5   : > { %v1010_v44 = vpop.permute.xlu1 %1009  ;;  %1236 = vst.msk [vmem:[#allocation3 + $0x70] sm:$0xff] %vm1221_vm11, %v1202_v43 }
 0x1f6   : > { %1043 = vst.msk [vmem:[#allocation3 + $0x78] sm:$0xff] %vm1027_vm9, %v1010_v44  ;;  %vm2632_vm9 = vcmask 523264  }
 0x1f8   : > { %v1614_v47 = vpop.permute.xlu0 %1613 }
 0x1f9   : > { %v1107_v46 = vpop.permute.xlu1 %1106  ;;  %1662 = vst.msk [vmem:[#allocation5] sm:$0xff] %vm1661_vm0, %v1614_v47 }
 0x1fa   : > { %v2847_v48 = vpop.f32.mrf.mxu0  ;;  %1140 = vst.msk [vmem:[#allocation3 + $0x78] sm:$0xff] %vm1124_vm10, %v1107_v46 }
 0x1fb   : > { %v1391_v49 = vadd.f32 %v2847_v48, %v3741_v45 }
 0x1fc   : > { %v1385_v50 = vpop.f32.mrf.mxu0  ;;  %v1252_v53 = vld [vmem:[#allocation3 + $0x70] sm:$0xff]  ;;  %v1630_v55 = vpop.permute.xlu0 %1629 }
 0x1fd   : > { %v1465_v51 = vmax.f32 %v1391_v49, 0.0  ;;  %v1386_v52 = vadd.f32 %v3741_v45, %v1385_v50  ;;  %v1204_v54 = vpop.permute.xlu1 %1203  ;;  %2866 = vmatprep.mubr.msk.f32.mxu0 %vm1266_vm12, %v1252_v53  ;;  %1670 = vst.msk [vmem:[#allocation5 + $0x40] sm:$0xff] %vm1661_vm0, %v1630_v55 }
 0x1fe   : > { %1237 = vst.msk [vmem:[#allocation3 + $0x78] sm:$0xff] %vm1221_vm11, %v1204_v54 }
 0x1ff   : > { %1534 = vst.msk [vmem:[#allocation4 + $0x21] sm:$0xff] %vm1480_vm14, %v1465_v51  ;;  %v1464_v56 = vmax.f32 %v1386_v52, 0.0 }
 0x200   : > { %v3856_v49 = vpop.permute.xlu0 %2307 }
 0x201   : > { %1533 = vst.msk [vmem:[#allocation4 + $0x11] sm:$0xff] %vm1480_vm14, %v1464_v56  ;;  %v1711_v57 = vpop.permute.xlu1 %1710 }
 0x202   : > { %1759 = vst.msk [vmem:[#allocation5] sm:$0xff] %vm1758_vm1, %v1711_v57 }
 0x205   : > { %v1253_v37 = vld [vmem:[#allocation3 + $0x78] sm:$0xff]  ;;  %v1727_v58 = vpop.permute.xlu1 %1726 }
 0x206   : > { %v1970_v59 = vld [vmem:[#allocation4 + $0x22] sm:$0xff]  ;;  %2867 = vmatmul.mubr.msk.f32.gmra.mxu0 %vm1266_vm12, %v1253_v37  ;;  %1767 = vst.msk [vmem:[#allocation5 + $0x40] sm:$0xff] %vm1758_vm1, %v1727_v58 }
 0x207   : > { %v1583_v39 = vld [vmem:[#allocation4 + $0x21] sm:$0xff]  ;;  %2003 = vrot.lane.b32.xlu1 %v1970_v59, %s2972_s26 }
 0x208   : > { %v2067_v60 = vld [vmem:[#allocation4 + $0x20] sm:$0xff]  ;;  %1617 = vrot.lane.b32.xlu0 %v1583_v39, %s2962_s27  ;;  %v1775_v61 = vld [vmem:[#allocation4 + $0x10] sm:$0xff] }
 0x209   : > { %1567 = vst.msk [vmem:[#allocation5 + $0x10] sm:$0xff] %vm1480_vm14, %v2067_v60  ;;  %1566 = vst.msk [vmem:[#allocation5 + $0x8] sm:$0xff] %vm1480_vm14, %v1775_v61  ;;  %v1582_v62 = vld [vmem:[#allocation4 + $0x11] sm:$0xff]  ;;  %v3848_v44 = vpop.permute.xlu1 %2113 }
 0x20a   : > { %v1679_v5 = vld [vmem:[#allocation4 + $0x12] sm:$0xff] }
 0x20b   : > { %2099 = vrot.lane.b32.xlu1 %v2067_v60, %s2970_s22 }
 0x20c   : > { %1714 = vrot.lane.b32.xlu0 %v1970_v59, %s2964_s29 }
 0x20d   : > { %v3854_v48 = vpop.permute.xlu1 %2210 }
 0x20f   : > { %1615 = vrot.lane.b32.xlu1 %v1582_v62, %s2962_s27 }
 0x210   : > { %1809 = vrot.lane.b32.xlu0 %v2067_v60, %s2966_s6 }
 0x214   : > { %1906 = vrot.lane.b32.xlu0 %v1583_v39, %s2968_s16 }
 0x218   : > { %2196 = vrot.lane.b32.xlu0 %v1583_v39, %s2971_s23 }
 0x21a   : > { %v2850_v63 = vpop.f32.mrf.mxu0 }
 0x21b   : > { %v1401_v1 = vadd.f32 %v2850_v63, %v3741_v45 }
 0x21c   : > { %2293 = vrot.lane.b32.xlu0 %v1970_v59, %s2969_s21  ;;  %v1395_v2 = vpop.f32.mrf.mxu0 }
 0x21d   : > { %v1467_v3 = vmax.f32 %v1401_v1, 0.0  ;;  %v1396_v4 = vadd.f32 %v3741_v45, %v1395_v2 }
 0x21f   : > { %1536 = vst.msk [vmem:[#allocation4 + $0x41] sm:$0xff] %vm1480_vm14, %v1467_v3  ;;  %v1466_v6 = vmax.f32 %v1396_v4, 0.0 }
 0x220   : > { %1712 = vrot.lane.b32.xlu0 %v1679_v5, %s2964_s29 }
 0x221   : > { %1535 = vst.msk [vmem:[#allocation4 + $0x31] sm:$0xff] %vm1480_vm14, %v1466_v6 }
 0x224   : > { %1807 = vrot.lane.b32.xlu0 %v1775_v61, %s2966_s6 }
 0x226   : > { %v1778_v7 = vld [vmem:[#allocation4 + $0x40] sm:$0xff] }
 0x227   : > { %1813 = vrot.lane.b32.xlu1 %v1778_v7, %s2966_s6  ;;  %1569 = vst.msk [vmem:[#allocation5 + $0x20] sm:$0xff] %vm1480_vm14, %v1778_v7  ;;  %v1585_v9 = vld [vmem:[#allocation4 + $0x41] sm:$0xff] }
 0x228   : > { %1904 = vrot.lane.b32.xlu0 %v1582_v62, %s2968_s16  ;;  %v1777_v8 = vld [vmem:[#allocation4 + $0x30] sm:$0xff]  ;;  %v1682_v10 = vld [vmem:[#allocation4 + $0x42] sm:$0xff] }
 0x229   : > { %1568 = vst.msk [vmem:[#allocation5 + $0x18] sm:$0xff] %vm1480_vm14, %v1777_v8  ;;  %v1874_v42 = vld [vmem:[#allocation4 + $0x31] sm:$0xff] }
 0x22a   : > { %v1681_v23 = vld [vmem:[#allocation4 + $0x32] sm:$0xff] }
 0x22b   : > { %1621 = vrot.lane.b32.xlu1 %v1585_v9, %s2962_s27 }
 0x22c   : > { %2001 = vrot.lane.b32.xlu0 %v1679_v5, %s2972_s26 }
 0x22f   : > { %1718 = vrot.lane.b32.xlu1 %v1682_v10, %s2964_s29 }
 0x230   : > { %1910 = vrot.lane.b32.xlu0 %v1585_v9, %s2968_s16 }
 0x233   : > { %2103 = vrot.lane.b32.xlu1 %v1778_v7, %s2970_s22 }
 0x234   : > { %2007 = vrot.lane.b32.xlu0 %v1682_v10, %s2972_s26 }
 0x237   : > { %2200 = vrot.lane.b32.xlu1 %v1585_v9, %s2971_s23 }
 0x238   : > { %1811 = vrot.lane.b32.xlu0 %v1777_v8, %s2966_s6 }
 0x23a   : > { %v2853_v40 = vpop.f32.mrf.mxu0 }
 0x23b   : > { %v1411_v17 = vadd.f32 %v2853_v40, %v3741_v45  ;;  %2297 = vrot.lane.b32.xlu1 %v1682_v10, %s2969_s21 }
 0x23c   : > { %1908 = vrot.lane.b32.xlu0 %v1874_v42, %s2968_s16  ;;  %v1405_v18 = vpop.f32.mrf.mxu0 }
 0x23d   : > { %v1469_v19 = vmax.f32 %v1411_v17, 0.0  ;;  %v1406_v0 = vadd.f32 %v3741_v45, %v1405_v18 }
 0x23f   : > { %1538 = vst.msk [vmem:[#allocation4 + $0x61] sm:$0xff] %vm1480_vm14, %v1469_v19  ;;  %v1468_v21 = vmax.f32 %v1406_v0, 0.0  ;;  %1619 = vrot.lane.b32.xlu1 %v1874_v42, %s2962_s27 }
 0x240   : > { %2101 = vrot.lane.b32.xlu0 %v1777_v8, %s2970_s22 }
 0x241   : > { %1537 = vst.msk [vmem:[#allocation4 + $0x51] sm:$0xff] %vm1480_vm14, %v1468_v21 }
 0x243   : > { %1716 = vrot.lane.b32.xlu1 %v1681_v23, %s2964_s29 }
 0x244   : > { %2198 = vrot.lane.b32.xlu0 %v1874_v42, %s2971_s23 }
 0x246   : > { %v1780_v25 = vld [vmem:[#allocation4 + $0x60] sm:$0xff] }
 0x247   : > { %2005 = vrot.lane.b32.xlu1 %v1681_v23, %s2972_s26  ;;  %1571 = vst.msk [vmem:[#allocation5 + $0x30] sm:$0xff] %vm1480_vm14, %v1780_v25  ;;  %v1877_v27 = vld [vmem:[#allocation4 + $0x61] sm:$0xff] }
 0x248   : > { %2295 = vrot.lane.b32.xlu0 %v1681_v23, %s2969_s21  ;;  %v1779_v26 = vld [vmem:[#allocation4 + $0x50] sm:$0xff]  ;;  %v1684_v28 = vld [vmem:[#allocation4 + $0x62] sm:$0xff] }
 0x249   : > { %1570 = vst.msk [vmem:[#allocation5 + $0x28] sm:$0xff] %vm1480_vm14, %v1779_v26  ;;  %v1586_v31 = vld [vmem:[#allocation4 + $0x51] sm:$0xff] }
 0x24a   : > { %v1683_v35 = vld [vmem:[#allocation4 + $0x52] sm:$0xff] }
 0x24b   : > { %1914 = vrot.lane.b32.xlu1 %v1877_v27, %s2968_s16 }
 0x24c   : > { %1817 = vrot.lane.b32.xlu0 %v1780_v25, %s2966_s6 }
 0x24f   : > { %1722 = vrot.lane.b32.xlu1 %v1684_v28, %s2964_s29 }
 0x250   : > { %1625 = vrot.lane.b32.xlu0 %v1877_v27, %s2962_s27 }
 0x253   : > { %2107 = vrot.lane.b32.xlu1 %v1780_v25, %s2970_s22 }
 0x254   : > { %2011 = vrot.lane.b32.xlu0 %v1684_v28, %s2972_s26 }
 0x257   : > { %2204 = vrot.lane.b32.xlu1 %v1877_v27, %s2971_s23 }
 0x258   : > { %2301 = vrot.lane.b32.xlu0 %v1684_v28, %s2969_s21 }
 0x25a   : > { %v2856_v29 = vpop.f32.mrf.mxu0 }
 0x25b   : > { %v1421_v32 = vadd.f32 %v2856_v29, %v3741_v45  ;;  %1815 = vrot.lane.b32.xlu1 %v1779_v26, %s2966_s6 }
 0x25c   : > { %1623 = vrot.lane.b32.xlu0 %v1586_v31, %s2962_s27  ;;  %v1415_v30 = vpop.f32.mrf.mxu0 }
 0x25d   : > { %v1471_v33 = vmax.f32 %v1421_v32, 0.0  ;;  %v1416_v34 = vadd.f32 %v3741_v45, %v1415_v30 }
 0x25f   : > { %1540 = vst.msk [vmem:[#allocation4 + $0x81] sm:$0xff] %vm1480_vm14, %v1471_v33  ;;  %v1470_v36 = vmax.f32 %v1416_v34, 0.0  ;;  %1912 = vrot.lane.b32.xlu1 %v1586_v31, %s2968_s16 }
 0x260   : > { %1720 = vrot.lane.b32.xlu0 %v1683_v35, %s2964_s29 }
 0x261   : > { %1539 = vst.msk [vmem:[#allocation4 + $0x71] sm:$0xff] %vm1480_vm14, %v1470_v36 }
 0x263   : > { %2299 = vrot.lane.b32.xlu1 %v1683_v35, %s2969_s21 }
 0x264   : > { %2105 = vrot.lane.b32.xlu0 %v1779_v26, %s2970_s22 }
 0x266   : > { %v1782_v38 = vld [vmem:[#allocation4 + $0x80] sm:$0xff] }
 0x267   : > { %1821 = vrot.lane.b32.xlu1 %v1782_v38, %s2966_s6  ;;  %v1976_v43 = vld [vmem:[#allocation4 + $0x82] sm:$0xff] }
 0x268   : > { %2202 = vrot.lane.b32.xlu0 %v1586_v31, %s2971_s23  ;;  %v1781_v41 = vld [vmem:[#allocation4 + $0x70] sm:$0xff]  ;;  %v1879_v46 = vld [vmem:[#allocation4 + $0x81] sm:$0xff] }
 0x269   : > { %1572 = vst.msk [vmem:[#allocation5 + $0x38] sm:$0xff] %vm1480_vm14, %v1781_v41  ;;  %v2169_v47 = vld [vmem:[#allocation4 + $0x71] sm:$0xff] }
 0x26a   : > { %v1975_v50 = vld [vmem:[#allocation4 + $0x72] sm:$0xff] }
 0x26b   : > { %2015 = vrot.lane.b32.xlu1 %v1976_v43, %s2972_s26 }
 0x26c   : > { %2009 = vrot.lane.b32.xlu0 %v1683_v35, %s2972_s26 }
 0x26f   : > { %1819 = vrot.lane.b32.xlu1 %v1781_v41, %s2966_s6 }
 0x270   : > { %1918 = vrot.lane.b32.xlu0 %v1879_v46, %s2968_s16 }
 0x273   : > { %2206 = vrot.lane.b32.xlu1 %v2169_v47, %s2971_s23 }
 0x274   : > { %2111 = vrot.lane.b32.xlu0 %v1782_v38, %s2970_s22 }
 0x277   : > { %2013 = vrot.lane.b32.xlu1 %v1975_v50, %s2972_s26 }
 0x278   : > { %2208 = vrot.lane.b32.xlu0 %v1879_v46, %s2971_s23 }
 0x279   : > { %v2004_v51 = vpop.permute.xlu1 %2003 }
 0x27a   : > { %v1618_v52 = vpop.permute.xlu0 %1617  ;;  %v2859_v53 = vpop.f32.mrf.mxu0 }
 0x27b   : > { %1664 = vst.msk [vmem:[#allocation5 + $0x10] sm:$0xff] %vm1661_vm0, %v1618_v52  ;;  %v1431_v54 = vadd.f32 %v2859_v53, %v3741_v45 }
 0x27c   : > { %2305 = vrot.lane.b32.xlu0 %v1976_v43, %s2969_s21  ;;  %v1425_v55 = vpop.f32.mrf.mxu0 }
 0x27d   : > { %v1473_v56 = vmax.f32 %v1431_v54, 0.0  ;;  %v1426_v57 = vadd.f32 %v3741_v45, %v1425_v55  ;;  %v2100_v37 = vpop.permute.xlu1 %2099 }
 0x27e   : > { %v1715_v58 = vpop.permute.xlu0 %1714 }
 0x27f   : > { %1761 = vst.msk [vmem:[#allocation5 + $0x10] sm:$0xff] %vm1758_vm1, %v1715_v58  ;;  %v1472_v59 = vmax.f32 %v1426_v57, 0.0 }
 0x280   : > { %1542 = vst.msk [vmem:[#allocation4 + $0xc1] sm:$0xff] %vm1480_vm14, %v1473_v56  ;;  %1627 = vrot.lane.b32.xlu0 %v2169_v47, %s2962_s27 }
 0x281   : > { %1541 = vst.msk [vmem:[#allocation4 + $0xb1] sm:$0xff] %vm1480_vm14, %v1472_v59  ;;  %v1616_v39 = vpop.permute.xlu1 %1615 }
 0x282   : > { %v1810_v60 = vpop.permute.xlu0 %1809  ;;  %1663 = vst.msk [vmem:[#allocation5 + $0x8] sm:$0xff] %vm1661_vm0, %v1616_v39 }
 0x284   : > { %1724 = vrot.lane.b32.xlu0 %v1975_v50, %s2964_s29 }
 0x286   : > { %v1907_v61 = vpop.permute.xlu0 %1906 }
 0x287   : > { %v1784_v62 = vld [vmem:[#allocation4 + $0xc0] sm:$0xff] }
 0x288   : > { %1825 = vrot.lane.b32.xlu1 %v1784_v62, %s2966_s6  ;;  %2109 = vrot.lane.b32.xlu0 %v1781_v41, %s2970_s22  ;;  %1575 = vst.msk [vmem:[#allocation5 + $0x50] sm:$0xff] %vm1480_vm14, %v1784_v62  ;;  %v1783_v63 = vld [vmem:[#allocation4 + $0xb0] sm:$0xff]  ;;  %v1591_v2 = vld [vmem:[#allocation4 + $0xc1] sm:$0xff] }
 0x289   : > { %1574 = vst.msk [vmem:[#allocation5 + $0x48] sm:$0xff] %vm1480_vm14, %v1783_v63  ;;  %v1978_v4 = vld [vmem:[#allocation4 + $0xc2] sm:$0xff]  ;;  %v1977_v10 = vld [vmem:[#allocation4 + $0xb2] sm:$0xff] }
 0x28a   : > { %v2197_v1 = vpop.permute.xlu0 %2196  ;;  %v1590_v42 = vld [vmem:[#allocation4 + $0xb1] sm:$0xff] }
 0x28c   : > { %1633 = vrot.lane.b32.xlu1 %v1591_v2, %s2962_s27  ;;  %1916 = vrot.lane.b32.xlu0 %v2169_v47, %s2968_s16 }
 0x28e   : > { %v2294_v3 = vpop.permute.xlu0 %2293 }
 0x290   : > { %2019 = vrot.lane.b32.xlu1 %v1978_v4, %s2972_s26  ;;  %2303 = vrot.lane.b32.xlu0 %v1975_v50, %s2969_s21 }
 0x292   : > { %v1713_v5 = vpop.permute.xlu0 %1712 }
 0x293   : > { %1760 = vst.msk [vmem:[#allocation5 + $0x8] sm:$0xff] %vm1758_vm1, %v1713_v5 }
 0x294   : > { %1857 = vst.msk [vmem:[#allocation5 + $0x8] sm:$0xff] %vm1855_vm2, %v1810_v60  ;;  %2115 = vrot.lane.b32.xlu1 %v1784_v62, %s2970_s22  ;;  %1922 = vrot.lane.b32.xlu0 %v1591_v2, %s2968_s16 }
 0x295   : > { %1954 = vst.msk [vmem:[#allocation5 + $0x8] sm:$0xff] %vm1952_vm3, %v1907_v61 }
 0x296   : > { %v1808_v6 = vpop.permute.xlu0 %1807  ;;  %2051 = vst.msk [vmem:[#allocation5 + $0x8] sm:$0xff] %vm2049_vm4, %v2004_v51 }
 0x297   : > { %1856 = vst.msk [vmem:[#allocation5] sm:$0xff] %vm1855_vm2, %v1808_v6 }
 0x298   : > { %2212 = vrot.lane.b32.xlu1 %v1591_v2, %s2971_s23  ;;  %1730 = vrot.lane.b32.xlu0 %v1978_v4, %s2964_s29 }
 0x299   : > { %v3887_v7 = vpop.permute.xlu1 %1813 }
 0x29a   : > { %v1905_v8 = vpop.permute.xlu0 %1904  ;;  %v2862_v9 = vpop.f32.mrf.mxu0 }
 0x29b   : > { %1953 = vst.msk [vmem:[#allocation5] sm:$0xff] %vm1952_vm3, %v1905_v8  ;;  %v1441_v11 = vadd.f32 %v2862_v9, %v3741_v45 }
 0x29c   : > { %2309 = vrot.lane.b32.xlu1 %v1978_v4, %s2969_s21  ;;  %2017 = vrot.lane.b32.xlu0 %v1977_v10, %s2972_s26  ;;  %v1435_v12 = vpop.f32.mrf.mxu0 }
 0x29d   : > { %v1475_v13 = vmax.f32 %v1441_v11, 0.0  ;;  %v1436_v14 = vadd.f32 %v3741_v45, %v1435_v12  ;;  %v1622_v15 = vpop.permute.xlu1 %1621 }
 0x29e   : > { %v2002_v40 = vpop.permute.xlu0 %2001  ;;  %1666 = vst.msk [vmem:[#allocation5 + $0x20] sm:$0xff] %vm1661_vm0, %v1622_v15 }
 0x29f   : > { %2050 = vst.msk [vmem:[#allocation5] sm:$0xff] %vm2049_vm4, %v2002_v40  ;;  %v1474_v16 = vmax.f32 %v1436_v14, 0.0 }
 0x2a0   : > { %1544 = vst.msk [vmem:[#allocation4 + $0xe1] sm:$0xff] %vm1480_vm14, %v1475_v13  ;;  %1631 = vrot.lane.b32.xlu1 %v1590_v42, %s2962_s27 }
 0x2a1   : > { %2148 = vst.msk [vmem:[#allocation5] sm:$0xff] %vm2147_vm5, %v2100_v37  ;;  %v1719_v17 = vpop.permute.xlu1 %1718 }
 0x2a2   : > { %2245 = vst.msk [vmem:[#allocation5] sm:$0xff] %vm2244_vm6, %v2197_v1  ;;  %v1911_v18 = vpop.permute.xlu0 %1910 }
 0x2a3   : > { %1543 = vst.msk [vmem:[#allocation4 + $0xd1] sm:$0xff] %vm1480_vm14, %v1474_v16 }
 0x2a4   : > { %2342 = vst.msk [vmem:[#allocation5] sm:$0xff] %vm2341_vm7, %v2294_v3  ;;  %1728 = vrot.lane.b32.xlu1 %v1977_v10, %s2964_s29 }
 0x2a5   : > { %1763 = vst.msk [vmem:[#allocation5 + $0x20] sm:$0xff] %vm1758_vm1, %v1719_v17  ;;  %v2104_v19 = vpop.permute.xlu1 %2103 }
 0x2a6   : > { %v2008_v0 = vpop.permute.xlu0 %2007 }
 0x2a7   : > { %v1593_v20 = vld [vmem:[#allocation4 + $0xe1] sm:$0xff] }
 0x2a8   : > { %v1786_v21 = vld [vmem:[#allocation4 + $0xe0] sm:$0xff]  ;;  %1823 = vrot.lane.b32.xlu1 %v1783_v63, %s2966_s6  ;;  %1637 = vrot.lane.b32.xlu0 %v1593_v20, %s2962_s27 }
 0x2a9   : > { %1577 = vst.msk [vmem:[#allocation5 + $0x60] sm:$0xff] %vm1480_vm14, %v1786_v21  ;;  %v2201_v24 = vpop.permute.xlu1 %2200  ;;  %v1980_v26 = vld [vmem:[#allocation4 + $0xe2] sm:$0xff] }
 0x2aa   : > { %v3907_v23 = vld [vmem:[#allocation4 + $0xd0] sm:$0xff]  ;;  %v1812_v25 = vpop.permute.xlu0 %1811 }
 0x2ab   : > { %v2358_v22 = vld [vmem:[#allocation5] sm:$0xff]  ;;  %1576 = vst.msk [vmem:[#allocation5 + $0x58] sm:$0xff] %vm1480_vm14, %v3907_v23  ;;  %v3921_v32 = vld [vmem:[#allocation4 + $0xd1] sm:$0xff] }
 0x2ac   : > { %2887 = vmatprep.mubr.msk.f32.mxu0 %vm2390_vm8, %v2358_v22  ;;  %1858 = vst.msk [vmem:[#allocation5 + $0x10] sm:$0xff] %vm1855_vm2, %v1812_v25  ;;  %1920 = vrot.lane.b32.xlu1 %v1590_v42, %s2968_s16  ;;  %v3929_v43 = vld [vmem:[#allocation4 + $0xd2] sm:$0xff] }
 0x2ad   : > { %2023 = vrot.lane.b32.xlu0 %v1980_v26, %s2972_s26  ;;  %v2298_v27 = vpop.permute.xlu1 %2297 }
 0x2ae   : > { %v1909_v28 = vpop.permute.xlu0 %1908 }
 0x2af   : > { %1955 = vst.msk [vmem:[#allocation5 + $0x10] sm:$0xff] %vm1952_vm3, %v1909_v28 }
 0x2b0   : > { %1829 = vrot.lane.b32.xlu1 %v1786_v21, %s2966_s6 }
 0x2b1   : > { %1827 = vrot.lane.b32.xlu0 %v3907_v23, %s2966_s6  ;;  %v1620_v29 = vpop.permute.xlu1 %1619 }
 0x2b2   : > { %v2102_v31 = vpop.permute.xlu0 %2101  ;;  %1665 = vst.msk [vmem:[#allocation5 + $0x18] sm:$0xff] %vm1661_vm0, %v1620_v29 }
 0x2b3   : > { %2149 = vst.msk [vmem:[#allocation5 + $0x8] sm:$0xff] %vm2147_vm5, %v2102_v31  ;;  %v2865_v30 = vpop.f32.mrf.mxu0 }
 0x2b4   : > { %1926 = vrot.lane.b32.xlu1 %v1593_v20, %s2968_s16  ;;  %v1451_v33 = vadd.f32 %v2865_v30, %v3741_v45 }
 0x2b5   : > { %1924 = vrot.lane.b32.xlu0 %v3921_v32, %s2968_s16  ;;  %v1717_v34 = vpop.permute.xlu1 %1716  ;;  %v1445_v35 = vpop.f32.mrf.mxu0 }
 0x2b6   : > { %v1477_v36 = vmax.f32 %v1451_v33, 0.0  ;;  %1762 = vst.msk [vmem:[#allocation5 + $0x18] sm:$0xff] %vm1758_vm1, %v1717_v34  ;;  %v1446_v38 = vadd.f32 %v3741_v45, %v1445_v35  ;;  %v2199_v41 = vpop.permute.xlu0 %2198 }
 0x2b7   : > { %1859 = vst.msk [vmem:[#allocation5 + $0x18] sm:$0xff] %vm1855_vm2, %v3887_v7 }
 0x2b8   : > { %2246 = vst.msk [vmem:[#allocation5 + $0x8] sm:$0xff] %vm2244_vm6, %v2199_v41  ;;  %1734 = vrot.lane.b32.xlu1 %v1980_v26, %s2964_s29  ;;  %v1476_v46 = vmax.f32 %v1446_v38, 0.0 }
 0x2b9   : > { %2021 = vrot.lane.b32.xlu0 %v3929_v43, %s2972_s26  ;;  %1546 = vst.msk [vmem:[#allocation4 + $0x101] sm:$0xff] %vm1480_vm14, %v1477_v36  ;;  %v2006_v47 = vpop.permute.xlu1 %2005  ;;  %v2082_v36 = vld [vmem:[#allocation4 + $0x130] sm:$0xff] }
 0x2ba   : > { %1956 = vst.msk [vmem:[#allocation5 + $0x18] sm:$0xff] %vm1952_vm3, %v1911_v18  ;;  %v2296_v50 = vpop.permute.xlu0 %2295 }
 0x2bb   : > { %2053 = vst.msk [vmem:[#allocation5 + $0x18] sm:$0xff] %vm2049_vm4, %v2008_v0  ;;  %2052 = vst.msk [vmem:[#allocation5 + $0x10] sm:$0xff] %vm2049_vm4, %v2006_v47  ;;  %v2179_v47 = vld [vmem:[#allocation4 + $0x131] sm:$0xff] }
 0x2bc   : > { %1545 = vst.msk [vmem:[#allocation4 + $0xf1] sm:$0xff] %vm1480_vm14, %v1476_v46  ;;  %2119 = vrot.lane.b32.xlu1 %v1786_v21, %s2970_s22 }
 0x2bd   : > { %2150 = vst.msk [vmem:[#allocation5 + $0x10] sm:$0xff] %vm2147_vm5, %v2104_v19  ;;  %v1915_v51 = vpop.permute.xlu1 %1914 }
 0x2be   : > { %2343 = vst.msk [vmem:[#allocation5 + $0x8] sm:$0xff] %vm2341_vm7, %v2296_v50  ;;  %v1818_v52 = vpop.permute.xlu0 %1817 }
 0x2bf   : > { %2247 = vst.msk [vmem:[#allocation5 + $0x10] sm:$0xff] %vm2244_vm6, %v2201_v24 }
 0x2c0   : > { %2344 = vst.msk [vmem:[#allocation5 + $0x10] sm:$0xff] %vm2341_vm7, %v2298_v27  ;;  %2216 = vrot.lane.b32.xlu1 %v1593_v20, %s2971_s23  ;;  %v3948_v53 = vld [vmem:[#allocation4 + $0x100] sm:$0xff] }
 0x2c1   : > { %1833 = vrot.lane.b32.xlu0 %v3948_v53, %s2966_s6  ;;  %1579 = vst.msk [vmem:[#allocation5 + $0x70] sm:$0xff] %vm1480_vm14, %v3948_v53  ;;  %v1723_v54 = vpop.permute.xlu1 %1722  ;;  %v3958_v37 = vld [vmem:[#allocation4 + $0x101] sm:$0xff] }
 0x2c2   : > { %v1626_v56 = vpop.permute.xlu0 %1625  ;;  %v1982_v16 = vld [vmem:[#allocation4 + $0x102] sm:$0xff] }
 0x2c3   : > { %v2078_v55 = vld [vmem:[#allocation4 + $0xf0] sm:$0xff]  ;;  %1668 = vst.msk [vmem:[#allocation5 + $0x30] sm:$0xff] %vm1661_vm0, %v1626_v56 }
 0x2c4   : > { %1578 = vst.msk [vmem:[#allocation5 + $0x68] sm:$0xff] %vm1480_vm14, %v2078_v55  ;;  %2313 = vrot.lane.b32.xlu1 %v1980_v26, %s2969_s21  ;;  %v1594_v61 = vld [vmem:[#allocation4 + $0xf1] sm:$0xff] }
 0x2c5   : > { %v2359_v57 = vld [vmem:[#allocation5 + $0x8] sm:$0xff]  ;;  %1765 = vst.msk [vmem:[#allocation5 + $0x30] sm:$0xff] %vm1758_vm1, %v1723_v54  ;;  %1641 = vrot.lane.b32.xlu0 %v3958_v37, %s2962_s27  ;;  %v2108_v59 = vpop.permute.xlu1 %2107  ;;  %v1691_v5 = vld [vmem:[#allocation4 + $0xf2] sm:$0xff] }
 0x2c6   : > { %2888 = vmatmul.mubr.msk.f32.vlgmr.msra.gmra.mxu0 %vm2390_vm8, %v2359_v57  ;;  %v2012_v39 = vpop.permute.xlu0 %2011  ;;  %v2868_v60 = vpop.f32.mrf.mxu0 }
 0x2c7   : > { %v2360_v58 = vld [vmem:[#allocation5 + $0x10] sm:$0xff]  ;;  %v1461_v62 = vadd.f32 %v2868_v60, %v3741_v45 }
 0x2c8   : > { %2890 = vmatprep.mubr.msk.f32.mxu1 %vm2390_vm8, %v2360_v58  ;;  %1635 = vrot.lane.b32.xlu1 %v3921_v32, %s2962_s27  ;;  %v1455_v63 = vpop.f32.mrf.mxu0 }
 0x2c9   : > { %1639 = vrot.lane.b32.xlu0 %v1594_v61, %s2962_s27  ;;  %v2205_v1 = vpop.permute.xlu1 %2204  ;;  %v1479_v2 = vmax.f32 %v1461_v62, 0.0  ;;  %v1456_v3 = vadd.f32 %v3741_v45, %v1455_v63 }
 0x2ca   : > { %v2302_v4 = vpop.permute.xlu0 %2301 }
 0x2cb   : > { %1548 = vst.msk [vmem:[#allocation4 + $0x121] sm:$0xff] %vm1480_vm14, %v1479_v2  ;;  %v1478_v6 = vmax.f32 %v1456_v3, 0.0 }
 0x2cc   : > { %1732 = vrot.lane.b32.xlu1 %v3929_v43, %s2964_s29 }
 0x2cd   : > { %1736 = vrot.lane.b32.xlu0 %v1691_v5, %s2964_s29  ;;  %v1816_v7 = vpop.permute.xlu1 %1815  ;;  %1547 = vst.msk [vmem:[#allocation4 + $0x111] sm:$0xff] %vm1480_vm14, %v1478_v6 }
 0x2ce   : > { %1860 = vst.msk [vmem:[#allocation5 + $0x20] sm:$0xff] %vm1855_vm2, %v1816_v7  ;;  %v1624_v8 = vpop.permute.xlu0 %1623 }
 0x2cf   : > { %1667 = vst.msk [vmem:[#allocation5 + $0x28] sm:$0xff] %vm1661_vm0, %v1624_v8 }
 0x2d0   : > { %2117 = vrot.lane.b32.xlu1 %v3907_v23, %s2970_s22 }
 0x2d1   : > { %2121 = vrot.lane.b32.xlu0 %v2078_v55, %s2970_s22  ;;  %v1913_v45 = vpop.permute.xlu1 %1912 }
 0x2d2   : > { %1957 = vst.msk [vmem:[#allocation5 + $0x20] sm:$0xff] %vm1952_vm3, %v1913_v45  ;;  %v1721_v9 = vpop.permute.xlu0 %1720  ;;  %v1790_v23 = vld [vmem:[#allocation4 + $0x120] sm:$0xff] }
 0x2d3   : > { %1764 = vst.msk [vmem:[#allocation5 + $0x28] sm:$0xff] %vm1758_vm1, %v1721_v9  ;;  %v1887_v27 = vld [vmem:[#allocation4 + $0x121] sm:$0xff] }
 0x2d4   : > { %2214 = vrot.lane.b32.xlu1 %v3921_v32, %s2971_s23  ;;  %1861 = vst.msk [vmem:[#allocation5 + $0x28] sm:$0xff] %vm1855_vm2, %v1818_v52  ;;  %v2080_v10 = vld [vmem:[#allocation4 + $0x110] sm:$0xff] }
 0x2d5   : > { %2218 = vrot.lane.b32.xlu0 %v1594_v61, %s2971_s23  ;;  %1958 = vst.msk [vmem:[#allocation5 + $0x28] sm:$0xff] %vm1952_vm3, %v1915_v51  ;;  %v2300_v11 = vpop.permute.xlu1 %2299  ;;  %v1596_v14 = vld [vmem:[#allocation4 + $0x111] sm:$0xff] }
 0x2d6   : > { %1580 = vst.msk [vmem:[#allocation5 + $0x78] sm:$0xff] %vm1480_vm14, %v2080_v10  ;;  %v2106_v12 = vpop.permute.xlu0 %2105  ;;  %v1693_v18 = vld [vmem:[#allocation4 + $0x112] sm:$0xff] }
 0x2d7   : > { %2055 = vst.msk [vmem:[#allocation5 + $0x28] sm:$0xff] %vm2049_vm4, %v2012_v39  ;;  %v2276_v52 = vld [vmem:[#allocation4 + $0x132] sm:$0xff] }
 0x2d8   : > { %2151 = vst.msk [vmem:[#allocation5 + $0x18] sm:$0xff] %vm2147_vm5, %v2106_v12  ;;  %2311 = vrot.lane.b32.xlu1 %v3929_v43, %s2969_s21 }
 0x2d9   : > { %2025 = vrot.lane.b32.xlu0 %v1691_v5, %s2972_s26  ;;  %v1822_v13 = vpop.permute.xlu1 %1821 }
 0x2da   : > { %v2203_v15 = vpop.permute.xlu0 %2202 }
 0x2db   : > { %2248 = vst.msk [vmem:[#allocation5 + $0x18] sm:$0xff] %vm2244_vm6, %v2203_v15 }
 0x2dc   : > { %1930 = vrot.lane.b32.xlu1 %v3958_v37, %s2968_s16  ;;  %2345 = vst.msk [vmem:[#allocation5 + $0x18] sm:$0xff] %vm2341_vm7, %v2300_v11 }
 0x2dd   : > { %1643 = vrot.lane.b32.xlu0 %v1596_v14, %s2962_s27  ;;  %v2016_v40 = vpop.permute.xlu1 %2015 }
 0x2de   : > { %v2010_v42 = vpop.permute.xlu0 %2009 }
 0x2df   : > { %2054 = vst.msk [vmem:[#allocation5 + $0x20] sm:$0xff] %vm2049_vm4, %v2010_v42 }
 0x2e0   : > { %1831 = vrot.lane.b32.xlu1 %v2078_v55, %s2966_s6  ;;  %2152 = vst.msk [vmem:[#allocation5 + $0x20] sm:$0xff] %vm2147_vm5, %v2108_v59 }
 0x2e1   : > { %2027 = vrot.lane.b32.xlu0 %v1982_v16, %s2972_s26  ;;  %2249 = vst.msk [vmem:[#allocation5 + $0x20] sm:$0xff] %vm2244_vm6, %v2205_v1  ;;  %v1820_v17 = vpop.permute.xlu1 %1819 }
 0x2e2   : > { %2346 = vst.msk [vmem:[#allocation5 + $0x20] sm:$0xff] %vm2341_vm7, %v2302_v4  ;;  %v1919_v19 = vpop.permute.xlu0 %1918 }
 0x2e3   : > { %1862 = vst.msk [vmem:[#allocation5 + $0x30] sm:$0xff] %vm1855_vm2, %v1820_v17  ;;  %v2361_v0 = vld [vmem:[#allocation5 + $0x18] sm:$0xff] }
 0x2e4   : > { %1928 = vrot.lane.b32.xlu1 %v1594_v61, %s2968_s16  ;;  %2891 = vmatmul.mubr.msk.f32.vlgmr.msra.gmra.mxu1 %vm2390_vm8, %v2361_v0 }
 0x2e5   : > { %1740 = vrot.lane.b32.xlu0 %v1693_v18, %s2964_s29  ;;  %v2207_v25 = vpop.permute.xlu1 %2206 }
 0x2e6   : > { %v2112_v20 = vpop.permute.xlu0 %2111 }
 0x2e8   : > { %2315 = vrot.lane.b32.xlu1 %v1691_v5, %s2969_s21 }
 0x2e9   : > { %2125 = vrot.lane.b32.xlu0 %v2080_v10, %s2970_s22  ;;  %v2362_v21 = vld [vmem:[#allocation5 + $0x20] sm:$0xff]  ;;  %v2014_v28 = vpop.permute.xlu1 %2013 }
 0x2ea   : > { %2893 = vmatprep.mubr.msk.f32.mxu1 %vm2390_vm8, %v2362_v21  ;;  %v2209_v22 = vpop.permute.xlu0 %2208 }
 0x2ec   : > { %1738 = vrot.lane.b32.xlu1 %v1982_v16, %s2964_s29 }
 0x2ed   : > { %1837 = vrot.lane.b32.xlu0 %v1790_v23, %s2966_s6 }
 0x2ee   : > { %v2306_v24 = vpop.permute.xlu0 %2305 }
 0x2f0   : > { %2123 = vrot.lane.b32.xlu1 %v3948_v53, %s2970_s22 }
 0x2f1   : > { %2222 = vrot.lane.b32.xlu0 %v1596_v14, %s2971_s23 }
 0x2f2   : > { %v1628_v26 = vpop.permute.xlu0 %1627 }
 0x2f3   : > { %1669 = vst.msk [vmem:[#allocation5 + $0x38] sm:$0xff] %vm1661_vm0, %v1628_v26 }
 0x2f4   : > { %1835 = vrot.lane.b32.xlu1 %v2080_v10, %s2966_s6  ;;  %s2733_s6 = sshll.u32 %s4159_s20, 3 }
 0x2f5   : > { %1934 = vrot.lane.b32.xlu0 %v1887_v27, %s2968_s16 }
 0x2f6   : > { %v1725_v29 = vpop.permute.xlu0 %1724 }
 0x2f7   : > { %1766 = vst.msk [vmem:[#allocation5 + $0x38] sm:$0xff] %vm1758_vm1, %v1725_v29 }
 0x2f8   : > { %2220 = vrot.lane.b32.xlu1 %v3958_v37, %s2971_s23  ;;  %1863 = vst.msk [vmem:[#allocation5 + $0x38] sm:$0xff] %vm1855_vm2, %v1822_v13 }
 0x2f9   : > { %2319 = vrot.lane.b32.xlu0 %v1693_v18, %s2969_s21  ;;  %1960 = vst.msk [vmem:[#allocation5 + $0x38] sm:$0xff] %vm1952_vm3, %v1919_v19 }
 0x2fa   : > { %v1826_v31 = vpop.permute.xlu1 %1825  ;;  %2057 = vst.msk [vmem:[#allocation5 + $0x38] sm:$0xff] %vm2049_vm4, %v2016_v40  ;;  %v2110_v32 = vpop.permute.xlu0 %2109 }
 0x2fb   : > { %2155 = vst.msk [vmem:[#allocation5 + $0x38] sm:$0xff] %vm2147_vm5, %v3848_v44  ;;  %2153 = vst.msk [vmem:[#allocation5 + $0x28] sm:$0xff] %vm2147_vm5, %v2110_v32 }
 0x2fc   : > { %1932 = vrot.lane.b32.xlu1 %v1596_v14, %s2968_s16  ;;  %2252 = vst.msk [vmem:[#allocation5 + $0x38] sm:$0xff] %vm2244_vm6, %v3854_v48  ;;  %2250 = vst.msk [vmem:[#allocation5 + $0x28] sm:$0xff] %vm2244_vm6, %v2207_v25 }
 0x2fd   : > { %2127 = vrot.lane.b32.xlu0 %v1790_v23, %s2970_s22  ;;  %2349 = vst.msk [vmem:[#allocation5 + $0x38] sm:$0xff] %vm2341_vm7, %v3856_v49  ;;  %v2275_v49 = vld [vmem:[#allocation4 + $0x122] sm:$0xff] }
 0x2fe   : > { %v1634_v30 = vpop.permute.xlu1 %1633  ;;  %v1917_v33 = vpop.permute.xlu0 %1916 }
 0x2ff   : > { %1672 = vst.msk [vmem:[#allocation5 + $0x50] sm:$0xff] %vm1661_vm0, %v1634_v30 }
 0x300   : > { %1959 = vst.msk [vmem:[#allocation5 + $0x30] sm:$0xff] %vm1952_vm3, %v1917_v33  ;;  %2317 = vrot.lane.b32.xlu1 %v1982_v16, %s2969_s21 }
 0x301   : > { %2056 = vst.msk [vmem:[#allocation5 + $0x30] sm:$0xff] %vm2049_vm4, %v2014_v28  ;;  %2224 = vrot.lane.b32.xlu0 %v1887_v27, %s2971_s23 }
 0x302   : > { %2154 = vst.msk [vmem:[#allocation5 + $0x30] sm:$0xff] %vm2147_vm5, %v2112_v20  ;;  %v2020_v44 = vpop.permute.xlu1 %2019  ;;  %v2304_v48 = vpop.permute.xlu0 %2303 }
 0x303   : > { %2251 = vst.msk [vmem:[#allocation5 + $0x30] sm:$0xff] %vm2244_vm6, %v2209_v22 }
 0x304   : > { %2348 = vst.msk [vmem:[#allocation5 + $0x30] sm:$0xff] %vm2341_vm7, %v2306_v24  ;;  %2347 = vst.msk [vmem:[#allocation5 + $0x28] sm:$0xff] %vm2341_vm7, %v2304_v48  ;;  %2029 = vrot.lane.b32.xlu1 %v1693_v18, %s2972_s26  ;;  %v2365_v51 = vld [vmem:[#allocation5 + $0x38] sm:$0xff] }
 0x305   : > { %2321 = vrot.lane.b32.xlu0 %v2275_v49, %s2969_s21 }
 0x306   : > { %v2116_v34 = vpop.permute.xlu1 %2115  ;;  %v1923_v35 = vpop.permute.xlu0 %1922 }
 0x308   : > { %2031 = vrot.lane.b32.xlu1 %v2275_v49, %s2972_s26 }
 0x30a   : > { %v2213_v38 = vpop.permute.xlu1 %2212  ;;  %v1731_v41 = vpop.permute.xlu0 %1730 }
 0x30b   : > { %v2363_v43 = vld [vmem:[#allocation5 + $0x28] sm:$0xff]  ;;  %v2364_v46 = vld [vmem:[#allocation5 + $0x30] sm:$0xff]  ;;  %1769 = vst.msk [vmem:[#allocation5 + $0x50] sm:$0xff] %vm1758_vm1, %v1731_v41 }
 0x30c   : > { %2894 = vmatmul.mubr.msk.f32.gmra.mxu1 %vm2390_vm8, %v2363_v43  ;;  %2129 = vrot.lane.b32.xlu1 %v2082_v36, %s2970_s22  ;;  %s229_s22 = scalar_lea.vmem %s4157_s5, %s2733_s6 }
 0x30d   : > { %2896 = vmatprep.mubr.msk.f32.mxu1 %vm2390_vm8, %v2364_v46 }
 0x30e   : > { %v2310_v50 = vpop.permute.xlu1 %2309  ;;  %v2018_v54 = vpop.permute.xlu0 %2017 }
 0x310   : > { %2897 = vmatmul.mubr.msk.f32.gmra.mxu1 %vm2390_vm8, %v2365_v51  ;;  %2226 = vrot.lane.b32.xlu1 %v2179_v47, %s2971_s23 }
 0x312   : > { %v1632_v53 = vpop.permute.xlu1 %1631 }
 0x313   : > { %1671 = vst.msk [vmem:[#allocation5 + $0x48] sm:$0xff] %vm1661_vm0, %v1632_v53 }
 0x314   : > { %2323 = vrot.lane.b32.xlu1 %v2276_v52, %s2969_s21 }
 0x316   : > { %v1729_v55 = vpop.permute.xlu1 %1728 }
 0x317   : > { %1768 = vst.msk [vmem:[#allocation5 + $0x48] sm:$0xff] %vm1758_vm1, %v1729_v55 }
 0x318   : > { %1865 = vst.msk [vmem:[#allocation5 + $0x48] sm:$0xff] %vm1855_vm2, %v1826_v31 }
 0x319   : > { %1962 = vst.msk [vmem:[#allocation5 + $0x48] sm:$0xff] %vm1952_vm3, %v1923_v35 }
 0x31a   : > { %v1824_v56 = vpop.permute.xlu1 %1823  ;;  %2059 = vst.msk [vmem:[#allocation5 + $0x48] sm:$0xff] %vm2049_vm4, %v2020_v44  ;;  %v1638_v57 = vpop.permute.xlu0 %1637 }
 0x31b   : > { %1864 = vst.msk [vmem:[#allocation5 + $0x40] sm:$0xff] %vm1855_vm2, %v1824_v56 }
 0x31c   : > { %1674 = vst.msk [vmem:[#allocation5 + $0x60] sm:$0xff] %vm1661_vm0, %v1638_v57 }
 0x31e   : > { %v1921_v37 = vpop.permute.xlu1 %1920 }
 0x31f   : > { %v2024_v58 = vpop.permute.xlu0 %2023  ;;  %1961 = vst.msk [vmem:[#allocation5 + $0x40] sm:$0xff] %vm1952_vm3, %v1921_v37 }
 0x320   : > { %2058 = vst.msk [vmem:[#allocation5 + $0x40] sm:$0xff] %vm2049_vm4, %v2018_v54 }
 0x321   : > { %2156 = vst.msk [vmem:[#allocation5 + $0x40] sm:$0xff] %vm2147_vm5, %v2116_v34 }
 0x322   : > { %2253 = vst.msk [vmem:[#allocation5 + $0x40] sm:$0xff] %vm2244_vm6, %v2213_v38  ;;  %v1830_v59 = vpop.permute.xlu1 %1829 }
 0x323   : > { %v1828_v39 = vpop.permute.xlu0 %1827  ;;  %2350 = vst.msk [vmem:[#allocation5 + $0x40] sm:$0xff] %vm2341_vm7, %v2310_v50  ;;  %v4123_v50 = vld [vmem:[%s4156_s4] ss:$0 sm:$0xff] }
 0x324   : > { %1866 = vst.msk [vmem:[#allocation5 + $0x50] sm:$0xff] %vm1855_vm2, %v1828_v39 }
 0x326   : > { %v1927_v60 = vpop.permute.xlu1 %1926 }
 0x327   : > { %v1925_v61 = vpop.permute.xlu0 %1924 }
 0x328   : > { %1963 = vst.msk [vmem:[#allocation5 + $0x50] sm:$0xff] %vm1952_vm3, %v1925_v61 }
 0x32a   : > { %v1735_v62 = vpop.permute.xlu1 %1734  ;;  %v2366_v1 = vld [vmem:[#allocation5 + $0x40] sm:$0xff] }
 0x32b   : > { %v2022_v63 = vpop.permute.xlu0 %2021  ;;  %1771 = vst.msk [vmem:[#allocation5 + $0x60] sm:$0xff] %vm1758_vm1, %v1735_v62  ;;  %2899 = vmatprep.mubr.msk.f32.mxu1 %vm2390_vm8, %v2366_v1 }
 0x32c   : > { %2060 = vst.msk [vmem:[#allocation5 + $0x50] sm:$0xff] %vm2049_vm4, %v2022_v63 }
 0x32e   : > { %v2120_v2 = vpop.permute.xlu1 %2119 }
 0x32f   : > { %2158 = vst.msk [vmem:[#allocation5 + $0x50] sm:$0xff] %vm2147_vm5, %v2120_v2 }
 0x332   : > { %v2217_v3 = vpop.permute.xlu1 %2216 }
 0x333   : > { %2255 = vst.msk [vmem:[#allocation5 + $0x50] sm:$0xff] %vm2244_vm6, %v2217_v3  ;;  %v1834_v4 = vpop.permute.xlu0 %1833 }
 0x336   : > { %v2314_v5 = vpop.permute.xlu1 %2313 }
 0x337   : > { %2352 = vst.msk [vmem:[#allocation5 + $0x50] sm:$0xff] %vm2341_vm7, %v2314_v5  ;;  %v1642_v6 = vpop.permute.xlu0 %1641 }
 0x338   : > { %1676 = vst.msk [vmem:[#allocation5 + $0x70] sm:$0xff] %vm1661_vm0, %v1642_v6 }
 0x33a   : > { %v1636_v7 = vpop.permute.xlu1 %1635 }
 0x33b   : > { %1673 = vst.msk [vmem:[#allocation5 + $0x58] sm:$0xff] %vm1661_vm0, %v1636_v7  ;;  %v1640_v8 = vpop.permute.xlu0 %1639 }
 0x33c   : > { %1675 = vst.msk [vmem:[#allocation5 + $0x68] sm:$0xff] %vm1661_vm0, %v1640_v8 }
 0x33e   : > { %v1733_v45 = vpop.permute.xlu1 %1732  ;;  %v2368_v19 = vld [vmem:[#allocation5 + $0x50] sm:$0xff] }
 0x33f   : > { %1770 = vst.msk [vmem:[#allocation5 + $0x58] sm:$0xff] %vm1758_vm1, %v1733_v45  ;;  %v1737_v9 = vpop.permute.xlu0 %1736 }
 0x340   : > { %1867 = vst.msk [vmem:[#allocation5 + $0x58] sm:$0xff] %vm1855_vm2, %v1830_v59 }
 0x341   : > { %1772 = vst.msk [vmem:[#allocation5 + $0x68] sm:$0xff] %vm1758_vm1, %v1737_v9 }
 0x342   : > { %1964 = vst.msk [vmem:[#allocation5 + $0x58] sm:$0xff] %vm1952_vm3, %v1927_v60  ;;  %v2118_v10 = vpop.permute.xlu1 %2117 }
 0x343   : > { %1869 = vst.msk [vmem:[#allocation5 + $0x68] sm:$0xff] %vm1855_vm2, %v1834_v4  ;;  %v2122_v11 = vpop.permute.xlu0 %2121 }
 0x344   : > { %2061 = vst.msk [vmem:[#allocation5 + $0x58] sm:$0xff] %vm2049_vm4, %v2024_v58 }
 0x345   : > { %2157 = vst.msk [vmem:[#allocation5 + $0x48] sm:$0xff] %vm2147_vm5, %v2118_v10  ;;  %2159 = vst.msk [vmem:[#allocation5 + $0x58] sm:$0xff] %vm2147_vm5, %v2122_v11 }
 0x346   : > { %v2215_v12 = vpop.permute.xlu1 %2214 }
 0x347   : > { %2254 = vst.msk [vmem:[#allocation5 + $0x48] sm:$0xff] %vm2244_vm6, %v2215_v12  ;;  %v2219_v13 = vpop.permute.xlu0 %2218 }
 0x348   : > { %2256 = vst.msk [vmem:[#allocation5 + $0x58] sm:$0xff] %vm2244_vm6, %v2219_v13 }
 0x34a   : > { %v2312_v14 = vpop.permute.xlu1 %2311 }
 0x34b   : > { %2351 = vst.msk [vmem:[#allocation5 + $0x48] sm:$0xff] %vm2341_vm7, %v2312_v14  ;;  %v2026_v15 = vpop.permute.xlu0 %2025 }
 0x34e   : > { %v1931_v40 = vpop.permute.xlu1 %1930 }
 0x34f   : > { %1966 = vst.msk [vmem:[#allocation5 + $0x68] sm:$0xff] %vm1952_vm3, %v1931_v40  ;;  %v1644_v42 = vpop.permute.xlu0 %1643 }
 0x350   : > { %1677 = vst.msk [vmem:[#allocation5 + $0x78] sm:$0xff] %vm1661_vm0, %v1644_v42 }
 0x352   : > { %v1832_v16 = vpop.permute.xlu1 %1831  ;;  %v2367_v17 = vld [vmem:[#allocation5 + $0x48] sm:$0xff] }
 0x353   : > { %1868 = vst.msk [vmem:[#allocation5 + $0x60] sm:$0xff] %vm1855_vm2, %v1832_v16  ;;  %2900 = vmatmul.mubr.msk.f32.gmra.mxu1 %vm2390_vm8, %v2367_v17  ;;  %v2028_v18 = vpop.permute.xlu0 %2027 }
 0x354   : > { %2063 = vst.msk [vmem:[#allocation5 + $0x68] sm:$0xff] %vm2049_vm4, %v2028_v18  ;;  %2902 = vmatprep.mubr.msk.f32.mxu1 %vm2390_vm8, %v2368_v19 }
 0x356   : > { %v1929_v0 = vpop.permute.xlu1 %1928 }
 0x357   : > { %1965 = vst.msk [vmem:[#allocation5 + $0x60] sm:$0xff] %vm1952_vm3, %v1929_v0  ;;  %v1741_v20 = vpop.permute.xlu0 %1740 }
 0x358   : > { %2062 = vst.msk [vmem:[#allocation5 + $0x60] sm:$0xff] %vm2049_vm4, %v2026_v15 }
 0x359   : > { %1774 = vst.msk [vmem:[#allocation5 + $0x78] sm:$0xff] %vm1758_vm1, %v1741_v20 }
 0x35a   : > { %v2316_v21 = vpop.permute.xlu1 %2315 }
 0x35b   : > { %2353 = vst.msk [vmem:[#allocation5 + $0x58] sm:$0xff] %vm2341_vm7, %v2316_v21  ;;  %v2126_v22 = vpop.permute.xlu0 %2125 }
 0x35c   : > { %2161 = vst.msk [vmem:[#allocation5 + $0x68] sm:$0xff] %vm2147_vm5, %v2126_v22 }
 0x35e   : > { %v1739_v23 = vpop.permute.xlu1 %1738 }
 0x35f   : > { %1773 = vst.msk [vmem:[#allocation5 + $0x70] sm:$0xff] %vm1758_vm1, %v1739_v23  ;;  %v1838_v24 = vpop.permute.xlu0 %1837 }
 0x360   : > { %1871 = vst.msk [vmem:[#allocation5 + $0x78] sm:$0xff] %vm1855_vm2, %v1838_v24 }
 0x362   : > { %v2124_v25 = vpop.permute.xlu1 %2123  ;;  %v2369_v26 = vld [vmem:[#allocation5 + $0x58] sm:$0xff] }
 0x363   : > { %2160 = vst.msk [vmem:[#allocation5 + $0x60] sm:$0xff] %vm2147_vm5, %v2124_v25  ;;  %2903 = vmatmul.mubr.msk.f32.gmra.mxu1 %vm2390_vm8, %v2369_v26  ;;  %v2223_v27 = vpop.permute.xlu0 %2222 }
 0x364   : > { %2258 = vst.msk [vmem:[#allocation5 + $0x68] sm:$0xff] %vm2244_vm6, %v2223_v27 }
 0x366   : > { %v1836_v28 = vpop.permute.xlu1 %1835 }
 0x367   : > { %1870 = vst.msk [vmem:[#allocation5 + $0x70] sm:$0xff] %vm1855_vm2, %v1836_v28  ;;  %v1935_v29 = vpop.permute.xlu0 %1934 }
 0x368   : > { %1968 = vst.msk [vmem:[#allocation5 + $0x78] sm:$0xff] %vm1952_vm3, %v1935_v29 }
 0x36a   : > { %v2221_v31 = vpop.permute.xlu1 %2220 }
 0x36b   : > { %2257 = vst.msk [vmem:[#allocation5 + $0x60] sm:$0xff] %vm2244_vm6, %v2221_v31  ;;  %v2320_v32 = vpop.permute.xlu0 %2319 }
 0x36c   : > { %2355 = vst.msk [vmem:[#allocation5 + $0x68] sm:$0xff] %vm2341_vm7, %v2320_v32 }
 0x36e   : > { %v1933_v30 = vpop.permute.xlu1 %1932 }
 0x36f   : > { %1967 = vst.msk [vmem:[#allocation5 + $0x70] sm:$0xff] %vm1952_vm3, %v1933_v30  ;;  %v2128_v33 = vpop.permute.xlu0 %2127 }
 0x372   : > { %v2318_v44 = vpop.permute.xlu1 %2317 }
 0x373   : > { %2354 = vst.msk [vmem:[#allocation5 + $0x60] sm:$0xff] %vm2341_vm7, %v2318_v44  ;;  %v2225_v48 = vpop.permute.xlu0 %2224  ;;  %v2371_v38 = vld [vmem:[#allocation5 + $0x68] sm:$0xff] }
 0x376   : > { %v2030_v49 = vpop.permute.xlu1 %2029 }
 0x377   : > { %2064 = vst.msk [vmem:[#allocation5 + $0x70] sm:$0xff] %vm2049_vm4, %v2030_v49  ;;  %v2322_v34 = vpop.permute.xlu0 %2321 }
 0x378   : > { %2162 = vst.msk [vmem:[#allocation5 + $0x70] sm:$0xff] %vm2147_vm5, %v2128_v33 }
 0x379   : > { %2259 = vst.msk [vmem:[#allocation5 + $0x70] sm:$0xff] %vm2244_vm6, %v2225_v48 }
 0x37a   : > { %2356 = vst.msk [vmem:[#allocation5 + $0x70] sm:$0xff] %vm2341_vm7, %v2322_v34  ;;  %v2032_v35 = vpop.permute.xlu1 %2031  ;;  %v2370_v36 = vld [vmem:[#allocation5 + $0x60] sm:$0xff] }
 0x37b   : > { %2065 = vst.msk [vmem:[#allocation5 + $0x78] sm:$0xff] %vm2049_vm4, %v2032_v35  ;;  %2905 = vmatprep.mubr.msk.f32.mxu1 %vm2390_vm8, %v2370_v36 }
 0x37c   : > { %2906 = vmatmul.mubr.msk.f32.gmra.mxu1 %vm2390_vm8, %v2371_v38 }
 0x37e   : > { %v2130_v41 = vpop.permute.xlu1 %2129 }
 0x37f   : > { %2163 = vst.msk [vmem:[#allocation5 + $0x78] sm:$0xff] %vm2147_vm5, %v2130_v41 }
 0x381   : > { %v2372_v43 = vld [vmem:[#allocation5 + $0x70] sm:$0xff] }
 0x382   : > { %v2227_v46 = vpop.permute.xlu1 %2226  ;;  %2908 = vmatprep.mubr.msk.f32.mxu1 %vm2390_vm8, %v2372_v43 }
 0x383   : > { %2260 = vst.msk [vmem:[#allocation5 + $0x78] sm:$0xff] %vm2244_vm6, %v2227_v46 }
 0x386   : > { %v2889_v47 = vpop.f32.mrf.mxu0  ;;  %v2324_v52 = vpop.permute.xlu1 %2323 }
 0x387   : > { %2357 = vst.msk [vmem:[#allocation5 + $0x78] sm:$0xff] %vm2341_vm7, %v2324_v52  ;;  %v2511_v54 = vadd.f32 %v2889_v47, %v4123_v50 }
 0x388   : > { %v2505_v51 = vpop.f32.mrf.mxu0 }
 0x389   : > { %v2506_v53 = vadd.f32 %v4123_v50, %v2505_v51  ;;  %v2585_v56 = vmax.f32 %v2511_v54, 0.0 }
 0x38b   : > { %v2584_v55 = vmax.f32 %v2506_v53, 0.0 }
 0x38d   : > { %2600 = vxpose.xlu0.b32.start [1/8] (short) (narrow) %v2584_v55, 8 }
 0x38e   : > { %v2373_v57 = vld [vmem:[#allocation5 + $0x78] sm:$0xff] }
 0x38f   : > { %2909 = vmatmul.mubr.msk.f32.gmra.mxu1 %vm2390_vm8, %v2373_v57 }
 0x391   : > { %2601 = vxpose.xlu0.b32.cont [2/8] (short) (narrow) %v2585_v56, 8 }
 0x3a4   : > { %v2892_v37 = vpop.f32.mrf.mxu1 }
 0x3a5   : > { %v2521_v39 = vadd.f32 %v2892_v37, %v4123_v50 }
 0x3a6   : > { %v2515_v58 = vpop.f32.mrf.mxu1 }
 0x3a7   : > { %v2516_v59 = vadd.f32 %v4123_v50, %v2515_v58  ;;  %v2587_v61 = vmax.f32 %v2521_v39, 0.0 }
 0x3a9   : > { %v2586_v60 = vmax.f32 %v2516_v59, 0.0 }
 0x3ab   : > { %2602 = vxpose.xlu0.b32.cont [3/8] (short) (narrow) %v2586_v60, 8 }
 0x3af   : > { %2603 = vxpose.xlu0.b32.cont [4/8] (short) (narrow) %v2587_v61, 8 }
 0x3cc   : > { %v2895_v62 = vpop.f32.mrf.mxu1 }
 0x3cd   : > { %v2531_v3 = vadd.f32 %v2895_v62, %v4123_v50 }
 0x3ce   : > { %v2525_v63 = vpop.f32.mrf.mxu1 }
 0x3cf   : > { %v2526_v1 = vadd.f32 %v4123_v50, %v2525_v63  ;;  %v2589_v6 = vmax.f32 %v2531_v3, 0.0 }
 0x3d0   : > { %v2898_v2 = vpop.f32.mrf.mxu1 }
 0x3d1   : > { %v2588_v4 = vmax.f32 %v2526_v1, 0.0  ;;  %v2541_v8 = vadd.f32 %v2898_v2, %v4123_v50 }
 0x3d2   : > { %v2535_v5 = vpop.f32.mrf.mxu1 }
 0x3d3   : > { %2604 = vxpose.xlu0.b32.cont [5/8] (short) (narrow) %v2588_v4, 8  ;;  %v2536_v7 = vadd.f32 %v4123_v50, %v2535_v5  ;;  %v2591_v9 = vmax.f32 %v2541_v8, 0.0 }
 0x3d5   : > { %v2590_v45 = vmax.f32 %v2536_v7, 0.0 }
 0x3d7   : > { %2605 = vxpose.xlu0.b32.cont [6/8] (short) (narrow) %v2589_v6, 8 }
 0x3db   : > { %2606 = vxpose.xlu0.b32.cont [7/8] (short) (narrow) %v2590_v45, 8 }
 0x3df   : > { %2607 = vxpose.xlu0.b32.end [8/8] (short) (narrow) %v2591_v9, 8 }
 0x413   : > { %v2901_v10 = vpop.f32.mrf.mxu1 }
 0x414   : > { %v2551_v13 = vadd.f32 %v2901_v10, %v4123_v50 }
 0x415   : > { %v2545_v11 = vpop.f32.mrf.mxu1 }
 0x416   : > { %v2546_v12 = vadd.f32 %v4123_v50, %v2545_v11  ;;  %v2593_v15 = vmax.f32 %v2551_v13, 0.0 }
 0x418   : > { %v2592_v14 = vmax.f32 %v2546_v12, 0.0 }
 0x41a   : > { %2634 = vxpose.xlu1.b32.start [1/8] (short) (narrow) %v2592_v14, 8 }
 0x41e   : > { %2635 = vxpose.xlu1.b32.cont [2/8] (short) (narrow) %v2593_v15, 8 }
 0x423   : > { %v2904_v40 = vpop.f32.mrf.mxu1 }
 0x424   : > { %v2561_v17 = vadd.f32 %v2904_v40, %v4123_v50 }
 0x425   : > { %v2555_v42 = vpop.f32.mrf.mxu1 }
 0x426   : > { %v2556_v16 = vadd.f32 %v4123_v50, %v2555_v42  ;;  %v2595_v19 = vmax.f32 %v2561_v17, 0.0 }
 0x428   : > { %v2594_v18 = vmax.f32 %v2556_v16, 0.0 }
 0x42a   : > { %2636 = vxpose.xlu1.b32.cont [3/8] (short) (narrow) %v2594_v18, 8 }
 0x42e   : > { %2637 = vxpose.xlu1.b32.cont [4/8] (short) (narrow) %v2595_v19, 8 }
 0x43c   : > { %v2907_v0 = vpop.f32.mrf.mxu1 }
 0x43d   : > { %v2571_v23 = vadd.f32 %v2907_v0, %v4123_v50 }
 0x43e   : > { %v2565_v20 = vpop.f32.mrf.mxu1 }
 0x43f   : > { %v2566_v21 = vadd.f32 %v4123_v50, %v2565_v20  ;;  %v2616_v22 = vpop.trf.xlu0  ;;  %v2597_v25 = vmax.f32 %v2571_v23, 0.0 }
 0x440   : > { %2633 = vst.msk [vmem:[%s229_s22] sm:$0xff] %vm2632_vm9, %v2616_v22 }
 0x441   : > { %v2596_v24 = vmax.f32 %v2566_v21, 0.0 }
 0x443   : > { %2638 = vxpose.xlu1.b32.cont [5/8] (short) (narrow) %v2596_v24, 8 }
 0x447   : > { %2639 = vxpose.xlu1.b32.cont [6/8] (short) (narrow) %v2597_v25, 8 }
 0x44f   : > { %v2910_v26 = vpop.f32.mrf.mxu1 }
 0x450   : > { %v2581_v29 = vadd.f32 %v2910_v26, %v4123_v50 }
 0x451   : > { %v2575_v27 = vpop.f32.mrf.mxu1 }
 0x452   : > { %v2576_v28 = vadd.f32 %v4123_v50, %v2575_v27  ;;  %v2599_v32 = vmax.f32 %v2581_v29, 0.0 }
 0x454   : > { %v2598_v31 = vmax.f32 %v2576_v28, 0.0 }
 0x456   : > { %2640 = vxpose.xlu1.b32.cont [7/8] (short) (narrow) %v2598_v31, 8 }
 0x45a   : > { %2641 = vxpose.xlu1.b32.end [8/8] (short) (narrow) %v2599_v32, 8 }
 0x4ba   : > { %v2650_v30 = vpop.trf.xlu1 }
 0x4bb   : > { %2785 = vst.msk [vmem:[%s229_s22 + $0x8] sm:$0xff] %vm2632_vm9, %v2650_v30 }
 0x4bc PF: > { %s15_s18 = sadd.s32 1, %s2957_s18  }
 0x4bd   : > { %p12_p4 = scmp.ge.s32.totalorder %s15_s18, 4  }
 0x4bf   :  { %14 = sbr.rel (!%p12_p4) target bundleno = 1 (0x1), region = 78 }

</bundles_post_ra>
